<compile_context>
chip_gen: v7x
topology: tpu7x:2x2x1
jax: 0.10.0
libtpu: 0.0.40
codegen_flags: <defaults>
</compile_context>

<pallas_src>
import functools
import math

import jax
import jax.numpy as jnp
from jax.experimental import pallas as pl
from jax.experimental.pallas import tpu as pltpu

# ----------------------------- config (small, deterministic) -----------------------------
SRC_VOCAB = 16
TGT_VOCAB = 16
D_MODEL   = 32
D_FF      = 64
D_K       = 8
D_V       = 8
N_HEADS   = 4
N_LAYERS  = 2
BATCH     = 2
SRC_LEN   = 8
TGT_LEN   = 8
LN_EPS    = 1e-5


# ----------------------------- in-kernel building blocks (values + refs) -----------------------------
def _layernorm(y, gamma, beta):
    mu = jnp.mean(y, axis=-1, keepdims=True)
    var = jnp.mean((y - mu) * (y - mu), axis=-1, keepdims=True)
    return (y - mu) * jax.lax.rsqrt(var + LN_EPS) * gamma + beta


def _mha_body(xq, xkv, mask, wq_ref, wk_ref, wv_ref, wo_ref, g_ref, b_ref,
              attn_ref, *, n_heads, scale):
    """Full multi-head attention for one batch element.

    xq:   (Lq, D)  value
    xkv:  (Lk, D)  value
    mask: (Lq, Lk) value, 1.0 = masked
    wq_ref/wk_ref: (H, D, d_k), wv_ref: (H, D, d_v), wo_ref: (H, d_v, D)
    attn_ref: (H, Lq, Lk) output block for this batch element
    Returns LayerNorm(out_proj(context) + xq) : (Lq, D)
    """
    acc = jnp.zeros(xq.shape, jnp.float32)
    for h in range(n_heads):
        qh = jnp.dot(xq, wq_ref[h], preferred_element_type=jnp.float32)     # (Lq, dk)
        kh = jnp.dot(xkv, wk_ref[h], preferred_element_type=jnp.float32)    # (Lk, dk)
        vh = jnp.dot(xkv, wv_ref[h], preferred_element_type=jnp.float32)    # (Lk, dv)
        s = jnp.dot(qh, kh.T, preferred_element_type=jnp.float32) * scale   # (Lq, Lk)
        s = jnp.where(mask > 0.5, -1e9, s)
        m = jnp.max(s, axis=-1, keepdims=True)
        e = jnp.exp(s - m)
        p = e * pl.reciprocal(jnp.sum(e, axis=-1, keepdims=True), approx=True)
        attn_ref[h] = p
        ctx = jnp.dot(p, vh, preferred_element_type=jnp.float32)            # (Lq, dv)
        acc = acc + jnp.dot(ctx, wo_ref[h], preferred_element_type=jnp.float32)
    return _layernorm(acc + xq, g_ref[...], b_ref[...])


def _ffn_body(x, w1_ref, w2_ref, g_ref, b_ref):
    """LayerNorm(relu(x @ w1) @ w2 + x) for one batch element. x: (L, D)."""
    h = jnp.maximum(
        jnp.dot(x, w1_ref[...], preferred_element_type=jnp.float32), 0.0)
    y = jnp.dot(h, w2_ref[...], preferred_element_type=jnp.float32) + x
    return _layernorm(y, g_ref[...], b_ref[...])


# ----------------------------- fused layer kernels -----------------------------
def _enc_layer_kernel(x_ref, m_ref,
                      wq_ref, wk_ref, wv_ref, wo_ref, g1_ref, b1_ref,
                      w1_ref, w2_ref, g2_ref, b2_ref,
                      o_ref, attn_ref, *, n_heads, scale):
    x = x_ref[0]                       # (L, D)
    mask = m_ref[0]                    # (L, L)
    h1 = _mha_body(x, x, mask, wq_ref, wk_ref, wv_ref, wo_ref, g1_ref, b1_ref,
                   attn_ref, n_heads=n_heads, scale=scale)
    o_ref[0] = _ffn_body(h1, w1_ref, w2_ref, g2_ref, b2_ref)


def _dec_layer_kernel(x_ref, enc_ref, sm_ref, cm_ref,
                      swq_ref, swk_ref, swv_ref, swo_ref, sg_ref, sb_ref,
                      cwq_ref, cwk_ref, cwv_ref, cwo_ref, cg_ref, cb_ref,
                      w1_ref, w2_ref, g2_ref, b2_ref,
                      o_ref, sattn_ref, cattn_ref, *, n_heads, scale):
    x = x_ref[0]                       # (Lt, D)
    e = enc_ref[0]                     # (Ls, D)
    h1 = _mha_body(x, x, sm_ref[0], swq_ref, swk_ref, swv_ref, swo_ref,
                   sg_ref, sb_ref, sattn_ref, n_heads=n_heads, scale=scale)
    h2 = _mha_body(h1, e, cm_ref[0], cwq_ref, cwk_ref, cwv_ref, cwo_ref,
                   cg_ref, cb_ref, cattn_ref, n_heads=n_heads, scale=scale)
    o_ref[0] = _ffn_body(h2, w1_ref, w2_ref, g2_ref, b2_ref)


def _proj_kernel(x_ref, w_ref, o_ref):
    o_ref[0] = jnp.dot(x_ref[0], w_ref[...], preferred_element_type=jnp.float32)


# ----------------------------- pallas_call wrappers -----------------------------
def _act_spec(L, D):
    return pl.BlockSpec((1, L, D), lambda b: (b, 0, 0))


def _mask_spec(Lq, Lk):
    return pl.BlockSpec((1, Lq, Lk), lambda b: (b, 0, 0))


_W_QK_SPEC = pl.BlockSpec((N_HEADS, D_MODEL, D_K), lambda b: (0, 0, 0))
_W_V_SPEC  = pl.BlockSpec((N_HEADS, D_MODEL, D_V), lambda b: (0, 0, 0))
_W_O_SPEC  = pl.BlockSpec((N_HEADS, D_V, D_MODEL), lambda b: (0, 0, 0))
_LN_SPEC   = pl.BlockSpec((1, D_MODEL), lambda b: (0, 0))
_W1_SPEC   = pl.BlockSpec((D_MODEL, D_FF), lambda b: (0, 0))
_W2_SPEC   = pl.BlockSpec((D_FF, D_MODEL), lambda b: (0, 0))


def pallas_encoder_layer(x, mask, lp):
    """x: [B, L, D], mask: [B, L, L] float (1.0 = masked). Returns (x_out, attn[B,H,L,L])."""
    B, L, D = x.shape
    sa, ff = lp["self_attn"], lp["ffn"]
    kern = functools.partial(_enc_layer_kernel, n_heads=N_HEADS,
                             scale=1.0 / math.sqrt(D_K))
    out, attn = pl.pallas_call(
        kern,
        out_shape=(jax.ShapeDtypeStruct((B, L, D), jnp.float32),
                   jax.ShapeDtypeStruct((B * N_HEADS, L, L), jnp.float32)),
        grid=(B,),
        in_specs=[
            _act_spec(L, D), _mask_spec(L, L),
            _W_QK_SPEC, _W_QK_SPEC, _W_V_SPEC, _W_O_SPEC, _LN_SPEC, _LN_SPEC,
            _W1_SPEC, _W2_SPEC, _LN_SPEC, _LN_SPEC,
        ],
        out_specs=(_act_spec(L, D),
                   pl.BlockSpec((N_HEADS, L, L), lambda b: (b, 0, 0))),
        compiler_params=pltpu.CompilerParams(dimension_semantics=("parallel",)),
    )(x, mask,
      sa["wq"], sa["wk"], sa["wv"], sa["wo"], sa["ln_g"], sa["ln_b"],
      ff["w1"], ff["w2"], ff["ln_g"], ff["ln_b"])
    return out, attn.reshape(B, N_HEADS, L, L)


def pallas_decoder_layer(x, enc_out, self_mask, cross_mask, lp):
    """x: [B, Lt, D], enc_out: [B, Ls, D]; masks float (1.0 = masked)."""
    B, Lt, D = x.shape
    Ls = enc_out.shape[1]
    sa, ca, ff = lp["self_attn"], lp["cross_attn"], lp["ffn"]
    kern = functools.partial(_dec_layer_kernel, n_heads=N_HEADS,
                             scale=1.0 / math.sqrt(D_K))
    out, sattn, cattn = pl.pallas_call(
        kern,
        out_shape=(jax.ShapeDtypeStruct((B, Lt, D), jnp.float32),
                   jax.ShapeDtypeStruct((B * N_HEADS, Lt, Lt), jnp.float32),
                   jax.ShapeDtypeStruct((B * N_HEADS, Lt, Ls), jnp.float32)),
        grid=(B,),
        in_specs=[
            _act_spec(Lt, D), _act_spec(Ls, D),
            _mask_spec(Lt, Lt), _mask_spec(Lt, Ls),
            _W_QK_SPEC, _W_QK_SPEC, _W_V_SPEC, _W_O_SPEC, _LN_SPEC, _LN_SPEC,
            _W_QK_SPEC, _W_QK_SPEC, _W_V_SPEC, _W_O_SPEC, _LN_SPEC, _LN_SPEC,
            _W1_SPEC, _W2_SPEC, _LN_SPEC, _LN_SPEC,
        ],
        out_specs=(_act_spec(Lt, D),
                   pl.BlockSpec((N_HEADS, Lt, Lt), lambda b: (b, 0, 0)),
                   pl.BlockSpec((N_HEADS, Lt, Ls), lambda b: (b, 0, 0))),
        compiler_params=pltpu.CompilerParams(dimension_semantics=("parallel",)),
    )(x, enc_out, self_mask, cross_mask,
      sa["wq"], sa["wk"], sa["wv"], sa["wo"], sa["ln_g"], sa["ln_b"],
      ca["wq"], ca["wk"], ca["wv"], ca["wo"], ca["ln_g"], ca["ln_b"],
      ff["w1"], ff["w2"], ff["ln_g"], ff["ln_b"])
    return (out,
            sattn.reshape(B, N_HEADS, Lt, Lt),
            cattn.reshape(B, N_HEADS, Lt, Ls))


def pallas_projection(x, w):
    """x: [B, L, D] @ w: [D, N] -> [B, L, N]."""
    B, L, D = x.shape
    N = w.shape[1]
    return pl.pallas_call(
        _proj_kernel,
        out_shape=jax.ShapeDtypeStruct((B, L, N), jnp.float32),
        grid=(B,),
        in_specs=[_act_spec(L, D), pl.BlockSpec((D, N), lambda b: (0, 0))],
        out_specs=_act_spec(L, N),
        compiler_params=pltpu.CompilerParams(dimension_semantics=("parallel",)),
    )(x, w)


# ----------------------------- glue (plain JAX) -----------------------------
def sinusoidal_pos_table(max_len, d_model):
    pos = jnp.arange(max_len, dtype=jnp.float32)[:, None]
    div = jnp.exp(jnp.arange(0, d_model, 2, dtype=jnp.float32)
                  * (-math.log(10000.0) / d_model))
    pe = jnp.zeros((max_len, d_model), dtype=jnp.float32)
    pe = pe.at[:, 0::2].set(jnp.sin(pos * div))
    pe = pe.at[:, 1::2].set(jnp.cos(pos * div))
    return pe


def get_attn_pad_mask(seq_q, seq_k):
    # [B, Lq, Lk] bool: True where key token is PAD (id 0)
    B, Lq = seq_q.shape
    Lk = seq_k.shape[1]
    pad = (seq_k == 0)[:, None, :]                      # [B, 1, Lk]
    return jnp.broadcast_to(pad, (B, Lq, Lk))


def get_attn_subsequence_mask(seq):
    B, L = seq.shape
    sub = jnp.triu(jnp.ones((L, L), dtype=jnp.bool_), k=1)  # [L, L]
    return jnp.broadcast_to(sub[None, :, :], (B, L, L))


def encoder(params, enc_inputs):
    # TODO(synk): embedding gather + positional add stay in plain JAX (XLA gather).
    B, L = enc_inputs.shape
    x = params["src_emb"][enc_inputs] + params["pos_table"][:L][None, :, :]
    self_mask = get_attn_pad_mask(enc_inputs, enc_inputs).astype(jnp.float32)
    attns = []
    for lp in params["enc_layers"]:
        x, a = pallas_encoder_layer(x, self_mask, lp)
        attns.append(a)
    return x, attns


def decoder(params, dec_inputs, enc_inputs, enc_outputs):
    B, L = dec_inputs.shape
    x = params["tgt_emb"][dec_inputs] + params["pos_table"][:L][None, :, :]
    self_mask = jnp.logical_or(
        get_attn_pad_mask(dec_inputs, dec_inputs),
        get_attn_subsequence_mask(dec_inputs)).astype(jnp.float32)
    cross_mask = get_attn_pad_mask(dec_inputs, enc_inputs).astype(jnp.float32)
    self_attns, cross_attns = [], []
    for lp in params["dec_layers"]:
        x, a1, a2 = pallas_decoder_layer(x, enc_outputs, self_mask, cross_mask, lp)
        self_attns.append(a1)
        cross_attns.append(a2)
    return x, self_attns, cross_attns


def transformer_forward(params, enc_inputs, dec_inputs):
    enc_out, enc_self_attns = encoder(params, enc_inputs)
    dec_out, dec_self_attns, dec_enc_attns = decoder(params, dec_inputs,
                                                     enc_inputs, enc_out)
    # nn.Linear(d_model, d_model, bias=False) — matches the provided spec module.
    dec_logits = pallas_projection(dec_out, params["proj"])
    return dec_logits, enc_self_attns, dec_self_attns, dec_enc_attns


# ----------------------------- deterministic parameter init -----------------------------
def init_params(key):
    ks = iter(jax.random.split(key, 256))

    def w(shape, scale=0.02):
        return (scale * jax.random.normal(next(ks), shape)).astype(jnp.float32)

    def mha_params():
        # per-head weight layout [H, d_model, d_head] / [H, d_v, d_model]
        return {"wq": w((N_HEADS, D_MODEL, D_K)),
                "wk": w((N_HEADS, D_MODEL, D_K)),
                "wv": w((N_HEADS, D_MODEL, D_V)),
                "wo": w((N_HEADS, D_V, D_MODEL)),
                "ln_g": jnp.ones((1, D_MODEL), jnp.float32),
                "ln_b": jnp.zeros((1, D_MODEL), jnp.float32)}

    def ffn_params():
        return {"w1": w((D_MODEL, D_FF)),
                "w2": w((D_FF, D_MODEL)),
                "ln_g": jnp.ones((1, D_MODEL), jnp.float32),
                "ln_b": jnp.zeros((1, D_MODEL), jnp.float32)}

    params = {
        "src_emb": w((SRC_VOCAB, D_MODEL), 1.0),
        "tgt_emb": w((TGT_VOCAB, D_MODEL), 1.0),
        "pos_table": sinusoidal_pos_table(max(SRC_LEN, TGT_LEN), D_MODEL),
        "enc_layers": [{"self_attn": mha_params(), "ffn": ffn_params()}
                       for _ in range(N_LAYERS)],
        "dec_layers": [{"self_attn": mha_params(), "cross_attn": mha_params(),
                        "ffn": ffn_params()} for _ in range(N_LAYERS)],
        "proj": w((D_MODEL, D_MODEL)),   # nn.Linear(d_model, d_model, bias=False)
    }
    return params


# ----------------------------- main -----------------------------
if __name__ == "__main__":
    key = jax.random.PRNGKey(0)
    kp, ke, kd = jax.random.split(key, 3)

    params = init_params(kp)

    # token ids in [1, vocab); force a trailing PAD (id 0) to exercise pad masks
    enc_inputs = jax.random.randint(ke, (BATCH, SRC_LEN), 1, SRC_VOCAB, dtype=jnp.int32)
    dec_inputs = jax.random.randint(kd, (BATCH, TGT_LEN), 1, TGT_VOCAB, dtype=jnp.int32)
    enc_inputs = enc_inputs.at[:, -1].set(0)
    dec_inputs = dec_inputs.at[:, -1].set(0)

    fwd = jax.jit(transformer_forward)
    dec_logits, enc_sa, dec_sa, dec_ea = fwd(params, enc_inputs, dec_inputs)
    jax.block_until_ready(dec_logits)
    jax.block_until_ready(enc_sa)
    jax.block_until_ready(dec_sa)
    jax.block_until_ready(dec_ea)

    assert dec_logits.shape == (BATCH, TGT_LEN, D_MODEL)
    assert enc_sa[0].shape == (BATCH, N_HEADS, SRC_LEN, SRC_LEN)
    assert dec_sa[0].shape == (BATCH, N_HEADS, TGT_LEN, TGT_LEN)
    assert dec_ea[0].shape == (BATCH, N_HEADS, TGT_LEN, SRC_LEN)
    assert bool(jnp.all(jnp.isfinite(dec_logits)))

    print("KERNEL_OK")
</pallas_src>

<mosaic_0001>
module attributes {stable_mosaic.version = 11 : i64} {
  func.func @_proj_kernel(%arg0: i32, %arg1: memref<1x8x32xf32, #tpu.memory_space<vmem>>, %arg2: memref<32x32xf32, #tpu.memory_space<vmem>>, %arg3: memref<1x8x32xf32, #tpu.memory_space<vmem>>) attributes {dimension_semantics = [#tpu.dimension_semantics<parallel>], iteration_bounds = array<i64: 2>, scalar_prefetch = 0 : i64, scratch_operands = 0 : i64, tpu.core_type = #tpu.core_type<tc>, window_params = [{transform_indices = @transform_0, window_bounds = array<i64: 1, 8, 32>}, {pipeline_mode = #tpu.pipeline_mode<synchronous>, transform_indices = @transform_1, window_bounds = array<i64: 32, 32>}, {transform_indices = @transform_2, window_bounds = array<i64: 1, 8, 32>}]} {
    %c0 = arith.constant 0 : index
    %c0_0 = arith.constant 0 : index
    %c0_1 = arith.constant 0 : index
    %0 = vector.load %arg1[%c0, %c0_0, %c0_1] : memref<1x8x32xf32, #tpu.memory_space<vmem>>, vector<1x8x32xf32>
    %1 = vector.shape_cast %0 : vector<1x8x32xf32> to vector<8x32xf32>
    %c0_2 = arith.constant 0 : index
    %c0_3 = arith.constant 0 : index
    %2 = vector.load %arg2[%c0_2, %c0_3] : memref<32x32xf32, #tpu.memory_space<vmem>>, vector<32x32xf32>
    %cst = arith.constant dense<0.000000e+00> : vector<8x32xf32>
    %3 = tpu.matmul %1, %2, %cst {dimension_numbers = #tpu.dot_dimension_numbers<[1], [0], [0], [1], [0, 0, 1, 1], [], []>} : vector<8x32xf32>, vector<32x32xf32>, vector<8x32xf32> -> vector<8x32xf32>
    %c0_4 = arith.constant 0 : index
    %c0_5 = arith.constant 0 : index
    %c0_6 = arith.constant 0 : index
    %4 = vector.load %arg3[%c0_4, %c0_5, %c0_6] : memref<1x8x32xf32, #tpu.memory_space<vmem>>, vector<1x8x32xf32>
    %5 = vector.shape_cast %4 : vector<1x8x32xf32> to vector<8x32xf32>
    %6 = vector.shape_cast %3 : vector<8x32xf32> to vector<1x8x32xf32>
    tpu.vector_store %arg3[%c0_4, %c0_5, %c0_6], %6 {strides = array<i32>} : memref<1x8x32xf32, #tpu.memory_space<vmem>>, vector<1x8x32xf32>,
    return
  }
  func.func @transform_0(%arg0: i32) -> (i32, i32, i32) {
    %c0_i32 = arith.constant 0 : i32
    %c0_i32_0 = arith.constant 0 : i32
    %c0_i32_1 = arith.constant 0 : i32
    return %arg0, %c0_i32, %c0_i32_0 : i32, i32, i32
  }
  func.func @transform_1(%arg0: i32) -> (i32, i32) {
    %c0_i32 = arith.constant 0 : i32
    %c0_i32_0 = arith.constant 0 : i32
    %c0_i32_1 = arith.constant 0 : i32
    return %c0_i32, %c0_i32_0 : i32, i32
  }
  func.func @transform_2(%arg0: i32) -> (i32, i32, i32) {
    %c0_i32 = arith.constant 0 : i32
    %c0_i32_0 = arith.constant 0 : i32
    %c0_i32_1 = arith.constant 0 : i32
    return %arg0, %c0_i32, %c0_i32_0 : i32, i32, i32
  }
}

module attributes {stable_mosaic.version = 11 : i64} {
  func.func @_enc_layer_kernel(%arg0: i32, %arg1: memref<1x8x32xf32, #tpu.memory_space<vmem>>, %arg2: memref<1x8x8xf32, #tpu.memory_space<vmem>>, %arg3: memref<4x32x8xf32, #tpu.memory_space<vmem>>, %arg4: memref<4x32x8xf32, #tpu.memory_space<vmem>>, %arg5: memref<4x32x8xf32, #tpu.memory_space<vmem>>, %arg6: memref<4x8x32xf32, #tpu.memory_space<vmem>>, %arg7: memref<1x32xf32, #tpu.memory_space<vmem>>, %arg8: memref<1x32xf32, #tpu.memory_space<vmem>>, %arg9: memref<32x64xf32, #tpu.memory_space<vmem>>, %arg10: memref<64x32xf32, #tpu.memory_space<vmem>>, %arg11: memref<1x32xf32, #tpu.memory_space<vmem>>, %arg12: memref<1x32xf32, #tpu.memory_space<vmem>>, %arg13: memref<1x8x32xf32, #tpu.memory_space<vmem>>, %arg14: memref<4x8x8xf32, #tpu.memory_space<vmem>>) attributes {dimension_semantics = [#tpu.dimension_semantics<parallel>], iteration_bounds = array<i64: 2>, scalar_prefetch = 0 : i64, scratch_operands = 0 : i64, tpu.core_type = #tpu.core_type<tc>, window_params = [{transform_indices = @transform_0, window_bounds = array<i64: 1, 8, 32>}, {transform_indices = @transform_1, window_bounds = array<i64: 1, 8, 8>}, {pipeline_mode = #tpu.pipeline_mode<synchronous>, transform_indices = @transform_2, window_bounds = array<i64: 4, 32, 8>}, {pipeline_mode = #tpu.pipeline_mode<synchronous>, transform_indices = @transform_3, window_bounds = array<i64: 4, 32, 8>}, {pipeline_mode = #tpu.pipeline_mode<synchronous>, transform_indices = @transform_4, window_bounds = array<i64: 4, 32, 8>}, {pipeline_mode = #tpu.pipeline_mode<synchronous>, transform_indices = @transform_5, window_bounds = array<i64: 4, 8, 32>}, {pipeline_mode = #tpu.pipeline_mode<synchronous>, transform_indices = @transform_6, window_bounds = array<i64: 1, 32>}, {pipeline_mode = #tpu.pipeline_mode<synchronous>, transform_indices = @transform_7, window_bounds = array<i64: 1, 32>}, {pipeline_mode = #tpu.pipeline_mode<synchronous>, transform_indices = @transform_8, window_bounds = array<i64: 32, 64>}, {pipeline_mode = #tpu.pipeline_mode<synchronous>, transform_indices = @transform_9, window_bounds = array<i64: 64, 32>}, {pipeline_mode = #tpu.pipeline_mode<synchronous>, transform_indices = @transform_10, window_bounds = array<i64: 1, 32>}, {pipeline_mode = #tpu.pipeline_mode<synchronous>, transform_indices = @transform_11, window_bounds = array<i64: 1, 32>}, {transform_indices = @transform_12, window_bounds = array<i64: 1, 8, 32>}, {transform_indices = @transform_13, window_bounds = array<i64: 4, 8, 8>}]} {
    %c0 = arith.constant 0 : index
    %c0_0 = arith.constant 0 : index
    %c0_1 = arith.constant 0 : index
    %0 = vector.load %arg1[%c0, %c0_0, %c0_1] : memref<1x8x32xf32, #tpu.memory_space<vmem>>, vector<1x8x32xf32>
    %1 = vector.shape_cast %0 : vector<1x8x32xf32> to vector<8x32xf32>
    %c0_2 = arith.constant 0 : index
    %c0_3 = arith.constant 0 : index
    %c0_4 = arith.constant 0 : index
    %2 = vector.load %arg2[%c0_2, %c0_3, %c0_4] : memref<1x8x8xf32, #tpu.memory_space<vmem>>, vector<1x8x8xf32>
    %3 = vector.shape_cast %2 : vector<1x8x8xf32> to vector<8x8xf32>
    %cst = arith.constant 0.000000e+00 : f32
    %4 = vector.broadcast %cst : f32 to vector<8x32xf32>
    %c0_5 = arith.constant 0 : index
    %c0_6 = arith.constant 0 : index
    %c0_7 = arith.constant 0 : index
    %5 = vector.load %arg3[%c0_5, %c0_6, %c0_7] : memref<4x32x8xf32, #tpu.memory_space<vmem>>, vector<1x32x8xf32>
    %6 = vector.shape_cast %5 : vector<1x32x8xf32> to vector<32x8xf32>
    %cst_8 = arith.constant dense<0.000000e+00> : vector<8x8xf32>
    %7 = tpu.matmul %1, %6, %cst_8 {dimension_numbers = #tpu.dot_dimension_numbers<[1], [0], [0], [1], [0, 0, 1, 1], [], []>} : vector<8x32xf32>, vector<32x8xf32>, vector<8x8xf32> -> vector<8x8xf32>
    %c0_9 = arith.constant 0 : index
    %c0_10 = arith.constant 0 : index
    %c0_11 = arith.constant 0 : index
    %8 = vector.load %arg4[%c0_9, %c0_10, %c0_11] : memref<4x32x8xf32, #tpu.memory_space<vmem>>, vector<1x32x8xf32>
    %9 = vector.shape_cast %8 : vector<1x32x8xf32> to vector<32x8xf32>
    %cst_12 = arith.constant dense<0.000000e+00> : vector<8x8xf32>
    %10 = tpu.matmul %1, %9, %cst_12 {dimension_numbers = #tpu.dot_dimension_numbers<[1], [0], [0], [1], [0, 0, 1, 1], [], []>} : vector<8x32xf32>, vector<32x8xf32>, vector<8x8xf32> -> vector<8x8xf32>
    %c0_13 = arith.constant 0 : index
    %c0_14 = arith.constant 0 : index
    %c0_15 = arith.constant 0 : index
    %11 = vector.load %arg5[%c0_13, %c0_14, %c0_15] : memref<4x32x8xf32, #tpu.memory_space<vmem>>, vector<1x32x8xf32>
    %12 = vector.shape_cast %11 : vector<1x32x8xf32> to vector<32x8xf32>
    %cst_16 = arith.constant dense<0.000000e+00> : vector<8x8xf32>
    %13 = tpu.matmul %1, %12, %cst_16 {dimension_numbers = #tpu.dot_dimension_numbers<[1], [0], [0], [1], [0, 0, 1, 1], [], []>} : vector<8x32xf32>, vector<32x8xf32>, vector<8x8xf32> -> vector<8x8xf32>
    %14 = tpu.transpose %10, [1, 0] : vector<8x8xf32> -> vector<8x8xf32>
    %cst_17 = arith.constant dense<0.000000e+00> : vector<8x8xf32>
    %15 = tpu.matmul %7, %14, %cst_17 {dimension_numbers = #tpu.dot_dimension_numbers<[1], [0], [0], [1], [0, 0, 1, 1], [], []>} : vector<8x8xf32>, vector<8x8xf32>, vector<8x8xf32> -> vector<8x8xf32>
    %cst_18 = arith.constant 0.353553385 : f32
    %16 = vector.broadcast %cst_18 : f32 to vector<8x8xf32>
    %17 = arith.mulf %15, %16 : vector<8x8xf32>
    %cst_19 = arith.constant 5.000000e-01 : f32
    %18 = vector.broadcast %cst_19 : f32 to vector<8x8xf32>
    %19 = arith.cmpf ogt, %3, %18 : vector<8x8xf32>
    %cst_20 = arith.constant -1.000000e+09 : f32
    %20 = vector.broadcast %cst_20 : f32 to vector<8x8xf32>
    %21 = arith.select %19, %20, %17 : vector<8x8xi1>, vector<8x8xf32>
    %cst_21 = arith.constant dense<0xFF800000> : vector<8xf32>
    %22 = vector.multi_reduction <maximumf>, %21, %cst_21 [1] : vector<8x8xf32> to vector<8xf32>
    %23 = vector.shape_cast %22 : vector<8xf32> to vector<8x1xf32>
    %24 = vector.broadcast %23 : vector<8x1xf32> to vector<8x8xf32>
    %25 = arith.subf %21, %24 : vector<8x8xf32>
    %26 = math.exp %25 : vector<8x8xf32>
    %cst_22 = arith.constant dense<0.000000e+00> : vector<8xf32>
    %27 = vector.multi_reduction <add>, %26, %cst_22 [1] : vector<8x8xf32> to vector<8xf32>
    %28 = vector.shape_cast %27 : vector<8xf32> to vector<8x1xf32>
    %29 = tpu.reciprocal %28 {approx = true} : vector<8x1xf32> -> vector<8x1xf32>
    %30 = vector.broadcast %29 : vector<8x1xf32> to vector<8x8xf32>
    %31 = arith.mulf %26, %30 : vector<8x8xf32>
    %c0_23 = arith.constant 0 : index
    %c0_24 = arith.constant 0 : index
    %c0_25 = arith.constant 0 : index
    %32 = vector.load %arg14[%c0_23, %c0_24, %c0_25] : memref<4x8x8xf32, #tpu.memory_space<vmem>>, vector<1x8x8xf32>
    %33 = vector.shape_cast %32 : vector<1x8x8xf32> to vector<8x8xf32>
    %34 = vector.shape_cast %31 : vector<8x8xf32> to vector<1x8x8xf32>
    tpu.vector_store %arg14[%c0_23, %c0_24, %c0_25], %34 {strides = array<i32>} : memref<4x8x8xf32, #tpu.memory_space<vmem>>, vector<1x8x8xf32>,
    %cst_26 = arith.constant dense<0.000000e+00> : vector<8x8xf32>
    %35 = tpu.matmul %31, %13, %cst_26 {dimension_numbers = #tpu.dot_dimension_numbers<[1], [0], [0], [1], [0, 0, 1, 1], [], []>} : vector<8x8xf32>, vector<8x8xf32>, vector<8x8xf32> -> vector<8x8xf32>
    %c0_27 = arith.constant 0 : index
    %c0_28 = arith.constant 0 : index
    %c0_29 = arith.constant 0 : index
    %36 = vector.load %arg6[%c0_27, %c0_28, %c0_29] : memref<4x8x32xf32, #tpu.memory_space<vmem>>, vector<1x8x32xf32>
    %37 = vector.shape_cast %36 : vector<1x8x32xf32> to vector<8x32xf32>
    %cst_30 = arith.constant dense<0.000000e+00> : vector<8x32xf32>
    %38 = tpu.matmul %35, %37, %cst_30 {dimension_numbers = #tpu.dot_dimension_numbers<[1], [0], [0], [1], [0, 0, 1, 1], [], []>} : vector<8x8xf32>, vector<8x32xf32>, vector<8x32xf32> -> vector<8x32xf32>
    %39 = arith.addf %4, %38 : vector<8x32xf32>
    %c1 = arith.constant 1 : index
    %c0_31 = arith.constant 0 : index
    %c0_32 = arith.constant 0 : index
    %40 = vector.load %arg3[%c1, %c0_31, %c0_32] : memref<4x32x8xf32, #tpu.memory_space<vmem>>, vector<1x32x8xf32>
    %41 = vector.shape_cast %40 : vector<1x32x8xf32> to vector<32x8xf32>
    %cst_33 = arith.constant dense<0.000000e+00> : vector<8x8xf32>
    %42 = tpu.matmul %1, %41, %cst_33 {dimension_numbers = #tpu.dot_dimension_numbers<[1], [0], [0], [1], [0, 0, 1, 1], [], []>} : vector<8x32xf32>, vector<32x8xf32>, vector<8x8xf32> -> vector<8x8xf32>
    %c1_34 = arith.constant 1 : index
    %c0_35 = arith.constant 0 : index
    %c0_36 = arith.constant 0 : index
    %43 = vector.load %arg4[%c1_34, %c0_35, %c0_36] : memref<4x32x8xf32, #tpu.memory_space<vmem>>, vector<1x32x8xf32>
    %44 = vector.shape_cast %43 : vector<1x32x8xf32> to vector<32x8xf32>
    %cst_37 = arith.constant dense<0.000000e+00> : vector<8x8xf32>
    %45 = tpu.matmul %1, %44, %cst_37 {dimension_numbers = #tpu.dot_dimension_numbers<[1], [0], [0], [1], [0, 0, 1, 1], [], []>} : vector<8x32xf32>, vector<32x8xf32>, vector<8x8xf32> -> vector<8x8xf32>
    %c1_38 = arith.constant 1 : index
    %c0_39 = arith.constant 0 : index
    %c0_40 = arith.constant 0 : index
    %46 = vector.load %arg5[%c1_38, %c0_39, %c0_40] : memref<4x32x8xf32, #tpu.memory_space<vmem>>, vector<1x32x8xf32>
    %47 = vector.shape_cast %46 : vector<1x32x8xf32> to vector<32x8xf32>
    %cst_41 = arith.constant dense<0.000000e+00> : vector<8x8xf32>
    %48 = tpu.matmul %1, %47, %cst_41 {dimension_numbers = #tpu.dot_dimension_numbers<[1], [0], [0], [1], [0, 0, 1, 1], [], []>} : vector<8x32xf32>, vector<32x8xf32>, vector<8x8xf32> -> vector<8x8xf32>
    %49 = tpu.transpose %45, [1, 0] : vector<8x8xf32> -> vector<8x8xf32>
    %cst_42 = arith.constant dense<0.000000e+00> : vector<8x8xf32>
    %50 = tpu.matmul %42, %49, %cst_42 {dimension_numbers = #tpu.dot_dimension_numbers<[1], [0], [0], [1], [0, 0, 1, 1], [], []>} : vector<8x8xf32>, vector<8x8xf32>, vector<8x8xf32> -> vector<8x8xf32>
    %cst_43 = arith.constant 0.353553385 : f32
    %51 = vector.broadcast %cst_43 : f32 to vector<8x8xf32>
    %52 = arith.mulf %50, %51 : vector<8x8xf32>
    %cst_44 = arith.constant 5.000000e-01 : f32
    %53 = vector.broadcast %cst_44 : f32 to vector<8x8xf32>
    %54 = arith.cmpf ogt, %3, %53 : vector<8x8xf32>
    %cst_45 = arith.constant -1.000000e+09 : f32
    %55 = vector.broadcast %cst_45 : f32 to vector<8x8xf32>
    %56 = arith.select %54, %55, %52 : vector<8x8xi1>, vector<8x8xf32>
    %cst_46 = arith.constant dense<0xFF800000> : vector<8xf32>
    %57 = vector.multi_reduction <maximumf>, %56, %cst_46 [1] : vector<8x8xf32> to vector<8xf32>
    %58 = vector.shape_cast %57 : vector<8xf32> to vector<8x1xf32>
    %59 = vector.broadcast %58 : vector<8x1xf32> to vector<8x8xf32>
    %60 = arith.subf %56, %59 : vector<8x8xf32>
    %61 = math.exp %60 : vector<8x8xf32>
    %cst_47 = arith.constant dense<0.000000e+00> : vector<8xf32>
    %62 = vector.multi_reduction <add>, %61, %cst_47 [1] : vector<8x8xf32> to vector<8xf32>
    %63 = vector.shape_cast %62 : vector<8xf32> to vector<8x1xf32>
    %64 = tpu.reciprocal %63 {approx = true} : vector<8x1xf32> -> vector<8x1xf32>
    %65 = vector.broadcast %64 : vector<8x1xf32> to vector<8x8xf32>
    %66 = arith.mulf %61, %65 : vector<8x8xf32>
    %c1_48 = arith.constant 1 : index
    %c0_49 = arith.constant 0 : index
    %c0_50 = arith.constant 0 : index
    %67 = vector.load %arg14[%c1_48, %c0_49, %c0_50] : memref<4x8x8xf32, #tpu.memory_space<vmem>>, vector<1x8x8xf32>
    %68 = vector.shape_cast %67 : vector<1x8x8xf32> to vector<8x8xf32>
    %69 = vector.shape_cast %66 : vector<8x8xf32> to vector<1x8x8xf32>
    tpu.vector_store %arg14[%c1_48, %c0_49, %c0_50], %69 {strides = array<i32>} : memref<4x8x8xf32, #tpu.memory_space<vmem>>, vector<1x8x8xf32>,
    %cst_51 = arith.constant dense<0.000000e+00> : vector<8x8xf32>
    %70 = tpu.matmul %66, %48, %cst_51 {dimension_numbers = #tpu.dot_dimension_numbers<[1], [0], [0], [1], [0, 0, 1, 1], [], []>} : vector<8x8xf32>, vector<8x8xf32>, vector<8x8xf32> -> vector<8x8xf32>
    %c1_52 = arith.constant 1 : index
    %c0_53 = arith.constant 0 : index
    %c0_54 = arith.constant 0 : index
    %71 = vector.load %arg6[%c1_52, %c0_53, %c0_54] : memref<4x8x32xf32, #tpu.memory_space<vmem>>, vector<1x8x32xf32>
    %72 = vector.shape_cast %71 : vector<1x8x32xf32> to vector<8x32xf32>
    %cst_55 = arith.constant dense<0.000000e+00> : vector<8x32xf32>
    %73 = tpu.matmul %70, %72, %cst_55 {dimension_numbers = #tpu.dot_dimension_numbers<[1], [0], [0], [1], [0, 0, 1, 1], [], []>} : vector<8x8xf32>, vector<8x32xf32>, vector<8x32xf32> -> vector<8x32xf32>
    %74 = arith.addf %39, %73 : vector<8x32xf32>
    %c2 = arith.constant 2 : index
    %c0_56 = arith.constant 0 : index
    %c0_57 = arith.constant 0 : index
    %75 = vector.load %arg3[%c2, %c0_56, %c0_57] : memref<4x32x8xf32, #tpu.memory_space<vmem>>, vector<1x32x8xf32>
    %76 = vector.shape_cast %75 : vector<1x32x8xf32> to vector<32x8xf32>
    %cst_58 = arith.constant dense<0.000000e+00> : vector<8x8xf32>
    %77 = tpu.matmul %1, %76, %cst_58 {dimension_numbers = #tpu.dot_dimension_numbers<[1], [0], [0], [1], [0, 0, 1, 1], [], []>} : vector<8x32xf32>, vector<32x8xf32>, vector<8x8xf32> -> vector<8x8xf32>
    %c2_59 = arith.constant 2 : index
    %c0_60 = arith.constant 0 : index
    %c0_61 = arith.constant 0 : index
    %78 = vector.load %arg4[%c2_59, %c0_60, %c0_61] : memref<4x32x8xf32, #tpu.memory_space<vmem>>, vector<1x32x8xf32>
    %79 = vector.shape_cast %78 : vector<1x32x8xf32> to vector<32x8xf32>
    %cst_62 = arith.constant dense<0.000000e+00> : vector<8x8xf32>
    %80 = tpu.matmul %1, %79, %cst_62 {dimension_numbers = #tpu.dot_dimension_numbers<[1], [0], [0], [1], [0, 0, 1, 1], [], []>} : vector<8x32xf32>, vector<32x8xf32>, vector<8x8xf32> -> vector<8x8xf32>
    %c2_63 = arith.constant 2 : index
    %c0_64 = arith.constant 0 : index
    %c0_65 = arith.constant 0 : index
    %81 = vector.load %arg5[%c2_63, %c0_64, %c0_65] : memref<4x32x8xf32, #tpu.memory_space<vmem>>, vector<1x32x8xf32>
    %82 = vector.shape_cast %81 : vector<1x32x8xf32> to vector<32x8xf32>
    %cst_66 = arith.constant dense<0.000000e+00> : vector<8x8xf32>
    %83 = tpu.matmul %1, %82, %cst_66 {dimension_numbers = #tpu.dot_dimension_numbers<[1], [0], [0], [1], [0, 0, 1, 1], [], []>} : vector<8x32xf32>, vector<32x8xf32>, vector<8x8xf32> -> vector<8x8xf32>
    %84 = tpu.transpose %80, [1, 0] : vector<8x8xf32> -> vector<8x8xf32>
    %cst_67 = arith.constant dense<0.000000e+00> : vector<8x8xf32>
    %85 = tpu.matmul %77, %84, %cst_67 {dimension_numbers = #tpu.dot_dimension_numbers<[1], [0], [0], [1], [0, 0, 1, 1], [], []>} : vector<8x8xf32>, vector<8x8xf32>, vector<8x8xf32> -> vector<8x8xf32>
    %cst_68 = arith.constant 0.353553385 : f32
    %86 = vector.broadcast %cst_68 : f32 to vector<8x8xf32>
    %87 = arith.mulf %85, %86 : vector<8x8xf32>
    %cst_69 = arith.constant 5.000000e-01 : f32
    %88 = vector.broadcast %cst_69 : f32 to vector<8x8xf32>
    %89 = arith.cmpf ogt, %3, %88 : vector<8x8xf32>
    %cst_70 = arith.constant -1.000000e+09 : f32
    %90 = vector.broadcast %cst_70 : f32 to vector<8x8xf32>
    %91 = arith.select %89, %90, %87 : vector<8x8xi1>, vector<8x8xf32>
    %cst_71 = arith.constant dense<0xFF800000> : vector<8xf32>
    %92 = vector.multi_reduction <maximumf>, %91, %cst_71 [1] : vector<8x8xf32> to vector<8xf32>
    %93 = vector.shape_cast %92 : vector<8xf32> to vector<8x1xf32>
    %94 = vector.broadcast %93 : vector<8x1xf32> to vector<8x8xf32>
    %95 = arith.subf %91, %94 : vector<8x8xf32>
    %96 = math.exp %95 : vector<8x8xf32>
    %cst_72 = arith.constant dense<0.000000e+00> : vector<8xf32>
    %97 = vector.multi_reduction <add>, %96, %cst_72 [1] : vector<8x8xf32> to vector<8xf32>
    %98 = vector.shape_cast %97 : vector<8xf32> to vector<8x1xf32>
    %99 = tpu.reciprocal %98 {approx = true} : vector<8x1xf32> -> vector<8x1xf32>
    %100 = vector.broadcast %99 : vector<8x1xf32> to vector<8x8xf32>
    %101 = arith.mulf %96, %100 : vector<8x8xf32>
    %c2_73 = arith.constant 2 : index
    %c0_74 = arith.constant 0 : index
    %c0_75 = arith.constant 0 : index
    %102 = vector.load %arg14[%c2_73, %c0_74, %c0_75] : memref<4x8x8xf32, #tpu.memory_space<vmem>>, vector<1x8x8xf32>
    %103 = vector.shape_cast %102 : vector<1x8x8xf32> to vector<8x8xf32>
    %104 = vector.shape_cast %101 : vector<8x8xf32> to vector<1x8x8xf32>
    tpu.vector_store %arg14[%c2_73, %c0_74, %c0_75], %104 {strides = array<i32>} : memref<4x8x8xf32, #tpu.memory_space<vmem>>, vector<1x8x8xf32>,
    %cst_76 = arith.constant dense<0.000000e+00> : vector<8x8xf32>
    %105 = tpu.matmul %101, %83, %cst_76 {dimension_numbers = #tpu.dot_dimension_numbers<[1], [0], [0], [1], [0, 0, 1, 1], [], []>} : vector<8x8xf32>, vector<8x8xf32>, vector<8x8xf32> -> vector<8x8xf32>
    %c2_77 = arith.constant 2 : index
    %c0_78 = arith.constant 0 : index
    %c0_79 = arith.constant 0 : index
    %106 = vector.load %arg6[%c2_77, %c0_78, %c0_79] : memref<4x8x32xf32, #tpu.memory_space<vmem>>, vector<1x8x32xf32>
    %107 = vector.shape_cast %106 : vector<1x8x32xf32> to vector<8x32xf32>
    %cst_80 = arith.constant dense<0.000000e+00> : vector<8x32xf32>
    %108 = tpu.matmul %105, %107, %cst_80 {dimension_numbers = #tpu.dot_dimension_numbers<[1], [0], [0], [1], [0, 0, 1, 1], [], []>} : vector<8x8xf32>, vector<8x32xf32>, vector<8x32xf32> -> vector<8x32xf32>
    %109 = arith.addf %74, %108 : vector<8x32xf32>
    %c3 = arith.constant 3 : index
    %c0_81 = arith.constant 0 : index
    %c0_82 = arith.constant 0 : index
    %110 = vector.load %arg3[%c3, %c0_81, %c0_82] : memref<4x32x8xf32, #tpu.memory_space<vmem>>, vector<1x32x8xf32>
    %111 = vector.shape_cast %110 : vector<1x32x8xf32> to vector<32x8xf32>
    %cst_83 = arith.constant dense<0.000000e+00> : vector<8x8xf32>
    %112 = tpu.matmul %1, %111, %cst_83 {dimension_numbers = #tpu.dot_dimension_numbers<[1], [0], [0], [1], [0, 0, 1, 1], [], []>} : vector<8x32xf32>, vector<32x8xf32>, vector<8x8xf32> -> vector<8x8xf32>
    %c3_84 = arith.constant 3 : index
    %c0_85 = arith.constant 0 : index
    %c0_86 = arith.constant 0 : index
    %113 = vector.load %arg4[%c3_84, %c0_85, %c0_86] : memref<4x32x8xf32, #tpu.memory_space<vmem>>, vector<1x32x8xf32>
    %114 = vector.shape_cast %113 : vector<1x32x8xf32> to vector<32x8xf32>
    %cst_87 = arith.constant dense<0.000000e+00> : vector<8x8xf32>
    %115 = tpu.matmul %1, %114, %cst_87 {dimension_numbers = #tpu.dot_dimension_numbers<[1], [0], [0], [1], [0, 0, 1, 1], [], []>} : vector<8x32xf32>, vector<32x8xf32>, vector<8x8xf32> -> vector<8x8xf32>
    %c3_88 = arith.constant 3 : index
    %c0_89 = arith.constant 0 : index
    %c0_90 = arith.constant 0 : index
    %116 = vector.load %arg5[%c3_88, %c0_89, %c0_90] : memref<4x32x8xf32, #tpu.memory_space<vmem>>, vector<1x32x8xf32>
    %117 = vector.shape_cast %116 : vector<1x32x8xf32> to vector<32x8xf32>
    %cst_91 = arith.constant dense<0.000000e+00> : vector<8x8xf32>
    %118 = tpu.matmul %1, %117, %cst_91 {dimension_numbers = #tpu.dot_dimension_numbers<[1], [0], [0], [1], [0, 0, 1, 1], [], []>} : vector<8x32xf32>, vector<32x8xf32>, vector<8x8xf32> -> vector<8x8xf32>
    %119 = tpu.transpose %115, [1, 0] : vector<8x8xf32> -> vector<8x8xf32>
    %cst_92 = arith.constant dense<0.000000e+00> : vector<8x8xf32>
    %120 = tpu.matmul %112, %119, %cst_92 {dimension_numbers = #tpu.dot_dimension_numbers<[1], [0], [0], [1], [0, 0, 1, 1], [], []>} : vector<8x8xf32>, vector<8x8xf32>, vector<8x8xf32> -> vector<8x8xf32>
    %cst_93 = arith.constant 0.353553385 : f32
    %121 = vector.broadcast %cst_93 : f32 to vector<8x8xf32>
    %122 = arith.mulf %120, %121 : vector<8x8xf32>
    %cst_94 = arith.constant 5.000000e-01 : f32
    %123 = vector.broadcast %cst_94 : f32 to vector<8x8xf32>
    %124 = arith.cmpf ogt, %3, %123 : vector<8x8xf32>
    %cst_95 = arith.constant -1.000000e+09 : f32
    %125 = vector.broadcast %cst_95 : f32 to vector<8x8xf32>
    %126 = arith.select %124, %125, %122 : vector<8x8xi1>, vector<8x8xf32>
    %cst_96 = arith.constant dense<0xFF800000> : vector<8xf32>
    %127 = vector.multi_reduction <maximumf>, %126, %cst_96 [1] : vector<8x8xf32> to vector<8xf32>
    %128 = vector.shape_cast %127 : vector<8xf32> to vector<8x1xf32>
    %129 = vector.broadcast %128 : vector<8x1xf32> to vector<8x8xf32>
    %130 = arith.subf %126, %129 : vector<8x8xf32>
    %131 = math.exp %130 : vector<8x8xf32>
    %cst_97 = arith.constant dense<0.000000e+00> : vector<8xf32>
    %132 = vector.multi_reduction <add>, %131, %cst_97 [1] : vector<8x8xf32> to vector<8xf32>
    %133 = vector.shape_cast %132 : vector<8xf32> to vector<8x1xf32>
    %134 = tpu.reciprocal %133 {approx = true} : vector<8x1xf32> -> vector<8x1xf32>
    %135 = vector.broadcast %134 : vector<8x1xf32> to vector<8x8xf32>
    %136 = arith.mulf %131, %135 : vector<8x8xf32>
    %c3_98 = arith.constant 3 : index
    %c0_99 = arith.constant 0 : index
    %c0_100 = arith.constant 0 : index
    %137 = vector.load %arg14[%c3_98, %c0_99, %c0_100] : memref<4x8x8xf32, #tpu.memory_space<vmem>>, vector<1x8x8xf32>
    %138 = vector.shape_cast %137 : vector<1x8x8xf32> to vector<8x8xf32>
    %139 = vector.shape_cast %136 : vector<8x8xf32> to vector<1x8x8xf32>
    tpu.vector_store %arg14[%c3_98, %c0_99, %c0_100], %139 {strides = array<i32>} : memref<4x8x8xf32, #tpu.memory_space<vmem>>, vector<1x8x8xf32>,
    %cst_101 = arith.constant dense<0.000000e+00> : vector<8x8xf32>
    %140 = tpu.matmul %136, %118, %cst_101 {dimension_numbers = #tpu.dot_dimension_numbers<[1], [0], [0], [1], [0, 0, 1, 1], [], []>} : vector<8x8xf32>, vector<8x8xf32>, vector<8x8xf32> -> vector<8x8xf32>
    %c3_102 = arith.constant 3 : index
    %c0_103 = arith.constant 0 : index
    %c0_104 = arith.constant 0 : index
    %141 = vector.load %arg6[%c3_102, %c0_103, %c0_104] : memref<4x8x32xf32, #tpu.memory_space<vmem>>, vector<1x8x32xf32>
    %142 = vector.shape_cast %141 : vector<1x8x32xf32> to vector<8x32xf32>
    %cst_105 = arith.constant dense<0.000000e+00> : vector<8x32xf32>
    %143 = tpu.matmul %140, %142, %cst_105 {dimension_numbers = #tpu.dot_dimension_numbers<[1], [0], [0], [1], [0, 0, 1, 1], [], []>} : vector<8x8xf32>, vector<8x32xf32>, vector<8x32xf32> -> vector<8x32xf32>
    %144 = arith.addf %109, %143 : vector<8x32xf32>
    %145 = arith.addf %144, %1 : vector<8x32xf32>
    %c0_106 = arith.constant 0 : index
    %c0_107 = arith.constant 0 : index
    %146 = vector.load %arg7[%c0_106, %c0_107] : memref<1x32xf32, #tpu.memory_space<vmem>>, vector<1x32xf32>
    %c0_108 = arith.constant 0 : index
    %c0_109 = arith.constant 0 : index
    %147 = vector.load %arg8[%c0_108, %c0_109] : memref<1x32xf32, #tpu.memory_space<vmem>>, vector<1x32xf32>
    %cst_110 = arith.constant dense<0.000000e+00> : vector<8xf32>
    %148 = vector.multi_reduction <add>, %145, %cst_110 [1] : vector<8x32xf32> to vector<8xf32>
    %149 = vector.shape_cast %148 : vector<8xf32> to vector<8x1xf32>
    %cst_111 = arith.constant 3.200000e+01 : f32
    %150 = vector.broadcast %cst_111 : f32 to vector<8x1xf32>
    %151 = arith.divf %149, %150 : vector<8x1xf32>
    %152 = vector.broadcast %151 : vector<8x1xf32> to vector<8x32xf32>
    %153 = arith.subf %145, %152 : vector<8x32xf32>
    %154 = vector.broadcast %151 : vector<8x1xf32> to vector<8x32xf32>
    %155 = arith.subf %145, %154 : vector<8x32xf32>
    %156 = arith.mulf %153, %155 : vector<8x32xf32>
    %cst_112 = arith.constant dense<0.000000e+00> : vector<8xf32>
    %157 = vector.multi_reduction <add>, %156, %cst_112 [1] : vector<8x32xf32> to vector<8xf32>
    %158 = vector.shape_cast %157 : vector<8xf32> to vector<8x1xf32>
    %cst_113 = arith.constant 3.200000e+01 : f32
    %159 = vector.broadcast %cst_113 : f32 to vector<8x1xf32>
    %160 = arith.divf %158, %159 : vector<8x1xf32>
    %161 = vector.broadcast %151 : vector<8x1xf32> to vector<8x32xf32>
    %162 = arith.subf %145, %161 : vector<8x32xf32>
    %cst_114 = arith.constant 9.99999974E-6 : f32
    %163 = vector.broadcast %cst_114 : f32 to vector<8x1xf32>
    %164 = arith.addf %160, %163 : vector<8x1xf32>
    %165 = math.rsqrt %164 : vector<8x1xf32>
    %166 = vector.broadcast %165 : vector<8x1xf32> to vector<8x32xf32>
    %167 = arith.mulf %162, %166 : vector<8x32xf32>
    %168 = vector.broadcast %146 : vector<1x32xf32> to vector<8x32xf32>
    %169 = arith.mulf %167, %168 : vector<8x32xf32>
    %170 = vector.broadcast %147 : vector<1x32xf32> to vector<8x32xf32>
    %171 = arith.addf %169, %170 : vector<8x32xf32>
    %c0_115 = arith.constant 0 : index
    %c0_116 = arith.constant 0 : index
    %172 = vector.load %arg9[%c0_115, %c0_116] : memref<32x64xf32, #tpu.memory_space<vmem>>, vector<32x64xf32>
    %cst_117 = arith.constant dense<0.000000e+00> : vector<8x64xf32>
    %173 = tpu.matmul %171, %172, %cst_117 {dimension_numbers = #tpu.dot_dimension_numbers<[1], [0], [0], [1], [0, 0, 1, 1], [], []>} : vector<8x32xf32>, vector<32x64xf32>, vector<8x64xf32> -> vector<8x64xf32>
    %cst_118 = arith.constant 0.000000e+00 : f32
    %174 = vector.broadcast %cst_118 : f32 to vector<8x64xf32>
    %175 = arith.maximumf %173, %174 : vector<8x64xf32>
    %c0_119 = arith.constant 0 : index
    %c0_120 = arith.constant 0 : index
    %176 = vector.load %arg10[%c0_119, %c0_120] : memref<64x32xf32, #tpu.memory_space<vmem>>, vector<64x32xf32>
    %cst_121 = arith.constant dense<0.000000e+00> : vector<8x32xf32>
    %177 = tpu.matmul %175, %176, %cst_121 {dimension_numbers = #tpu.dot_dimension_numbers<[1], [0], [0], [1], [0, 0, 1, 1], [], []>} : vector<8x64xf32>, vector<64x32xf32>, vector<8x32xf32> -> vector<8x32xf32>
    %178 = arith.addf %177, %171 : vector<8x32xf32>
    %c0_122 = arith.constant 0 : index
    %c0_123 = arith.constant 0 : index
    %179 = vector.load %arg11[%c0_122, %c0_123] : memref<1x32xf32, #tpu.memory_space<vmem>>, vector<1x32xf32>
    %c0_124 = arith.constant 0 : index
    %c0_125 = arith.constant 0 : index
    %180 = vector.load %arg12[%c0_124, %c0_125] : memref<1x32xf32, #tpu.memory_space<vmem>>, vector<1x32xf32>
    %cst_126 = arith.constant dense<0.000000e+00> : vector<8xf32>
    %181 = vector.multi_reduction <add>, %178, %cst_126 [1] : vector<8x32xf32> to vector<8xf32>
    %182 = vector.shape_cast %181 : vector<8xf32> to vector<8x1xf32>
    %cst_127 = arith.constant 3.200000e+01 : f32
    %183 = vector.broadcast %cst_127 : f32 to vector<8x1xf32>
    %184 = arith.divf %182, %183 : vector<8x1xf32>
    %185 = vector.broadcast %184 : vector<8x1xf32> to vector<8x32xf32>
    %186 = arith.subf %178, %185 : vector<8x32xf32>
    %187 = vector.broadcast %184 : vector<8x1xf32> to vector<8x32xf32>
    %188 = arith.subf %178, %187 : vector<8x32xf32>
    %189 = arith.mulf %186, %188 : vector<8x32xf32>
    %cst_128 = arith.constant dense<0.000000e+00> : vector<8xf32>
    %190 = vector.multi_reduction <add>, %189, %cst_128 [1] : vector<8x32xf32> to vector<8xf32>
    %191 = vector.shape_cast %190 : vector<8xf32> to vector<8x1xf32>
    %cst_129 = arith.constant 3.200000e+01 : f32
    %192 = vector.broadcast %cst_129 : f32 to vector<8x1xf32>
    %193 = arith.divf %191, %192 : vector<8x1xf32>
    %194 = vector.broadcast %184 : vector<8x1xf32> to vector<8x32xf32>
    %195 = arith.subf %178, %194 : vector<8x32xf32>
    %cst_130 = arith.constant 9.99999974E-6 : f32
    %196 = vector.broadcast %cst_130 : f32 to vector<8x1xf32>
    %197 = arith.addf %193, %196 : vector<8x1xf32>
    %198 = math.rsqrt %197 : vector<8x1xf32>
    %199 = vector.broadcast %198 : vector<8x1xf32> to vector<8x32xf32>
    %200 = arith.mulf %195, %199 : vector<8x32xf32>
    %201 = vector.broadcast %179 : vector<1x32xf32> to vector<8x32xf32>
    %202 = arith.mulf %200, %201 : vector<8x32xf32>
    %203 = vector.broadcast %180 : vector<1x32xf32> to vector<8x32xf32>
    %204 = arith.addf %202, %203 : vector<8x32xf32>
    %c0_131 = arith.constant 0 : index
    %c0_132 = arith.constant 0 : index
    %c0_133 = arith.constant 0 : index
    %205 = vector.load %arg13[%c0_131, %c0_132, %c0_133] : memref<1x8x32xf32, #tpu.memory_space<vmem>>, vector<1x8x32xf32>
    %206 = vector.shape_cast %205 : vector<1x8x32xf32> to vector<8x32xf32>
    %207 = vector.shape_cast %204 : vector<8x32xf32> to vector<1x8x32xf32>
    tpu.vector_store %arg13[%c0_131, %c0_132, %c0_133], %207 {strides = array<i32>} : memref<1x8x32xf32, #tpu.memory_space<vmem>>, vector<1x8x32xf32>,
    return
  }
  func.func @transform_0(%arg0: i32) -> (i32, i32, i32) {
    %c0_i32 = arith.constant 0 : i32
    %c0_i32_0 = arith.constant 0 : i32
    %c0_i32_1 = arith.constant 0 : i32
    return %arg0, %c0_i32, %c0_i32_0 : i32, i32, i32
  }
  func.func @transform_1(%arg0: i32) -> (i32, i32, i32) {
    %c0_i32 = arith.constant 0 : i32
    %c0_i32_0 = arith.constant 0 : i32
    %c0_i32_1 = arith.constant 0 : i32
    return %arg0, %c0_i32, %c0_i32_0 : i32, i32, i32
  }
  func.func @transform_2(%arg0: i32) -> (i32, i32, i32) {
    %c0_i32 = arith.constant 0 : i32
    %c0_i32_0 = arith.constant 0 : i32
    %c0_i32_1 = arith.constant 0 : i32
    %c0_i32_2 = arith.constant 0 : i32
    return %c0_i32, %c0_i32_0, %c0_i32_1 : i32, i32, i32
  }
  func.func @transform_3(%arg0: i32) -> (i32, i32, i32) {
    %c0_i32 = arith.constant 0 : i32
    %c0_i32_0 = arith.constant 0 : i32
    %c0_i32_1 = arith.constant 0 : i32
    %c0_i32_2 = arith.constant 0 : i32
    return %c0_i32, %c0_i32_0, %c0_i32_1 : i32, i32, i32
  }
  func.func @transform_4(%arg0: i32) -> (i32, i32, i32) {
    %c0_i32 = arith.constant 0 : i32
    %c0_i32_0 = arith.constant 0 : i32
    %c0_i32_1 = arith.constant 0 : i32
    %c0_i32_2 = arith.constant 0 : i32
    return %c0_i32, %c0_i32_0, %c0_i32_1 : i32, i32, i32
  }
  func.func @transform_5(%arg0: i32) -> (i32, i32, i32) {
    %c0_i32 = arith.constant 0 : i32
    %c0_i32_0 = arith.constant 0 : i32
    %c0_i32_1 = arith.constant 0 : i32
    %c0_i32_2 = arith.constant 0 : i32
    return %c0_i32, %c0_i32_0, %c0_i32_1 : i32, i32, i32
  }
  func.func @transform_6(%arg0: i32) -> (i32, i32) {
    %c0_i32 = arith.constant 0 : i32
    %c0_i32_0 = arith.constant 0 : i32
    %c0_i32_1 = arith.constant 0 : i32
    return %c0_i32, %c0_i32_0 : i32, i32
  }
  func.func @transform_7(%arg0: i32) -> (i32, i32) {
    %c0_i32 = arith.constant 0 : i32
    %c0_i32_0 = arith.constant 0 : i32
    %c0_i32_1 = arith.constant 0 : i32
    return %c0_i32, %c0_i32_0 : i32, i32
  }
  func.func @transform_8(%arg0: i32) -> (i32, i32) {
    %c0_i32 = arith.constant 0 : i32
    %c0_i32_0 = arith.constant 0 : i32
    %c0_i32_1 = arith.constant 0 : i32
    return %c0_i32, %c0_i32_0 : i32, i32
  }
  func.func @transform_9(%arg0: i32) -> (i32, i32) {
    %c0_i32 = arith.constant 0 : i32
    %c0_i32_0 = arith.constant 0 : i32
    %c0_i32_1 = arith.constant 0 : i32
    return %c0_i32, %c0_i32_0 : i32, i32
  }
  func.func @transform_10(%arg0: i32) -> (i32, i32) {
    %c0_i32 = arith.constant 0 : i32
    %c0_i32_0 = arith.constant 0 : i32
    %c0_i32_1 = arith.constant 0 : i32
    return %c0_i32, %c0_i32_0 : i32, i32
  }
  func.func @transform_11(%arg0: i32) -> (i32, i32) {
    %c0_i32 = arith.constant 0 : i32
    %c0_i32_0 = arith.constant 0 : i32
    %c0_i32_1 = arith.constant 0 : i32
    return %c0_i32, %c0_i32_0 : i32, i32
  }
  func.func @transform_12(%arg0: i32) -> (i32, i32, i32) {
    %c0_i32 = arith.constant 0 : i32
    %c0_i32_0 = arith.constant 0 : i32
    %c0_i32_1 = arith.constant 0 : i32
    return %arg0, %c0_i32, %c0_i32_0 : i32, i32, i32
  }
  func.func @transform_13(%arg0: i32) -> (i32, i32, i32) {
    %c0_i32 = arith.constant 0 : i32
    %c0_i32_0 = arith.constant 0 : i32
    %c0_i32_1 = arith.constant 0 : i32
    return %arg0, %c0_i32, %c0_i32_0 : i32, i32, i32
  }
}

module attributes {stable_mosaic.version = 11 : i64} {
  func.func @_dec_layer_kernel(%arg0: i32, %arg1: memref<1x8x32xf32, #tpu.memory_space<vmem>>, %arg2: memref<1x8x32xf32, #tpu.memory_space<vmem>>, %arg3: memref<1x8x8xf32, #tpu.memory_space<vmem>>, %arg4: memref<1x8x8xf32, #tpu.memory_space<vmem>>, %arg5: memref<4x32x8xf32, #tpu.memory_space<vmem>>, %arg6: memref<4x32x8xf32, #tpu.memory_space<vmem>>, %arg7: memref<4x32x8xf32, #tpu.memory_space<vmem>>, %arg8: memref<4x8x32xf32, #tpu.memory_space<vmem>>, %arg9: memref<1x32xf32, #tpu.memory_space<vmem>>, %arg10: memref<1x32xf32, #tpu.memory_space<vmem>>, %arg11: memref<4x32x8xf32, #tpu.memory_space<vmem>>, %arg12: memref<4x32x8xf32, #tpu.memory_space<vmem>>, %arg13: memref<4x32x8xf32, #tpu.memory_space<vmem>>, %arg14: memref<4x8x32xf32, #tpu.memory_space<vmem>>, %arg15: memref<1x32xf32, #tpu.memory_space<vmem>>, %arg16: memref<1x32xf32, #tpu.memory_space<vmem>>, %arg17: memref<32x64xf32, #tpu.memory_space<vmem>>, %arg18: memref<64x32xf32, #tpu.memory_space<vmem>>, %arg19: memref<1x32xf32, #tpu.memory_space<vmem>>, %arg20: memref<1x32xf32, #tpu.memory_space<vmem>>, %arg21: memref<1x8x32xf32, #tpu.memory_space<vmem>>, %arg22: memref<4x8x8xf32, #tpu.memory_space<vmem>>, %arg23: memref<4x8x8xf32, #tpu.memory_space<vmem>>) attributes {dimension_semantics = [#tpu.dimension_semantics<parallel>], iteration_bounds = array<i64: 2>, scalar_prefetch = 0 : i64, scratch_operands = 0 : i64, tpu.core_type = #tpu.core_type<tc>, window_params = [{transform_indices = @transform_0, window_bounds = array<i64: 1, 8, 32>}, {transform_indices = @transform_1, window_bounds = array<i64: 1, 8, 32>}, {transform_indices = @transform_2, window_bounds = array<i64: 1, 8, 8>}, {transform_indices = @transform_3, window_bounds = array<i64: 1, 8, 8>}, {pipeline_mode = #tpu.pipeline_mode<synchronous>, transform_indices = @transform_4, window_bounds = array<i64: 4, 32, 8>}, {pipeline_mode = #tpu.pipeline_mode<synchronous>, transform_indices = @transform_5, window_bounds = array<i64: 4, 32, 8>}, {pipeline_mode = #tpu.pipeline_mode<synchronous>, transform_indices = @transform_6, window_bounds = array<i64: 4, 32, 8>}, {pipeline_mode = #tpu.pipeline_mode<synchronous>, transform_indices = @transform_7, window_bounds = array<i64: 4, 8, 32>}, {pipeline_mode = #tpu.pipeline_mode<synchronous>, transform_indices = @transform_8, window_bounds = array<i64: 1, 32>}, {pipeline_mode = #tpu.pipeline_mode<synchronous>, transform_indices = @transform_9, window_bounds = array<i64: 1, 32>}, {pipeline_mode = #tpu.pipeline_mode<synchronous>, transform_indices = @transform_10, window_bounds = array<i64: 4, 32, 8>}, {pipeline_mode = #tpu.pipeline_mode<synchronous>, transform_indices = @transform_11, window_bounds = array<i64: 4, 32, 8>}, {pipeline_mode = #tpu.pipeline_mode<synchronous>, transform_indices = @transform_12, window_bounds = array<i64: 4, 32, 8>}, {pipeline_mode = #tpu.pipeline_mode<synchronous>, transform_indices = @transform_13, window_bounds = array<i64: 4, 8, 32>}, {pipeline_mode = #tpu.pipeline_mode<synchronous>, transform_indices = @transform_14, window_bounds = array<i64: 1, 32>}, {pipeline_mode = #tpu.pipeline_mode<synchronous>, transform_indices = @transform_15, window_bounds = array<i64: 1, 32>}, {pipeline_mode = #tpu.pipeline_mode<synchronous>, transform_indices = @transform_16, window_bounds = array<i64: 32, 64>}, {pipeline_mode = #tpu.pipeline_mode<synchronous>, transform_indices = @transform_17, window_bounds = array<i64: 64, 32>}, {pipeline_mode = #tpu.pipeline_mode<synchronous>, transform_indices = @transform_18, window_bounds = array<i64: 1, 32>}, {pipeline_mode = #tpu.pipeline_mode<synchronous>, transform_indices = @transform_19, window_bounds = array<i64: 1, 32>}, {transform_indices = @transform_20, window_bounds = array<i64: 1, 8, 32>}, {transform_indices = @transform_21, window_bounds = array<i64: 4, 8, 8>}, {transform_indices = @transform_22, window_bounds = array<i64: 4, 8, 8>}]} {
    %c0 = arith.constant 0 : index
    %c0_0 = arith.constant 0 : index
    %c0_1 = arith.constant 0 : index
    %0 = vector.load %arg1[%c0, %c0_0, %c0_1] : memref<1x8x32xf32, #tpu.memory_space<vmem>>, vector<1x8x32xf32>
    %1 = vector.shape_cast %0 : vector<1x8x32xf32> to vector<8x32xf32>
    %c0_2 = arith.constant 0 : index
    %c0_3 = arith.constant 0 : index
    %c0_4 = arith.constant 0 : index
    %2 = vector.load %arg2[%c0_2, %c0_3, %c0_4] : memref<1x8x32xf32, #tpu.memory_space<vmem>>, vector<1x8x32xf32>
    %3 = vector.shape_cast %2 : vector<1x8x32xf32> to vector<8x32xf32>
    %c0_5 = arith.constant 0 : index
    %c0_6 = arith.constant 0 : index
    %c0_7 = arith.constant 0 : index
    %4 = vector.load %arg3[%c0_5, %c0_6, %c0_7] : memref<1x8x8xf32, #tpu.memory_space<vmem>>, vector<1x8x8xf32>
    %5 = vector.shape_cast %4 : vector<1x8x8xf32> to vector<8x8xf32>
    %cst = arith.constant 0.000000e+00 : f32
    %6 = vector.broadcast %cst : f32 to vector<8x32xf32>
    %c0_8 = arith.constant 0 : index
    %c0_9 = arith.constant 0 : index
    %c0_10 = arith.constant 0 : index
    %7 = vector.load %arg5[%c0_8, %c0_9, %c0_10] : memref<4x32x8xf32, #tpu.memory_space<vmem>>, vector<1x32x8xf32>
    %8 = vector.shape_cast %7 : vector<1x32x8xf32> to vector<32x8xf32>
    %cst_11 = arith.constant dense<0.000000e+00> : vector<8x8xf32>
    %9 = tpu.matmul %1, %8, %cst_11 {dimension_numbers = #tpu.dot_dimension_numbers<[1], [0], [0], [1], [0, 0, 1, 1], [], []>} : vector<8x32xf32>, vector<32x8xf32>, vector<8x8xf32> -> vector<8x8xf32>
    %c0_12 = arith.constant 0 : index
    %c0_13 = arith.constant 0 : index
    %c0_14 = arith.constant 0 : index
    %10 = vector.load %arg6[%c0_12, %c0_13, %c0_14] : memref<4x32x8xf32, #tpu.memory_space<vmem>>, vector<1x32x8xf32>
    %11 = vector.shape_cast %10 : vector<1x32x8xf32> to vector<32x8xf32>
    %cst_15 = arith.constant dense<0.000000e+00> : vector<8x8xf32>
    %12 = tpu.matmul %1, %11, %cst_15 {dimension_numbers = #tpu.dot_dimension_numbers<[1], [0], [0], [1], [0, 0, 1, 1], [], []>} : vector<8x32xf32>, vector<32x8xf32>, vector<8x8xf32> -> vector<8x8xf32>
    %c0_16 = arith.constant 0 : index
    %c0_17 = arith.constant 0 : index
    %c0_18 = arith.constant 0 : index
    %13 = vector.load %arg7[%c0_16, %c0_17, %c0_18] : memref<4x32x8xf32, #tpu.memory_space<vmem>>, vector<1x32x8xf32>
    %14 = vector.shape_cast %13 : vector<1x32x8xf32> to vector<32x8xf32>
    %cst_19 = arith.constant dense<0.000000e+00> : vector<8x8xf32>
    %15 = tpu.matmul %1, %14, %cst_19 {dimension_numbers = #tpu.dot_dimension_numbers<[1], [0], [0], [1], [0, 0, 1, 1], [], []>} : vector<8x32xf32>, vector<32x8xf32>, vector<8x8xf32> -> vector<8x8xf32>
    %16 = tpu.transpose %12, [1, 0] : vector<8x8xf32> -> vector<8x8xf32>
    %cst_20 = arith.constant dense<0.000000e+00> : vector<8x8xf32>
    %17 = tpu.matmul %9, %16, %cst_20 {dimension_numbers = #tpu.dot_dimension_numbers<[1], [0], [0], [1], [0, 0, 1, 1], [], []>} : vector<8x8xf32>, vector<8x8xf32>, vector<8x8xf32> -> vector<8x8xf32>
    %cst_21 = arith.constant 0.353553385 : f32
    %18 = vector.broadcast %cst_21 : f32 to vector<8x8xf32>
    %19 = arith.mulf %17, %18 : vector<8x8xf32>
    %cst_22 = arith.constant 5.000000e-01 : f32
    %20 = vector.broadcast %cst_22 : f32 to vector<8x8xf32>
    %21 = arith.cmpf ogt, %5, %20 : vector<8x8xf32>
    %cst_23 = arith.constant -1.000000e+09 : f32
    %22 = vector.broadcast %cst_23 : f32 to vector<8x8xf32>
    %23 = arith.select %21, %22, %19 : vector<8x8xi1>, vector<8x8xf32>
    %cst_24 = arith.constant dense<0xFF800000> : vector<8xf32>
    %24 = vector.multi_reduction <maximumf>, %23, %cst_24 [1] : vector<8x8xf32> to vector<8xf32>
    %25 = vector.shape_cast %24 : vector<8xf32> to vector<8x1xf32>
    %26 = vector.broadcast %25 : vector<8x1xf32> to vector<8x8xf32>
    %27 = arith.subf %23, %26 : vector<8x8xf32>
    %28 = math.exp %27 : vector<8x8xf32>
    %cst_25 = arith.constant dense<0.000000e+00> : vector<8xf32>
    %29 = vector.multi_reduction <add>, %28, %cst_25 [1] : vector<8x8xf32> to vector<8xf32>
    %30 = vector.shape_cast %29 : vector<8xf32> to vector<8x1xf32>
    %31 = tpu.reciprocal %30 {approx = true} : vector<8x1xf32> -> vector<8x1xf32>
    %32 = vector.broadcast %31 : vector<8x1xf32> to vector<8x8xf32>
    %33 = arith.mulf %28, %32 : vector<8x8xf32>
    %c0_26 = arith.constant 0 : index
    %c0_27 = arith.constant 0 : index
    %c0_28 = arith.constant 0 : index
    %34 = vector.load %arg22[%c0_26, %c0_27, %c0_28] : memref<4x8x8xf32, #tpu.memory_space<vmem>>, vector<1x8x8xf32>
    %35 = vector.shape_cast %34 : vector<1x8x8xf32> to vector<8x8xf32>
    %36 = vector.shape_cast %33 : vector<8x8xf32> to vector<1x8x8xf32>
    tpu.vector_store %arg22[%c0_26, %c0_27, %c0_28], %36 {strides = array<i32>} : memref<4x8x8xf32, #tpu.memory_space<vmem>>, vector<1x8x8xf32>,
    %cst_29 = arith.constant dense<0.000000e+00> : vector<8x8xf32>
    %37 = tpu.matmul %33, %15, %cst_29 {dimension_numbers = #tpu.dot_dimension_numbers<[1], [0], [0], [1], [0, 0, 1, 1], [], []>} : vector<8x8xf32>, vector<8x8xf32>, vector<8x8xf32> -> vector<8x8xf32>
    %c0_30 = arith.constant 0 : index
    %c0_31 = arith.constant 0 : index
    %c0_32 = arith.constant 0 : index
    %38 = vector.load %arg8[%c0_30, %c0_31, %c0_32] : memref<4x8x32xf32, #tpu.memory_space<vmem>>, vector<1x8x32xf32>
    %39 = vector.shape_cast %38 : vector<1x8x32xf32> to vector<8x32xf32>
    %cst_33 = arith.constant dense<0.000000e+00> : vector<8x32xf32>
    %40 = tpu.matmul %37, %39, %cst_33 {dimension_numbers = #tpu.dot_dimension_numbers<[1], [0], [0], [1], [0, 0, 1, 1], [], []>} : vector<8x8xf32>, vector<8x32xf32>, vector<8x32xf32> -> vector<8x32xf32>
    %41 = arith.addf %6, %40 : vector<8x32xf32>
    %c1 = arith.constant 1 : index
    %c0_34 = arith.constant 0 : index
    %c0_35 = arith.constant 0 : index
    %42 = vector.load %arg5[%c1, %c0_34, %c0_35] : memref<4x32x8xf32, #tpu.memory_space<vmem>>, vector<1x32x8xf32>
    %43 = vector.shape_cast %42 : vector<1x32x8xf32> to vector<32x8xf32>
    %cst_36 = arith.constant dense<0.000000e+00> : vector<8x8xf32>
    %44 = tpu.matmul %1, %43, %cst_36 {dimension_numbers = #tpu.dot_dimension_numbers<[1], [0], [0], [1], [0, 0, 1, 1], [], []>} : vector<8x32xf32>, vector<32x8xf32>, vector<8x8xf32> -> vector<8x8xf32>
    %c1_37 = arith.constant 1 : index
    %c0_38 = arith.constant 0 : index
    %c0_39 = arith.constant 0 : index
    %45 = vector.load %arg6[%c1_37, %c0_38, %c0_39] : memref<4x32x8xf32, #tpu.memory_space<vmem>>, vector<1x32x8xf32>
    %46 = vector.shape_cast %45 : vector<1x32x8xf32> to vector<32x8xf32>
    %cst_40 = arith.constant dense<0.000000e+00> : vector<8x8xf32>
    %47 = tpu.matmul %1, %46, %cst_40 {dimension_numbers = #tpu.dot_dimension_numbers<[1], [0], [0], [1], [0, 0, 1, 1], [], []>} : vector<8x32xf32>, vector<32x8xf32>, vector<8x8xf32> -> vector<8x8xf32>
    %c1_41 = arith.constant 1 : index
    %c0_42 = arith.constant 0 : index
    %c0_43 = arith.constant 0 : index
    %48 = vector.load %arg7[%c1_41, %c0_42, %c0_43] : memref<4x32x8xf32, #tpu.memory_space<vmem>>, vector<1x32x8xf32>
    %49 = vector.shape_cast %48 : vector<1x32x8xf32> to vector<32x8xf32>
    %cst_44 = arith.constant dense<0.000000e+00> : vector<8x8xf32>
    %50 = tpu.matmul %1, %49, %cst_44 {dimension_numbers = #tpu.dot_dimension_numbers<[1], [0], [0], [1], [0, 0, 1, 1], [], []>} : vector<8x32xf32>, vector<32x8xf32>, vector<8x8xf32> -> vector<8x8xf32>
    %51 = tpu.transpose %47, [1, 0] : vector<8x8xf32> -> vector<8x8xf32>
    %cst_45 = arith.constant dense<0.000000e+00> : vector<8x8xf32>
    %52 = tpu.matmul %44, %51, %cst_45 {dimension_numbers = #tpu.dot_dimension_numbers<[1], [0], [0], [1], [0, 0, 1, 1], [], []>} : vector<8x8xf32>, vector<8x8xf32>, vector<8x8xf32> -> vector<8x8xf32>
    %cst_46 = arith.constant 0.353553385 : f32
    %53 = vector.broadcast %cst_46 : f32 to vector<8x8xf32>
    %54 = arith.mulf %52, %53 : vector<8x8xf32>
    %cst_47 = arith.constant 5.000000e-01 : f32
    %55 = vector.broadcast %cst_47 : f32 to vector<8x8xf32>
    %56 = arith.cmpf ogt, %5, %55 : vector<8x8xf32>
    %cst_48 = arith.constant -1.000000e+09 : f32
    %57 = vector.broadcast %cst_48 : f32 to vector<8x8xf32>
    %58 = arith.select %56, %57, %54 : vector<8x8xi1>, vector<8x8xf32>
    %cst_49 = arith.constant dense<0xFF800000> : vector<8xf32>
    %59 = vector.multi_reduction <maximumf>, %58, %cst_49 [1] : vector<8x8xf32> to vector<8xf32>
    %60 = vector.shape_cast %59 : vector<8xf32> to vector<8x1xf32>
    %61 = vector.broadcast %60 : vector<8x1xf32> to vector<8x8xf32>
    %62 = arith.subf %58, %61 : vector<8x8xf32>
    %63 = math.exp %62 : vector<8x8xf32>
    %cst_50 = arith.constant dense<0.000000e+00> : vector<8xf32>
    %64 = vector.multi_reduction <add>, %63, %cst_50 [1] : vector<8x8xf32> to vector<8xf32>
    %65 = vector.shape_cast %64 : vector<8xf32> to vector<8x1xf32>
    %66 = tpu.reciprocal %65 {approx = true} : vector<8x1xf32> -> vector<8x1xf32>
    %67 = vector.broadcast %66 : vector<8x1xf32> to vector<8x8xf32>
    %68 = arith.mulf %63, %67 : vector<8x8xf32>
    %c1_51 = arith.constant 1 : index
    %c0_52 = arith.constant 0 : index
    %c0_53 = arith.constant 0 : index
    %69 = vector.load %arg22[%c1_51, %c0_52, %c0_53] : memref<4x8x8xf32, #tpu.memory_space<vmem>>, vector<1x8x8xf32>
    %70 = vector.shape_cast %69 : vector<1x8x8xf32> to vector<8x8xf32>
    %71 = vector.shape_cast %68 : vector<8x8xf32> to vector<1x8x8xf32>
    tpu.vector_store %arg22[%c1_51, %c0_52, %c0_53], %71 {strides = array<i32>} : memref<4x8x8xf32, #tpu.memory_space<vmem>>, vector<1x8x8xf32>,
    %cst_54 = arith.constant dense<0.000000e+00> : vector<8x8xf32>
    %72 = tpu.matmul %68, %50, %cst_54 {dimension_numbers = #tpu.dot_dimension_numbers<[1], [0], [0], [1], [0, 0, 1, 1], [], []>} : vector<8x8xf32>, vector<8x8xf32>, vector<8x8xf32> -> vector<8x8xf32>
    %c1_55 = arith.constant 1 : index
    %c0_56 = arith.constant 0 : index
    %c0_57 = arith.constant 0 : index
    %73 = vector.load %arg8[%c1_55, %c0_56, %c0_57] : memref<4x8x32xf32, #tpu.memory_space<vmem>>, vector<1x8x32xf32>
    %74 = vector.shape_cast %73 : vector<1x8x32xf32> to vector<8x32xf32>
    %cst_58 = arith.constant dense<0.000000e+00> : vector<8x32xf32>
    %75 = tpu.matmul %72, %74, %cst_58 {dimension_numbers = #tpu.dot_dimension_numbers<[1], [0], [0], [1], [0, 0, 1, 1], [], []>} : vector<8x8xf32>, vector<8x32xf32>, vector<8x32xf32> -> vector<8x32xf32>
    %76 = arith.addf %41, %75 : vector<8x32xf32>
    %c2 = arith.constant 2 : index
    %c0_59 = arith.constant 0 : index
    %c0_60 = arith.constant 0 : index
    %77 = vector.load %arg5[%c2, %c0_59, %c0_60] : memref<4x32x8xf32, #tpu.memory_space<vmem>>, vector<1x32x8xf32>
    %78 = vector.shape_cast %77 : vector<1x32x8xf32> to vector<32x8xf32>
    %cst_61 = arith.constant dense<0.000000e+00> : vector<8x8xf32>
    %79 = tpu.matmul %1, %78, %cst_61 {dimension_numbers = #tpu.dot_dimension_numbers<[1], [0], [0], [1], [0, 0, 1, 1], [], []>} : vector<8x32xf32>, vector<32x8xf32>, vector<8x8xf32> -> vector<8x8xf32>
    %c2_62 = arith.constant 2 : index
    %c0_63 = arith.constant 0 : index
    %c0_64 = arith.constant 0 : index
    %80 = vector.load %arg6[%c2_62, %c0_63, %c0_64] : memref<4x32x8xf32, #tpu.memory_space<vmem>>, vector<1x32x8xf32>
    %81 = vector.shape_cast %80 : vector<1x32x8xf32> to vector<32x8xf32>
    %cst_65 = arith.constant dense<0.000000e+00> : vector<8x8xf32>
    %82 = tpu.matmul %1, %81, %cst_65 {dimension_numbers = #tpu.dot_dimension_numbers<[1], [0], [0], [1], [0, 0, 1, 1], [], []>} : vector<8x32xf32>, vector<32x8xf32>, vector<8x8xf32> -> vector<8x8xf32>
    %c2_66 = arith.constant 2 : index
    %c0_67 = arith.constant 0 : index
    %c0_68 = arith.constant 0 : index
    %83 = vector.load %arg7[%c2_66, %c0_67, %c0_68] : memref<4x32x8xf32, #tpu.memory_space<vmem>>, vector<1x32x8xf32>
    %84 = vector.shape_cast %83 : vector<1x32x8xf32> to vector<32x8xf32>
    %cst_69 = arith.constant dense<0.000000e+00> : vector<8x8xf32>
    %85 = tpu.matmul %1, %84, %cst_69 {dimension_numbers = #tpu.dot_dimension_numbers<[1], [0], [0], [1], [0, 0, 1, 1], [], []>} : vector<8x32xf32>, vector<32x8xf32>, vector<8x8xf32> -> vector<8x8xf32>
    %86 = tpu.transpose %82, [1, 0] : vector<8x8xf32> -> vector<8x8xf32>
    %cst_70 = arith.constant dense<0.000000e+00> : vector<8x8xf32>
    %87 = tpu.matmul %79, %86, %cst_70 {dimension_numbers = #tpu.dot_dimension_numbers<[1], [0], [0], [1], [0, 0, 1, 1], [], []>} : vector<8x8xf32>, vector<8x8xf32>, vector<8x8xf32> -> vector<8x8xf32>
    %cst_71 = arith.constant 0.353553385 : f32
    %88 = vector.broadcast %cst_71 : f32 to vector<8x8xf32>
    %89 = arith.mulf %87, %88 : vector<8x8xf32>
    %cst_72 = arith.constant 5.000000e-01 : f32
    %90 = vector.broadcast %cst_72 : f32 to vector<8x8xf32>
    %91 = arith.cmpf ogt, %5, %90 : vector<8x8xf32>
    %cst_73 = arith.constant -1.000000e+09 : f32
    %92 = vector.broadcast %cst_73 : f32 to vector<8x8xf32>
    %93 = arith.select %91, %92, %89 : vector<8x8xi1>, vector<8x8xf32>
    %cst_74 = arith.constant dense<0xFF800000> : vector<8xf32>
    %94 = vector.multi_reduction <maximumf>, %93, %cst_74 [1] : vector<8x8xf32> to vector<8xf32>
    %95 = vector.shape_cast %94 : vector<8xf32> to vector<8x1xf32>
    %96 = vector.broadcast %95 : vector<8x1xf32> to vector<8x8xf32>
    %97 = arith.subf %93, %96 : vector<8x8xf32>
    %98 = math.exp %97 : vector<8x8xf32>
    %cst_75 = arith.constant dense<0.000000e+00> : vector<8xf32>
    %99 = vector.multi_reduction <add>, %98, %cst_75 [1] : vector<8x8xf32> to vector<8xf32>
    %100 = vector.shape_cast %99 : vector<8xf32> to vector<8x1xf32>
    %101 = tpu.reciprocal %100 {approx = true} : vector<8x1xf32> -> vector<8x1xf32>
    %102 = vector.broadcast %101 : vector<8x1xf32> to vector<8x8xf32>
    %103 = arith.mulf %98, %102 : vector<8x8xf32>
    %c2_76 = arith.constant 2 : index
    %c0_77 = arith.constant 0 : index
    %c0_78 = arith.constant 0 : index
    %104 = vector.load %arg22[%c2_76, %c0_77, %c0_78] : memref<4x8x8xf32, #tpu.memory_space<vmem>>, vector<1x8x8xf32>
    %105 = vector.shape_cast %104 : vector<1x8x8xf32> to vector<8x8xf32>
    %106 = vector.shape_cast %103 : vector<8x8xf32> to vector<1x8x8xf32>
    tpu.vector_store %arg22[%c2_76, %c0_77, %c0_78], %106 {strides = array<i32>} : memref<4x8x8xf32, #tpu.memory_space<vmem>>, vector<1x8x8xf32>,
    %cst_79 = arith.constant dense<0.000000e+00> : vector<8x8xf32>
    %107 = tpu.matmul %103, %85, %cst_79 {dimension_numbers = #tpu.dot_dimension_numbers<[1], [0], [0], [1], [0, 0, 1, 1], [], []>} : vector<8x8xf32>, vector<8x8xf32>, vector<8x8xf32> -> vector<8x8xf32>
    %c2_80 = arith.constant 2 : index
    %c0_81 = arith.constant 0 : index
    %c0_82 = arith.constant 0 : index
    %108 = vector.load %arg8[%c2_80, %c0_81, %c0_82] : memref<4x8x32xf32, #tpu.memory_space<vmem>>, vector<1x8x32xf32>
    %109 = vector.shape_cast %108 : vector<1x8x32xf32> to vector<8x32xf32>
    %cst_83 = arith.constant dense<0.000000e+00> : vector<8x32xf32>
    %110 = tpu.matmul %107, %109, %cst_83 {dimension_numbers = #tpu.dot_dimension_numbers<[1], [0], [0], [1], [0, 0, 1, 1], [], []>} : vector<8x8xf32>, vector<8x32xf32>, vector<8x32xf32> -> vector<8x32xf32>
    %111 = arith.addf %76, %110 : vector<8x32xf32>
    %c3 = arith.constant 3 : index
    %c0_84 = arith.constant 0 : index
    %c0_85 = arith.constant 0 : index
    %112 = vector.load %arg5[%c3, %c0_84, %c0_85] : memref<4x32x8xf32, #tpu.memory_space<vmem>>, vector<1x32x8xf32>
    %113 = vector.shape_cast %112 : vector<1x32x8xf32> to vector<32x8xf32>
    %cst_86 = arith.constant dense<0.000000e+00> : vector<8x8xf32>
    %114 = tpu.matmul %1, %113, %cst_86 {dimension_numbers = #tpu.dot_dimension_numbers<[1], [0], [0], [1], [0, 0, 1, 1], [], []>} : vector<8x32xf32>, vector<32x8xf32>, vector<8x8xf32> -> vector<8x8xf32>
    %c3_87 = arith.constant 3 : index
    %c0_88 = arith.constant 0 : index
    %c0_89 = arith.constant 0 : index
    %115 = vector.load %arg6[%c3_87, %c0_88, %c0_89] : memref<4x32x8xf32, #tpu.memory_space<vmem>>, vector<1x32x8xf32>
    %116 = vector.shape_cast %115 : vector<1x32x8xf32> to vector<32x8xf32>
    %cst_90 = arith.constant dense<0.000000e+00> : vector<8x8xf32>
    %117 = tpu.matmul %1, %116, %cst_90 {dimension_numbers = #tpu.dot_dimension_numbers<[1], [0], [0], [1], [0, 0, 1, 1], [], []>} : vector<8x32xf32>, vector<32x8xf32>, vector<8x8xf32> -> vector<8x8xf32>
    %c3_91 = arith.constant 3 : index
    %c0_92 = arith.constant 0 : index
    %c0_93 = arith.constant 0 : index
    %118 = vector.load %arg7[%c3_91, %c0_92, %c0_93] : memref<4x32x8xf32, #tpu.memory_space<vmem>>, vector<1x32x8xf32>
    %119 = vector.shape_cast %118 : vector<1x32x8xf32> to vector<32x8xf32>
    %cst_94 = arith.constant dense<0.000000e+00> : vector<8x8xf32>
    %120 = tpu.matmul %1, %119, %cst_94 {dimension_numbers = #tpu.dot_dimension_numbers<[1], [0], [0], [1], [0, 0, 1, 1], [], []>} : vector<8x32xf32>, vector<32x8xf32>, vector<8x8xf32> -> vector<8x8xf32>
    %121 = tpu.transpose %117, [1, 0] : vector<8x8xf32> -> vector<8x8xf32>
    %cst_95 = arith.constant dense<0.000000e+00> : vector<8x8xf32>
    %122 = tpu.matmul %114, %121, %cst_95 {dimension_numbers = #tpu.dot_dimension_numbers<[1], [0], [0], [1], [0, 0, 1, 1], [], []>} : vector<8x8xf32>, vector<8x8xf32>, vector<8x8xf32> -> vector<8x8xf32>
    %cst_96 = arith.constant 0.353553385 : f32
    %123 = vector.broadcast %cst_96 : f32 to vector<8x8xf32>
    %124 = arith.mulf %122, %123 : vector<8x8xf32>
    %cst_97 = arith.constant 5.000000e-01 : f32
    %125 = vector.broadcast %cst_97 : f32 to vector<8x8xf32>
    %126 = arith.cmpf ogt, %5, %125 : vector<8x8xf32>
    %cst_98 = arith.constant -1.000000e+09 : f32
    %127 = vector.broadcast %cst_98 : f32 to vector<8x8xf32>
    %128 = arith.select %126, %127, %124 : vector<8x8xi1>, vector<8x8xf32>
    %cst_99 = arith.constant dense<0xFF800000> : vector<8xf32>
    %129 = vector.multi_reduction <maximumf>, %128, %cst_99 [1] : vector<8x8xf32> to vector<8xf32>
    %130 = vector.shape_cast %129 : vector<8xf32> to vector<8x1xf32>
    %131 = vector.broadcast %130 : vector<8x1xf32> to vector<8x8xf32>
    %132 = arith.subf %128, %131 : vector<8x8xf32>
    %133 = math.exp %132 : vector<8x8xf32>
    %cst_100 = arith.constant dense<0.000000e+00> : vector<8xf32>
    %134 = vector.multi_reduction <add>, %133, %cst_100 [1] : vector<8x8xf32> to vector<8xf32>
    %135 = vector.shape_cast %134 : vector<8xf32> to vector<8x1xf32>
    %136 = tpu.reciprocal %135 {approx = true} : vector<8x1xf32> -> vector<8x1xf32>
    %137 = vector.broadcast %136 : vector<8x1xf32> to vector<8x8xf32>
    %138 = arith.mulf %133, %137 : vector<8x8xf32>
    %c3_101 = arith.constant 3 : index
    %c0_102 = arith.constant 0 : index
    %c0_103 = arith.constant 0 : index
    %139 = vector.load %arg22[%c3_101, %c0_102, %c0_103] : memref<4x8x8xf32, #tpu.memory_space<vmem>>, vector<1x8x8xf32>
    %140 = vector.shape_cast %139 : vector<1x8x8xf32> to vector<8x8xf32>
    %141 = vector.shape_cast %138 : vector<8x8xf32> to vector<1x8x8xf32>
    tpu.vector_store %arg22[%c3_101, %c0_102, %c0_103], %141 {strides = array<i32>} : memref<4x8x8xf32, #tpu.memory_space<vmem>>, vector<1x8x8xf32>,
    %cst_104 = arith.constant dense<0.000000e+00> : vector<8x8xf32>
    %142 = tpu.matmul %138, %120, %cst_104 {dimension_numbers = #tpu.dot_dimension_numbers<[1], [0], [0], [1], [0, 0, 1, 1], [], []>} : vector<8x8xf32>, vector<8x8xf32>, vector<8x8xf32> -> vector<8x8xf32>
    %c3_105 = arith.constant 3 : index
    %c0_106 = arith.constant 0 : index
    %c0_107 = arith.constant 0 : index
    %143 = vector.load %arg8[%c3_105, %c0_106, %c0_107] : memref<4x8x32xf32, #tpu.memory_space<vmem>>, vector<1x8x32xf32>
    %144 = vector.shape_cast %143 : vector<1x8x32xf32> to vector<8x32xf32>
    %cst_108 = arith.constant dense<0.000000e+00> : vector<8x32xf32>
    %145 = tpu.matmul %142, %144, %cst_108 {dimension_numbers = #tpu.dot_dimension_numbers<[1], [0], [0], [1], [0, 0, 1, 1], [], []>} : vector<8x8xf32>, vector<8x32xf32>, vector<8x32xf32> -> vector<8x32xf32>
    %146 = arith.addf %111, %145 : vector<8x32xf32>
    %147 = arith.addf %146, %1 : vector<8x32xf32>
    %c0_109 = arith.constant 0 : index
    %c0_110 = arith.constant 0 : index
    %148 = vector.load %arg9[%c0_109, %c0_110] : memref<1x32xf32, #tpu.memory_space<vmem>>, vector<1x32xf32>
    %c0_111 = arith.constant 0 : index
    %c0_112 = arith.constant 0 : index
    %149 = vector.load %arg10[%c0_111, %c0_112] : memref<1x32xf32, #tpu.memory_space<vmem>>, vector<1x32xf32>
    %cst_113 = arith.constant dense<0.000000e+00> : vector<8xf32>
    %150 = vector.multi_reduction <add>, %147, %cst_113 [1] : vector<8x32xf32> to vector<8xf32>
    %151 = vector.shape_cast %150 : vector<8xf32> to vector<8x1xf32>
    %cst_114 = arith.constant 3.200000e+01 : f32
    %152 = vector.broadcast %cst_114 : f32 to vector<8x1xf32>
    %153 = arith.divf %151, %152 : vector<8x1xf32>
    %154 = vector.broadcast %153 : vector<8x1xf32> to vector<8x32xf32>
    %155 = arith.subf %147, %154 : vector<8x32xf32>
    %156 = vector.broadcast %153 : vector<8x1xf32> to vector<8x32xf32>
    %157 = arith.subf %147, %156 : vector<8x32xf32>
    %158 = arith.mulf %155, %157 : vector<8x32xf32>
    %cst_115 = arith.constant dense<0.000000e+00> : vector<8xf32>
    %159 = vector.multi_reduction <add>, %158, %cst_115 [1] : vector<8x32xf32> to vector<8xf32>
    %160 = vector.shape_cast %159 : vector<8xf32> to vector<8x1xf32>
    %cst_116 = arith.constant 3.200000e+01 : f32
    %161 = vector.broadcast %cst_116 : f32 to vector<8x1xf32>
    %162 = arith.divf %160, %161 : vector<8x1xf32>
    %163 = vector.broadcast %153 : vector<8x1xf32> to vector<8x32xf32>
    %164 = arith.subf %147, %163 : vector<8x32xf32>
    %cst_117 = arith.constant 9.99999974E-6 : f32
    %165 = vector.broadcast %cst_117 : f32 to vector<8x1xf32>
    %166 = arith.addf %162, %165 : vector<8x1xf32>
    %167 = math.rsqrt %166 : vector<8x1xf32>
    %168 = vector.broadcast %167 : vector<8x1xf32> to vector<8x32xf32>
    %169 = arith.mulf %164, %168 : vector<8x32xf32>
    %170 = vector.broadcast %148 : vector<1x32xf32> to vector<8x32xf32>
    %171 = arith.mulf %169, %170 : vector<8x32xf32>
    %172 = vector.broadcast %149 : vector<1x32xf32> to vector<8x32xf32>
    %173 = arith.addf %171, %172 : vector<8x32xf32>
    %c0_118 = arith.constant 0 : index
    %c0_119 = arith.constant 0 : index
    %c0_120 = arith.constant 0 : index
    %174 = vector.load %arg4[%c0_118, %c0_119, %c0_120] : memref<1x8x8xf32, #tpu.memory_space<vmem>>, vector<1x8x8xf32>
    %175 = vector.shape_cast %174 : vector<1x8x8xf32> to vector<8x8xf32>
    %cst_121 = arith.constant 0.000000e+00 : f32
    %176 = vector.broadcast %cst_121 : f32 to vector<8x32xf32>
    %c0_122 = arith.constant 0 : index
    %c0_123 = arith.constant 0 : index
    %c0_124 = arith.constant 0 : index
    %177 = vector.load %arg11[%c0_122, %c0_123, %c0_124] : memref<4x32x8xf32, #tpu.memory_space<vmem>>, vector<1x32x8xf32>
    %178 = vector.shape_cast %177 : vector<1x32x8xf32> to vector<32x8xf32>
    %cst_125 = arith.constant dense<0.000000e+00> : vector<8x8xf32>
    %179 = tpu.matmul %173, %178, %cst_125 {dimension_numbers = #tpu.dot_dimension_numbers<[1], [0], [0], [1], [0, 0, 1, 1], [], []>} : vector<8x32xf32>, vector<32x8xf32>, vector<8x8xf32> -> vector<8x8xf32>
    %c0_126 = arith.constant 0 : index
    %c0_127 = arith.constant 0 : index
    %c0_128 = arith.constant 0 : index
    %180 = vector.load %arg12[%c0_126, %c0_127, %c0_128] : memref<4x32x8xf32, #tpu.memory_space<vmem>>, vector<1x32x8xf32>
    %181 = vector.shape_cast %180 : vector<1x32x8xf32> to vector<32x8xf32>
    %cst_129 = arith.constant dense<0.000000e+00> : vector<8x8xf32>
    %182 = tpu.matmul %3, %181, %cst_129 {dimension_numbers = #tpu.dot_dimension_numbers<[1], [0], [0], [1], [0, 0, 1, 1], [], []>} : vector<8x32xf32>, vector<32x8xf32>, vector<8x8xf32> -> vector<8x8xf32>
    %c0_130 = arith.constant 0 : index
    %c0_131 = arith.constant 0 : index
    %c0_132 = arith.constant 0 : index
    %183 = vector.load %arg13[%c0_130, %c0_131, %c0_132] : memref<4x32x8xf32, #tpu.memory_space<vmem>>, vector<1x32x8xf32>
    %184 = vector.shape_cast %183 : vector<1x32x8xf32> to vector<32x8xf32>
    %cst_133 = arith.constant dense<0.000000e+00> : vector<8x8xf32>
    %185 = tpu.matmul %3, %184, %cst_133 {dimension_numbers = #tpu.dot_dimension_numbers<[1], [0], [0], [1], [0, 0, 1, 1], [], []>} : vector<8x32xf32>, vector<32x8xf32>, vector<8x8xf32> -> vector<8x8xf32>
    %186 = tpu.transpose %182, [1, 0] : vector<8x8xf32> -> vector<8x8xf32>
    %cst_134 = arith.constant dense<0.000000e+00> : vector<8x8xf32>
    %187 = tpu.matmul %179, %186, %cst_134 {dimension_numbers = #tpu.dot_dimension_numbers<[1], [0], [0], [1], [0, 0, 1, 1], [], []>} : vector<8x8xf32>, vector<8x8xf32>, vector<8x8xf32> -> vector<8x8xf32>
    %cst_135 = arith.constant 0.353553385 : f32
    %188 = vector.broadcast %cst_135 : f32 to vector<8x8xf32>
    %189 = arith.mulf %187, %188 : vector<8x8xf32>
    %cst_136 = arith.constant 5.000000e-01 : f32
    %190 = vector.broadcast %cst_136 : f32 to vector<8x8xf32>
    %191 = arith.cmpf ogt, %175, %190 : vector<8x8xf32>
    %cst_137 = arith.constant -1.000000e+09 : f32
    %192 = vector.broadcast %cst_137 : f32 to vector<8x8xf32>
    %193 = arith.select %191, %192, %189 : vector<8x8xi1>, vector<8x8xf32>
    %cst_138 = arith.constant dense<0xFF800000> : vector<8xf32>
    %194 = vector.multi_reduction <maximumf>, %193, %cst_138 [1] : vector<8x8xf32> to vector<8xf32>
    %195 = vector.shape_cast %194 : vector<8xf32> to vector<8x1xf32>
    %196 = vector.broadcast %195 : vector<8x1xf32> to vector<8x8xf32>
    %197 = arith.subf %193, %196 : vector<8x8xf32>
    %198 = math.exp %197 : vector<8x8xf32>
    %cst_139 = arith.constant dense<0.000000e+00> : vector<8xf32>
    %199 = vector.multi_reduction <add>, %198, %cst_139 [1] : vector<8x8xf32> to vector<8xf32>
    %200 = vector.shape_cast %199 : vector<8xf32> to vector<8x1xf32>
    %201 = tpu.reciprocal %200 {approx = true} : vector<8x1xf32> -> vector<8x1xf32>
    %202 = vector.broadcast %201 : vector<8x1xf32> to vector<8x8xf32>
    %203 = arith.mulf %198, %202 : vector<8x8xf32>
    %c0_140 = arith.constant 0 : index
    %c0_141 = arith.constant 0 : index
    %c0_142 = arith.constant 0 : index
    %204 = vector.load %arg23[%c0_140, %c0_141, %c0_142] : memref<4x8x8xf32, #tpu.memory_space<vmem>>, vector<1x8x8xf32>
    %205 = vector.shape_cast %204 : vector<1x8x8xf32> to vector<8x8xf32>
    %206 = vector.shape_cast %203 : vector<8x8xf32> to vector<1x8x8xf32>
    tpu.vector_store %arg23[%c0_140, %c0_141, %c0_142], %206 {strides = array<i32>} : memref<4x8x8xf32, #tpu.memory_space<vmem>>, vector<1x8x8xf32>,
    %cst_143 = arith.constant dense<0.000000e+00> : vector<8x8xf32>
    %207 = tpu.matmul %203, %185, %cst_143 {dimension_numbers = #tpu.dot_dimension_numbers<[1], [0], [0], [1], [0, 0, 1, 1], [], []>} : vector<8x8xf32>, vector<8x8xf32>, vector<8x8xf32> -> vector<8x8xf32>
    %c0_144 = arith.constant 0 : index
    %c0_145 = arith.constant 0 : index
    %c0_146 = arith.constant 0 : index
    %208 = vector.load %arg14[%c0_144, %c0_145, %c0_146] : memref<4x8x32xf32, #tpu.memory_space<vmem>>, vector<1x8x32xf32>
    %209 = vector.shape_cast %208 : vector<1x8x32xf32> to vector<8x32xf32>
    %cst_147 = arith.constant dense<0.000000e+00> : vector<8x32xf32>
    %210 = tpu.matmul %207, %209, %cst_147 {dimension_numbers = #tpu.dot_dimension_numbers<[1], [0], [0], [1], [0, 0, 1, 1], [], []>} : vector<8x8xf32>, vector<8x32xf32>, vector<8x32xf32> -> vector<8x32xf32>
    %211 = arith.addf %176, %210 : vector<8x32xf32>
    %c1_148 = arith.constant 1 : index
    %c0_149 = arith.constant 0 : index
    %c0_150 = arith.constant 0 : index
    %212 = vector.load %arg11[%c1_148, %c0_149, %c0_150] : memref<4x32x8xf32, #tpu.memory_space<vmem>>, vector<1x32x8xf32>
    %213 = vector.shape_cast %212 : vector<1x32x8xf32> to vector<32x8xf32>
    %cst_151 = arith.constant dense<0.000000e+00> : vector<8x8xf32>
    %214 = tpu.matmul %173, %213, %cst_151 {dimension_numbers = #tpu.dot_dimension_numbers<[1], [0], [0], [1], [0, 0, 1, 1], [], []>} : vector<8x32xf32>, vector<32x8xf32>, vector<8x8xf32> -> vector<8x8xf32>
    %c1_152 = arith.constant 1 : index
    %c0_153 = arith.constant 0 : index
    %c0_154 = arith.constant 0 : index
    %215 = vector.load %arg12[%c1_152, %c0_153, %c0_154] : memref<4x32x8xf32, #tpu.memory_space<vmem>>, vector<1x32x8xf32>
    %216 = vector.shape_cast %215 : vector<1x32x8xf32> to vector<32x8xf32>
    %cst_155 = arith.constant dense<0.000000e+00> : vector<8x8xf32>
    %217 = tpu.matmul %3, %216, %cst_155 {dimension_numbers = #tpu.dot_dimension_numbers<[1], [0], [0], [1], [0, 0, 1, 1], [], []>} : vector<8x32xf32>, vector<32x8xf32>, vector<8x8xf32> -> vector<8x8xf32>
    %c1_156 = arith.constant 1 : index
    %c0_157 = arith.constant 0 : index
    %c0_158 = arith.constant 0 : index
    %218 = vector.load %arg13[%c1_156, %c0_157, %c0_158] : memref<4x32x8xf32, #tpu.memory_space<vmem>>, vector<1x32x8xf32>
    %219 = vector.shape_cast %218 : vector<1x32x8xf32> to vector<32x8xf32>
    %cst_159 = arith.constant dense<0.000000e+00> : vector<8x8xf32>
    %220 = tpu.matmul %3, %219, %cst_159 {dimension_numbers = #tpu.dot_dimension_numbers<[1], [0], [0], [1], [0, 0, 1, 1], [], []>} : vector<8x32xf32>, vector<32x8xf32>, vector<8x8xf32> -> vector<8x8xf32>
    %221 = tpu.transpose %217, [1, 0] : vector<8x8xf32> -> vector<8x8xf32>
    %cst_160 = arith.constant dense<0.000000e+00> : vector<8x8xf32>
    %222 = tpu.matmul %214, %221, %cst_160 {dimension_numbers = #tpu.dot_dimension_numbers<[1], [0], [0], [1], [0, 0, 1, 1], [], []>} : vector<8x8xf32>, vector<8x8xf32>, vector<8x8xf32> -> vector<8x8xf32>
    %cst_161 = arith.constant 0.353553385 : f32
    %223 = vector.broadcast %cst_161 : f32 to vector<8x8xf32>
    %224 = arith.mulf %222, %223 : vector<8x8xf32>
    %cst_162 = arith.constant 5.000000e-01 : f32
    %225 = vector.broadcast %cst_162 : f32 to vector<8x8xf32>
    %226 = arith.cmpf ogt, %175, %225 : vector<8x8xf32>
    %cst_163 = arith.constant -1.000000e+09 : f32
    %227 = vector.broadcast %cst_163 : f32 to vector<8x8xf32>
    %228 = arith.select %226, %227, %224 : vector<8x8xi1>, vector<8x8xf32>
    %cst_164 = arith.constant dense<0xFF800000> : vector<8xf32>
    %229 = vector.multi_reduction <maximumf>, %228, %cst_164 [1] : vector<8x8xf32> to vector<8xf32>
    %230 = vector.shape_cast %229 : vector<8xf32> to vector<8x1xf32>
    %231 = vector.broadcast %230 : vector<8x1xf32> to vector<8x8xf32>
    %232 = arith.subf %228, %231 : vector<8x8xf32>
    %233 = math.exp %232 : vector<8x8xf32>
    %cst_165 = arith.constant dense<0.000000e+00> : vector<8xf32>
    %234 = vector.multi_reduction <add>, %233, %cst_165 [1] : vector<8x8xf32> to vector<8xf32>
    %235 = vector.shape_cast %234 : vector<8xf32> to vector<8x1xf32>
    %236 = tpu.reciprocal %235 {approx = true} : vector<8x1xf32> -> vector<8x1xf32>
    %237 = vector.broadcast %236 : vector<8x1xf32> to vector<8x8xf32>
    %238 = arith.mulf %233, %237 : vector<8x8xf32>
    %c1_166 = arith.constant 1 : index
    %c0_167 = arith.constant 0 : index
    %c0_168 = arith.constant 0 : index
    %239 = vector.load %arg23[%c1_166, %c0_167, %c0_168] : memref<4x8x8xf32, #tpu.memory_space<vmem>>, vector<1x8x8xf32>
    %240 = vector.shape_cast %239 : vector<1x8x8xf32> to vector<8x8xf32>
    %241 = vector.shape_cast %238 : vector<8x8xf32> to vector<1x8x8xf32>
    tpu.vector_store %arg23[%c1_166, %c0_167, %c0_168], %241 {strides = array<i32>} : memref<4x8x8xf32, #tpu.memory_space<vmem>>, vector<1x8x8xf32>,
    %cst_169 = arith.constant dense<0.000000e+00> : vector<8x8xf32>
    %242 = tpu.matmul %238, %220, %cst_169 {dimension_numbers = #tpu.dot_dimension_numbers<[1], [0], [0], [1], [0, 0, 1, 1], [], []>} : vector<8x8xf32>, vector<8x8xf32>, vector<8x8xf32> -> vector<8x8xf32>
    %c1_170 = arith.constant 1 : index
    %c0_171 = arith.constant 0 : index
    %c0_172 = arith.constant 0 : index
    %243 = vector.load %arg14[%c1_170, %c0_171, %c0_172] : memref<4x8x32xf32, #tpu.memory_space<vmem>>, vector<1x8x32xf32>
    %244 = vector.shape_cast %243 : vector<1x8x32xf32> to vector<8x32xf32>
    %cst_173 = arith.constant dense<0.000000e+00> : vector<8x32xf32>
    %245 = tpu.matmul %242, %244, %cst_173 {dimension_numbers = #tpu.dot_dimension_numbers<[1], [0], [0], [1], [0, 0, 1, 1], [], []>} : vector<8x8xf32>, vector<8x32xf32>, vector<8x32xf32> -> vector<8x32xf32>
    %246 = arith.addf %211, %245 : vector<8x32xf32>
    %c2_174 = arith.constant 2 : index
    %c0_175 = arith.constant 0 : index
    %c0_176 = arith.constant 0 : index
    %247 = vector.load %arg11[%c2_174, %c0_175, %c0_176] : memref<4x32x8xf32, #tpu.memory_space<vmem>>, vector<1x32x8xf32>
    %248 = vector.shape_cast %247 : vector<1x32x8xf32> to vector<32x8xf32>
    %cst_177 = arith.constant dense<0.000000e+00> : vector<8x8xf32>
    %249 = tpu.matmul %173, %248, %cst_177 {dimension_numbers = #tpu.dot_dimension_numbers<[1], [0], [0], [1], [0, 0, 1, 1], [], []>} : vector<8x32xf32>, vector<32x8xf32>, vector<8x8xf32> -> vector<8x8xf32>
    %c2_178 = arith.constant 2 : index
    %c0_179 = arith.constant 0 : index
    %c0_180 = arith.constant 0 : index
    %250 = vector.load %arg12[%c2_178, %c0_179, %c0_180] : memref<4x32x8xf32, #tpu.memory_space<vmem>>, vector<1x32x8xf32>
    %251 = vector.shape_cast %250 : vector<1x32x8xf32> to vector<32x8xf32>
    %cst_181 = arith.constant dense<0.000000e+00> : vector<8x8xf32>
    %252 = tpu.matmul %3, %251, %cst_181 {dimension_numbers = #tpu.dot_dimension_numbers<[1], [0], [0], [1], [0, 0, 1, 1], [], []>} : vector<8x32xf32>, vector<32x8xf32>, vector<8x8xf32> -> vector<8x8xf32>
    %c2_182 = arith.constant 2 : index
    %c0_183 = arith.constant 0 : index
    %c0_184 = arith.constant 0 : index
    %253 = vector.load %arg13[%c2_182, %c0_183, %c0_184] : memref<4x32x8xf32, #tpu.memory_space<vmem>>, vector<1x32x8xf32>
    %254 = vector.shape_cast %253 : vector<1x32x8xf32> to vector<32x8xf32>
    %cst_185 = arith.constant dense<0.000000e+00> : vector<8x8xf32>
    %255 = tpu.matmul %3, %254, %cst_185 {dimension_numbers = #tpu.dot_dimension_numbers<[1], [0], [0], [1], [0, 0, 1, 1], [], []>} : vector<8x32xf32>, vector<32x8xf32>, vector<8x8xf32> -> vector<8x8xf32>
    %256 = tpu.transpose %252, [1, 0] : vector<8x8xf32> -> vector<8x8xf32>
    %cst_186 = arith.constant dense<0.000000e+00> : vector<8x8xf32>
    %257 = tpu.matmul %249, %256, %cst_186 {dimension_numbers = #tpu.dot_dimension_numbers<[1], [0], [0], [1], [0, 0, 1, 1], [], []>} : vector<8x8xf32>, vector<8x8xf32>, vector<8x8xf32> -> vector<8x8xf32>
    %cst_187 = arith.constant 0.353553385 : f32
    %258 = vector.broadcast %cst_187 : f32 to vector<8x8xf32>
    %259 = arith.mulf %257, %258 : vector<8x8xf32>
    %cst_188 = arith.constant 5.000000e-01 : f32
    %260 = vector.broadcast %cst_188 : f32 to vector<8x8xf32>
    %261 = arith.cmpf ogt, %175, %260 : vector<8x8xf32>
    %cst_189 = arith.constant -1.000000e+09 : f32
    %262 = vector.broadcast %cst_189 : f32 to vector<8x8xf32>
    %263 = arith.select %261, %262, %259 : vector<8x8xi1>, vector<8x8xf32>
    %cst_190 = arith.constant dense<0xFF800000> : vector<8xf32>
    %264 = vector.multi_reduction <maximumf>, %263, %cst_190 [1] : vector<8x8xf32> to vector<8xf32>
    %265 = vector.shape_cast %264 : vector<8xf32> to vector<8x1xf32>
    %266 = vector.broadcast %265 : vector<8x1xf32> to vector<8x8xf32>
    %267 = arith.subf %263, %266 : vector<8x8xf32>
    %268 = math.exp %267 : vector<8x8xf32>
    %cst_191 = arith.constant dense<0.000000e+00> : vector<8xf32>
    %269 = vector.multi_reduction <add>, %268, %cst_191 [1] : vector<8x8xf32> to vector<8xf32>
    %270 = vector.shape_cast %269 : vector<8xf32> to vector<8x1xf32>
    %271 = tpu.reciprocal %270 {approx = true} : vector<8x1xf32> -> vector<8x1xf32>
    %272 = vector.broadcast %271 : vector<8x1xf32> to vector<8x8xf32>
    %273 = arith.mulf %268, %272 : vector<8x8xf32>
    %c2_192 = arith.constant 2 : index
    %c0_193 = arith.constant 0 : index
    %c0_194 = arith.constant 0 : index
    %274 = vector.load %arg23[%c2_192, %c0_193, %c0_194] : memref<4x8x8xf32, #tpu.memory_space<vmem>>, vector<1x8x8xf32>
    %275 = vector.shape_cast %274 : vector<1x8x8xf32> to vector<8x8xf32>
    %276 = vector.shape_cast %273 : vector<8x8xf32> to vector<1x8x8xf32>
    tpu.vector_store %arg23[%c2_192, %c0_193, %c0_194], %276 {strides = array<i32>} : memref<4x8x8xf32, #tpu.memory_space<vmem>>, vector<1x8x8xf32>,
    %cst_195 = arith.constant dense<0.000000e+00> : vector<8x8xf32>
    %277 = tpu.matmul %273, %255, %cst_195 {dimension_numbers = #tpu.dot_dimension_numbers<[1], [0], [0], [1], [0, 0, 1, 1], [], []>} : vector<8x8xf32>, vector<8x8xf32>, vector<8x8xf32> -> vector<8x8xf32>
    %c2_196 = arith.constant 2 : index
    %c0_197 = arith.constant 0 : index
    %c0_198 = arith.constant 0 : index
    %278 = vector.load %arg14[%c2_196, %c0_197, %c0_198] : memref<4x8x32xf32, #tpu.memory_space<vmem>>, vector<1x8x32xf32>
    %279 = vector.shape_cast %278 : vector<1x8x32xf32> to vector<8x32xf32>
    %cst_199 = arith.constant dense<0.000000e+00> : vector<8x32xf32>
    %280 = tpu.matmul %277, %279, %cst_199 {dimension_numbers = #tpu.dot_dimension_numbers<[1], [0], [0], [1], [0, 0, 1, 1], [], []>} : vector<8x8xf32>, vector<8x32xf32>, vector<8x32xf32> -> vector<8x32xf32>
    %281 = arith.addf %246, %280 : vector<8x32xf32>
    %c3_200 = arith.constant 3 : index
    %c0_201 = arith.constant 0 : index
    %c0_202 = arith.constant 0 : index
    %282 = vector.load %arg11[%c3_200, %c0_201, %c0_202] : memref<4x32x8xf32, #tpu.memory_space<vmem>>, vector<1x32x8xf32>
    %283 = vector.shape_cast %282 : vector<1x32x8xf32> to vector<32x8xf32>
    %cst_203 = arith.constant dense<0.000000e+00> : vector<8x8xf32>
    %284 = tpu.matmul %173, %283, %cst_203 {dimension_numbers = #tpu.dot_dimension_numbers<[1], [0], [0], [1], [0, 0, 1, 1], [], []>} : vector<8x32xf32>, vector<32x8xf32>, vector<8x8xf32> -> vector<8x8xf32>
    %c3_204 = arith.constant 3 : index
    %c0_205 = arith.constant 0 : index
    %c0_206 = arith.constant 0 : index
    %285 = vector.load %arg12[%c3_204, %c0_205, %c0_206] : memref<4x32x8xf32, #tpu.memory_space<vmem>>, vector<1x32x8xf32>
    %286 = vector.shape_cast %285 : vector<1x32x8xf32> to vector<32x8xf32>
    %cst_207 = arith.constant dense<0.000000e+00> : vector<8x8xf32>
    %287 = tpu.matmul %3, %286, %cst_207 {dimension_numbers = #tpu.dot_dimension_numbers<[1], [0], [0], [1], [0, 0, 1, 1], [], []>} : vector<8x32xf32>, vector<32x8xf32>, vector<8x8xf32> -> vector<8x8xf32>
    %c3_208 = arith.constant 3 : index
    %c0_209 = arith.constant 0 : index
    %c0_210 = arith.constant 0 : index
    %288 = vector.load %arg13[%c3_208, %c0_209, %c0_210] : memref<4x32x8xf32, #tpu.memory_space<vmem>>, vector<1x32x8xf32>
    %289 = vector.shape_cast %288 : vector<1x32x8xf32> to vector<32x8xf32>
    %cst_211 = arith.constant dense<0.000000e+00> : vector<8x8xf32>
    %290 = tpu.matmul %3, %289, %cst_211 {dimension_numbers = #tpu.dot_dimension_numbers<[1], [0], [0], [1], [0, 0, 1, 1], [], []>} : vector<8x32xf32>, vector<32x8xf32>, vector<8x8xf32> -> vector<8x8xf32>
    %291 = tpu.transpose %287, [1, 0] : vector<8x8xf32> -> vector<8x8xf32>
    %cst_212 = arith.constant dense<0.000000e+00> : vector<8x8xf32>
    %292 = tpu.matmul %284, %291, %cst_212 {dimension_numbers = #tpu.dot_dimension_numbers<[1], [0], [0], [1], [0, 0, 1, 1], [], []>} : vector<8x8xf32>, vector<8x8xf32>, vector<8x8xf32> -> vector<8x8xf32>
    %cst_213 = arith.constant 0.353553385 : f32
    %293 = vector.broadcast %cst_213 : f32 to vector<8x8xf32>
    %294 = arith.mulf %292, %293 : vector<8x8xf32>
    %cst_214 = arith.constant 5.000000e-01 : f32
    %295 = vector.broadcast %cst_214 : f32 to vector<8x8xf32>
    %296 = arith.cmpf ogt, %175, %295 : vector<8x8xf32>
    %cst_215 = arith.constant -1.000000e+09 : f32
    %297 = vector.broadcast %cst_215 : f32 to vector<8x8xf32>
    %298 = arith.select %296, %297, %294 : vector<8x8xi1>, vector<8x8xf32>
    %cst_216 = arith.constant dense<0xFF800000> : vector<8xf32>
    %299 = vector.multi_reduction <maximumf>, %298, %cst_216 [1] : vector<8x8xf32> to vector<8xf32>
    %300 = vector.shape_cast %299 : vector<8xf32> to vector<8x1xf32>
    %301 = vector.broadcast %300 : vector<8x1xf32> to vector<8x8xf32>
    %302 = arith.subf %298, %301 : vector<8x8xf32>
    %303 = math.exp %302 : vector<8x8xf32>
    %cst_217 = arith.constant dense<0.000000e+00> : vector<8xf32>
    %304 = vector.multi_reduction <add>, %303, %cst_217 [1] : vector<8x8xf32> to vector<8xf32>
    %305 = vector.shape_cast %304 : vector<8xf32> to vector<8x1xf32>
    %306 = tpu.reciprocal %305 {approx = true} : vector<8x1xf32> -> vector<8x1xf32>
    %307 = vector.broadcast %306 : vector<8x1xf32> to vector<8x8xf32>
    %308 = arith.mulf %303, %307 : vector<8x8xf32>
    %c3_218 = arith.constant 3 : index
    %c0_219 = arith.constant 0 : index
    %c0_220 = arith.constant 0 : index
    %309 = vector.load %arg23[%c3_218, %c0_219, %c0_220] : memref<4x8x8xf32, #tpu.memory_space<vmem>>, vector<1x8x8xf32>
    %310 = vector.shape_cast %309 : vector<1x8x8xf32> to vector<8x8xf32>
    %311 = vector.shape_cast %308 : vector<8x8xf32> to vector<1x8x8xf32>
    tpu.vector_store %arg23[%c3_218, %c0_219, %c0_220], %311 {strides = array<i32>} : memref<4x8x8xf32, #tpu.memory_space<vmem>>, vector<1x8x8xf32>,
    %cst_221 = arith.constant dense<0.000000e+00> : vector<8x8xf32>
    %312 = tpu.matmul %308, %290, %cst_221 {dimension_numbers = #tpu.dot_dimension_numbers<[1], [0], [0], [1], [0, 0, 1, 1], [], []>} : vector<8x8xf32>, vector<8x8xf32>, vector<8x8xf32> -> vector<8x8xf32>
    %c3_222 = arith.constant 3 : index
    %c0_223 = arith.constant 0 : index
    %c0_224 = arith.constant 0 : index
    %313 = vector.load %arg14[%c3_222, %c0_223, %c0_224] : memref<4x8x32xf32, #tpu.memory_space<vmem>>, vector<1x8x32xf32>
    %314 = vector.shape_cast %313 : vector<1x8x32xf32> to vector<8x32xf32>
    %cst_225 = arith.constant dense<0.000000e+00> : vector<8x32xf32>
    %315 = tpu.matmul %312, %314, %cst_225 {dimension_numbers = #tpu.dot_dimension_numbers<[1], [0], [0], [1], [0, 0, 1, 1], [], []>} : vector<8x8xf32>, vector<8x32xf32>, vector<8x32xf32> -> vector<8x32xf32>
    %316 = arith.addf %281, %315 : vector<8x32xf32>
    %317 = arith.addf %316, %173 : vector<8x32xf32>
    %c0_226 = arith.constant 0 : index
    %c0_227 = arith.constant 0 : index
    %318 = vector.load %arg15[%c0_226, %c0_227] : memref<1x32xf32, #tpu.memory_space<vmem>>, vector<1x32xf32>
    %c0_228 = arith.constant 0 : index
    %c0_229 = arith.constant 0 : index
    %319 = vector.load %arg16[%c0_228, %c0_229] : memref<1x32xf32, #tpu.memory_space<vmem>>, vector<1x32xf32>
    %cst_230 = arith.constant dense<0.000000e+00> : vector<8xf32>
    %320 = vector.multi_reduction <add>, %317, %cst_230 [1] : vector<8x32xf32> to vector<8xf32>
    %321 = vector.shape_cast %320 : vector<8xf32> to vector<8x1xf32>
    %cst_231 = arith.constant 3.200000e+01 : f32
    %322 = vector.broadcast %cst_231 : f32 to vector<8x1xf32>
    %323 = arith.divf %321, %322 : vector<8x1xf32>
    %324 = vector.broadcast %323 : vector<8x1xf32> to vector<8x32xf32>
    %325 = arith.subf %317, %324 : vector<8x32xf32>
    %326 = vector.broadcast %323 : vector<8x1xf32> to vector<8x32xf32>
    %327 = arith.subf %317, %326 : vector<8x32xf32>
    %328 = arith.mulf %325, %327 : vector<8x32xf32>
    %cst_232 = arith.constant dense<0.000000e+00> : vector<8xf32>
    %329 = vector.multi_reduction <add>, %328, %cst_232 [1] : vector<8x32xf32> to vector<8xf32>
    %330 = vector.shape_cast %329 : vector<8xf32> to vector<8x1xf32>
    %cst_233 = arith.constant 3.200000e+01 : f32
    %331 = vector.broadcast %cst_233 : f32 to vector<8x1xf32>
    %332 = arith.divf %330, %331 : vector<8x1xf32>
    %333 = vector.broadcast %323 : vector<8x1xf32> to vector<8x32xf32>
    %334 = arith.subf %317, %333 : vector<8x32xf32>
    %cst_234 = arith.constant 9.99999974E-6 : f32
    %335 = vector.broadcast %cst_234 : f32 to vector<8x1xf32>
    %336 = arith.addf %332, %335 : vector<8x1xf32>
    %337 = math.rsqrt %336 : vector<8x1xf32>
    %338 = vector.broadcast %337 : vector<8x1xf32> to vector<8x32xf32>
    %339 = arith.mulf %334, %338 : vector<8x32xf32>
    %340 = vector.broadcast %318 : vector<1x32xf32> to vector<8x32xf32>
    %341 = arith.mulf %339, %340 : vector<8x32xf32>
    %342 = vector.broadcast %319 : vector<1x32xf32> to vector<8x32xf32>
    %343 = arith.addf %341, %342 : vector<8x32xf32>
    %c0_235 = arith.constant 0 : index
    %c0_236 = arith.constant 0 : index
    %344 = vector.load %arg17[%c0_235, %c0_236] : memref<32x64xf32, #tpu.memory_space<vmem>>, vector<32x64xf32>
    %cst_237 = arith.constant dense<0.000000e+00> : vector<8x64xf32>
    %345 = tpu.matmul %343, %344, %cst_237 {dimension_numbers = #tpu.dot_dimension_numbers<[1], [0], [0], [1], [0, 0, 1, 1], [], []>} : vector<8x32xf32>, vector<32x64xf32>, vector<8x64xf32> -> vector<8x64xf32>
    %cst_238 = arith.constant 0.000000e+00 : f32
    %346 = vector.broadcast %cst_238 : f32 to vector<8x64xf32>
    %347 = arith.maximumf %345, %346 : vector<8x64xf32>
    %c0_239 = arith.constant 0 : index
    %c0_240 = arith.constant 0 : index
    %348 = vector.load %arg18[%c0_239, %c0_240] : memref<64x32xf32, #tpu.memory_space<vmem>>, vector<64x32xf32>
    %cst_241 = arith.constant dense<0.000000e+00> : vector<8x32xf32>
    %349 = tpu.matmul %347, %348, %cst_241 {dimension_numbers = #tpu.dot_dimension_numbers<[1], [0], [0], [1], [0, 0, 1, 1], [], []>} : vector<8x64xf32>, vector<64x32xf32>, vector<8x32xf32> -> vector<8x32xf32>
    %350 = arith.addf %349, %343 : vector<8x32xf32>
    %c0_242 = arith.constant 0 : index
    %c0_243 = arith.constant 0 : index
    %351 = vector.load %arg19[%c0_242, %c0_243] : memref<1x32xf32, #tpu.memory_space<vmem>>, vector<1x32xf32>
    %c0_244 = arith.constant 0 : index
    %c0_245 = arith.constant 0 : index
    %352 = vector.load %arg20[%c0_244, %c0_245] : memref<1x32xf32, #tpu.memory_space<vmem>>, vector<1x32xf32>
    %cst_246 = arith.constant dense<0.000000e+00> : vector<8xf32>
    %353 = vector.multi_reduction <add>, %350, %cst_246 [1] : vector<8x32xf32> to vector<8xf32>
    %354 = vector.shape_cast %353 : vector<8xf32> to vector<8x1xf32>
    %cst_247 = arith.constant 3.200000e+01 : f32
    %355 = vector.broadcast %cst_247 : f32 to vector<8x1xf32>
    %356 = arith.divf %354, %355 : vector<8x1xf32>
    %357 = vector.broadcast %356 : vector<8x1xf32> to vector<8x32xf32>
    %358 = arith.subf %350, %357 : vector<8x32xf32>
    %359 = vector.broadcast %356 : vector<8x1xf32> to vector<8x32xf32>
    %360 = arith.subf %350, %359 : vector<8x32xf32>
    %361 = arith.mulf %358, %360 : vector<8x32xf32>
    %cst_248 = arith.constant dense<0.000000e+00> : vector<8xf32>
    %362 = vector.multi_reduction <add>, %361, %cst_248 [1] : vector<8x32xf32> to vector<8xf32>
    %363 = vector.shape_cast %362 : vector<8xf32> to vector<8x1xf32>
    %cst_249 = arith.constant 3.200000e+01 : f32
    %364 = vector.broadcast %cst_249 : f32 to vector<8x1xf32>
    %365 = arith.divf %363, %364 : vector<8x1xf32>
    %366 = vector.broadcast %356 : vector<8x1xf32> to vector<8x32xf32>
    %367 = arith.subf %350, %366 : vector<8x32xf32>
    %cst_250 = arith.constant 9.99999974E-6 : f32
    %368 = vector.broadcast %cst_250 : f32 to vector<8x1xf32>
    %369 = arith.addf %365, %368 : vector<8x1xf32>
    %370 = math.rsqrt %369 : vector<8x1xf32>
    %371 = vector.broadcast %370 : vector<8x1xf32> to vector<8x32xf32>
    %372 = arith.mulf %367, %371 : vector<8x32xf32>
    %373 = vector.broadcast %351 : vector<1x32xf32> to vector<8x32xf32>
    %374 = arith.mulf %372, %373 : vector<8x32xf32>
    %375 = vector.broadcast %352 : vector<1x32xf32> to vector<8x32xf32>
    %376 = arith.addf %374, %375 : vector<8x32xf32>
    %c0_251 = arith.constant 0 : index
    %c0_252 = arith.constant 0 : index
    %c0_253 = arith.constant 0 : index
    %377 = vector.load %arg21[%c0_251, %c0_252, %c0_253] : memref<1x8x32xf32, #tpu.memory_space<vmem>>, vector<1x8x32xf32>
    %378 = vector.shape_cast %377 : vector<1x8x32xf32> to vector<8x32xf32>
    %379 = vector.shape_cast %376 : vector<8x32xf32> to vector<1x8x32xf32>
    tpu.vector_store %arg21[%c0_251, %c0_252, %c0_253], %379 {strides = array<i32>} : memref<1x8x32xf32, #tpu.memory_space<vmem>>, vector<1x8x32xf32>,
    return
  }
  func.func @transform_0(%arg0: i32) -> (i32, i32, i32) {
    %c0_i32 = arith.constant 0 : i32
    %c0_i32_0 = arith.constant 0 : i32
    %c0_i32_1 = arith.constant 0 : i32
    return %arg0, %c0_i32, %c0_i32_0 : i32, i32, i32
  }
  func.func @transform_1(%arg0: i32) -> (i32, i32, i32) {
    %c0_i32 = arith.constant 0 : i32
    %c0_i32_0 = arith.constant 0 : i32
    %c0_i32_1 = arith.constant 0 : i32
    return %arg0, %c0_i32, %c0_i32_0 : i32, i32, i32
  }
  func.func @transform_2(%arg0: i32) -> (i32, i32, i32) {
    %c0_i32 = arith.constant 0 : i32
    %c0_i32_0 = arith.constant 0 : i32
    %c0_i32_1 = arith.constant 0 : i32
    return %arg0, %c0_i32, %c0_i32_0 : i32, i32, i32
  }
  func.func @transform_3(%arg0: i32) -> (i32, i32, i32) {
    %c0_i32 = arith.constant 0 : i32
    %c0_i32_0 = arith.constant 0 : i32
    %c0_i32_1 = arith.constant 0 : i32
    return %arg0, %c0_i32, %c0_i32_0 : i32, i32, i32
  }
  func.func @transform_4(%arg0: i32) -> (i32, i32, i32) {
    %c0_i32 = arith.constant 0 : i32
    %c0_i32_0 = arith.constant 0 : i32
    %c0_i32_1 = arith.constant 0 : i32
    %c0_i32_2 = arith.constant 0 : i32
    return %c0_i32, %c0_i32_0, %c0_i32_1 : i32, i32, i32
  }
  func.func @transform_5(%arg0: i32) -> (i32, i32, i32) {
    %c0_i32 = arith.constant 0 : i32
    %c0_i32_0 = arith.constant 0 : i32
    %c0_i32_1 = arith.constant 0 : i32
    %c0_i32_2 = arith.constant 0 : i32
    return %c0_i32, %c0_i32_0, %c0_i32_1 : i32, i32, i32
  }
  func.func @transform_6(%arg0: i32) -> (i32, i32, i32) {
    %c0_i32 = arith.constant 0 : i32
    %c0_i32_0 = arith.constant 0 : i32
    %c0_i32_1 = arith.constant 0 : i32
    %c0_i32_2 = arith.constant 0 : i32
    return %c0_i32, %c0_i32_0, %c0_i32_1 : i32, i32, i32
  }
  func.func @transform_7(%arg0: i32) -> (i32, i32, i32) {
    %c0_i32 = arith.constant 0 : i32
    %c0_i32_0 = arith.constant 0 : i32
    %c0_i32_1 = arith.constant 0 : i32
    %c0_i32_2 = arith.constant 0 : i32
    return %c0_i32, %c0_i32_0, %c0_i32_1 : i32, i32, i32
  }
  func.func @transform_8(%arg0: i32) -> (i32, i32) {
    %c0_i32 = arith.constant 0 : i32
    %c0_i32_0 = arith.constant 0 : i32
    %c0_i32_1 = arith.constant 0 : i32
    return %c0_i32, %c0_i32_0 : i32, i32
  }
  func.func @transform_9(%arg0: i32) -> (i32, i32) {
    %c0_i32 = arith.constant 0 : i32
    %c0_i32_0 = arith.constant 0 : i32
    %c0_i32_1 = arith.constant 0 : i32
    return %c0_i32, %c0_i32_0 : i32, i32
  }
  func.func @transform_10(%arg0: i32) -> (i32, i32, i32) {
    %c0_i32 = arith.constant 0 : i32
    %c0_i32_0 = arith.constant 0 : i32
    %c0_i32_1 = arith.constant 0 : i32
    %c0_i32_2 = arith.constant 0 : i32
    return %c0_i32, %c0_i32_0, %c0_i32_1 : i32, i32, i32
  }
  func.func @transform_11(%arg0: i32) -> (i32, i32, i32) {
    %c0_i32 = arith.constant 0 : i32
    %c0_i32_0 = arith.constant 0 : i32
    %c0_i32_1 = arith.constant 0 : i32
    %c0_i32_2 = arith.constant 0 : i32
    return %c0_i32, %c0_i32_0, %c0_i32_1 : i32, i32, i32
  }
  func.func @transform_12(%arg0: i32) -> (i32, i32, i32) {
    %c0_i32 = arith.constant 0 : i32
    %c0_i32_0 = arith.constant 0 : i32
    %c0_i32_1 = arith.constant 0 : i32
    %c0_i32_2 = arith.constant 0 : i32
    return %c0_i32, %c0_i32_0, %c0_i32_1 : i32, i32, i32
  }
  func.func @transform_13(%arg0: i32) -> (i32, i32, i32) {
    %c0_i32 = arith.constant 0 : i32
    %c0_i32_0 = arith.constant 0 : i32
    %c0_i32_1 = arith.constant 0 : i32
    %c0_i32_2 = arith.constant 0 : i32
    return %c0_i32, %c0_i32_0, %c0_i32_1 : i32, i32, i32
  }
  func.func @transform_14(%arg0: i32) -> (i32, i32) {
    %c0_i32 = arith.constant 0 : i32
    %c0_i32_0 = arith.constant 0 : i32
    %c0_i32_1 = arith.constant 0 : i32
    return %c0_i32, %c0_i32_0 : i32, i32
  }
  func.func @transform_15(%arg0: i32) -> (i32, i32) {
    %c0_i32 = arith.constant 0 : i32
    %c0_i32_0 = arith.constant 0 : i32
    %c0_i32_1 = arith.constant 0 : i32
    return %c0_i32, %c0_i32_0 : i32, i32
  }
  func.func @transform_16(%arg0: i32) -> (i32, i32) {
    %c0_i32 = arith.constant 0 : i32
    %c0_i32_0 = arith.constant 0 : i32
    %c0_i32_1 = arith.constant 0 : i32
    return %c0_i32, %c0_i32_0 : i32, i32
  }
  func.func @transform_17(%arg0: i32) -> (i32, i32) {
    %c0_i32 = arith.constant 0 : i32
    %c0_i32_0 = arith.constant 0 : i32
    %c0_i32_1 = arith.constant 0 : i32
    return %c0_i32, %c0_i32_0 : i32, i32
  }
  func.func @transform_18(%arg0: i32) -> (i32, i32) {
    %c0_i32 = arith.constant 0 : i32
    %c0_i32_0 = arith.constant 0 : i32
    %c0_i32_1 = arith.constant 0 : i32
    return %c0_i32, %c0_i32_0 : i32, i32
  }
  func.func @transform_19(%arg0: i32) -> (i32, i32) {
    %c0_i32 = arith.constant 0 : i32
    %c0_i32_0 = arith.constant 0 : i32
    %c0_i32_1 = arith.constant 0 : i32
    return %c0_i32, %c0_i32_0 : i32, i32
  }
  func.func @transform_20(%arg0: i32) -> (i32, i32, i32) {
    %c0_i32 = arith.constant 0 : i32
    %c0_i32_0 = arith.constant 0 : i32
    %c0_i32_1 = arith.constant 0 : i32
    return %arg0, %c0_i32, %c0_i32_0 : i32, i32, i32
  }
  func.func @transform_21(%arg0: i32) -> (i32, i32, i32) {
    %c0_i32 = arith.constant 0 : i32
    %c0_i32_0 = arith.constant 0 : i32
    %c0_i32_1 = arith.constant 0 : i32
    return %arg0, %c0_i32, %c0_i32_0 : i32, i32, i32
  }
  func.func @transform_22(%arg0: i32) -> (i32, i32, i32) {
    %c0_i32 = arith.constant 0 : i32
    %c0_i32_0 = arith.constant 0 : i32
    %c0_i32_1 = arith.constant 0 : i32
    return %arg0, %c0_i32, %c0_i32_0 : i32, i32, i32
  }
}

</mosaic_0001>

<bundles_post_ra>
// kernel: transformer_forward.9
= control target key start
LH: loop header
LB: loop body
LE: loop exit
PB: predicated region body
PF: predicated region fallthrough
CT: control target
= control target key end

     0   :  { %7 = vsyncpa [#allocation3], 0  ;;  %s562_s0 = inlined_call_operand.vmem [shape: f32[2,8,32], index: 0, kind: input, shape index: {}]   ;;  %s563_s1 = inlined_call_operand.vmem [shape: f32[32,32], index: 1, kind: input, shape index: {}]   ;;  %s564_s2 = inlined_call_operand.hbm [shape: f32[2,8,32], index: 2, kind: output, shape index: {}]  }
   0x1   :  { %9 = vsyncpa [#allocation3 + $0x1], 0  ;;  %s450_s9 = smov 0   ;;  %s452_s10 = smov 0  }
   0x2   :  { %s454_s11 = smov 0   ;;  %s456_s12 = smov 0  }
   0x3 LB: > { %s471_s13 = sadd.s32 4294967295, %s429_s12   ;;  %s292_s14 = sadd.s32 4294967294, %s429_s12   ;;  %s429_s12 = sphi %s456_s12, %s570_s12   ;;  %s425_s11 = sphi %s454_s11, %s569_s11   ;;  %s421_s10 = sphi %s452_s10, %s568_s10   ;;  %s417_s9 = sphi %s450_s9, %s567_s9  }
   0x4   : > { %s475_s15 = sadd.s32 1, %s429_s12   ;;  %s69_s16 = sadd.s32 1, %s425_s11 }
   0x5   : > { %s66_s17 = ssub.s32 %s429_s12, %s475_s15  ;;  %p79_p0 = scmp.ne.s32.totalorder %s425_s11, %s421_s10 }
   0x6   : > { %p67_p1 = scmp.eq.s32.totalorder %s66_s17, 0  ;;  %p80_p2 = scmp.eq.s32.totalorder %s471_s13, 1 }
   0x7   : > { %p85_p3 = scmp.ne.s32.totalorder %s421_s10, %s417_s9  ;;  %p86_p4 = scmp.eq.s32.totalorder %s292_s14, 1 }
   0x8   : > { %s486_s18 = scalar_select %p67_p1, %s425_s11, %s69_s16  }
   0x9   : > { %p488_p5 = por %p80_p2, %p79_p0  ;;  %p492_p6 = por %p86_p4, %p85_p3 }
   0xa   : > { %p295_p7 = scmp.ge.s32.totalorder %s429_s12, 1  ;;  %p114_p8 = scmp.lt.s32.totalorder %s429_s12, 3 }
   0xc   : > { %p115_p9 = pnand %p295_p7, %p114_p8 }
   0xd   : > { %v140_v0 = vld [vmem:[%s563_s1] sm:$0xff] (!%p115_p9)  ;;  %v141_v1 = vld [vmem:[%s563_s1 + $0x8] sm:$0xff] (!%p115_p9)  ;;  %v142_v2 = vld [vmem:[%s563_s1 + $0x10] sm:$0xff] (!%p115_p9)  ;;  %v431_v3 = vmov (!%p115_p9), 0.0|0.0   ;;  %vm432_vm0 = vmmov (!%p115_p9), 0   ;;  %v433_v6 = vmov (!%p115_p9), 0.0  }
   0xe   : > { %118 = sbr.rel (%p115_p9) target bundleno = 252 (0xfc), region = 28  ;;  %319 = vmatprep.subr.bf16.mxu0 (!%p115_p9), %v431_v3  ;;  %v320_v4 = vpack.c.bf16 (!%p115_p9), %v141_v1, %v140_v0  ;;  %v143_v5 = vld [vmem:[%s563_s1 + $0x18] sm:$0xff] (!%p115_p9)  ;;  %316 = vmatprep.mubr.msk.f32.mxu0 (!%p115_p9), %vm432_vm0, %v433_v6  ;;  %p135_p10 = scmp.lt.s32.totalorder (!%p115_p9), %s471_s13, 1  ;;  %vm144_vm1 = vcmask (!%p115_p9), 261120  }
   0xf   : > { %v323_v7 = vpack.c.bf16 (!%p115_p9), %v143_v5, %v142_v2  ;;  %s132_s6 = sand.u32 (!%p115_p9), 1, %s421_s10   ;;  %s300_s8 = sshll.u32 (!%p115_p9), %s471_s13, 7 }
  0x10   : > { %321 = vmatpush3.bf16.msra.mxu0 (!%p115_p9), %v320_v4  ;;  %s296_s7 = sshll.u32 (!%p115_p9), %s132_s6, 3  ;;  %s520_s22 = scalar_lea.hbm (!%p115_p9), %s564_s2, %s300_s8 }
  0x11   : > { %322 = vmatprep.subr.bf16.mxu0 (!%p115_p9), %v431_v3  ;;  %s134_s14 = scalar_lea.vmem (!%p115_p9), [#allocation2], %s296_s7  ;;  %s220_s23 = scalar_lea.sflag (!%p115_p9), [#allocation3], %s132_s6 }
  0x12   : > { %s233_s16 = sshll.u32 (!%p115_p9), %s134_s14, 4  ;;  %s522_s16 = int_to_ptr.vmem [resolvable:$true] %s233_s16 }
  0x13   : > { %s367_s24 = scalar_lea.vmem (!%p115_p9), %s522_s16, 128 }
  0x14   : > { %324 = vmatpush3.bf16.msra.mxu0 (!%p115_p9), %v323_v7  ;;  %p368_p11 = scmp.ne.s32.totalorder (!%p115_p9), %s522_s16, %s367_s24 }
  0x15   : > { %s136_s29 = scalar_select %p135_p10, %s471_s13, 1 }
  0x16   : > { %p369_p12 = pnand %p368_p11, %p488_p5  ;;  %s434_s13 = smov [#allocation2]  }
  0x17   : > { %s297_s30 = sshll.u32 %s136_s29, 3  ;;  %s371_s25 = sshll.u32 %s434_s13, 4  ;;  %s372_s25 = int_to_ptr.vmem [resolvable:$false] %s371_s25 }
  0x18   : > { %s138_s5 = scalar_lea.vmem %s562_s0, %s297_s30  ;;  %p370_p13 = pneg %p369_p12 }
  0x19   : > { %v139_v8 = vld [vmem:[%s138_s5] sm:$0xff]  ;;  %s373_s26 = scalar_lea.vmem %s372_s25, 256  ;;  %p374_p0 = scmp.lt.s32.totalorder %s522_s16, %s372_s25 }
  0x1a   : > { %317 = vmatmul.mubr.msk.f32.vlgmr.msra.gmra.mrb[0].mxu0 %vm144_vm1, %v139_v8  ;;  %p375_p1 = scmp.lt.s32.totalorder %s373_s26, %s367_s24 }
  0x1c   : > { %p376_p2 = por %p375_p1, %p374_p0 }
  0x1e   : > { %p377_p3 = pnand %p376_p2, %p370_p13 }
  0xed   : > { %v214_v9 = vpop.f32.mrb[0].mxu0 }
  0xee   : > { %218 = vst.msk [vmem:[%s134_s14] sm:$0xff] %vm144_vm1, %v214_v9  ;;  %v318_v10 = vpop.f32.mrb[1].mxu0 }
  0xef   : > { %380 = shalt.err (!%p377_p3)
}
  0xf0   : > { %s381_s27 = scalar_lea.hbm %s520_s22, 128  ;;  %s385_s30 = scalar_lea.hbm %s564_s2, 256 }
  0xf1   : > { %p382_p4 = scmp.ne.s32.totalorder %s520_s22, %s381_s27  ;;  %p386_p9 = scmp.lt.u32.totalorder %s520_s22, %s564_s2 }
  0xf2   : > { %p387_p10 = scmp.lt.u32.totalorder %s385_s30, %s381_s27  ;;  %p389_p12 = scmp.lt.u32.totalorder %s381_s27, %s520_s22 }
  0xf3   : > { %p383_p7 = pnand %p382_p4, %p488_p5 }
  0xf4   : > { %p388_p11 = por %p387_p10, %p386_p9 }
  0xf5   : > { %p384_p8 = pneg %p383_p7 }
  0xf6   : > { %p390_p13 = por %p389_p12, %p388_p11 }
  0xf8   : > { %p391_p0 = pnand %p390_p13, %p384_p8 }
  0xfa   : > { %394 = shalt.err (!%p391_p0)
}
  0xfb   : > { %325 = dma.vmem_to_hbm [thread:$0]  (%p488_p5), %s522_s16, 128, %s520_s22, %s220_s23  }
  0xfc PF: > { %p331_p1 = scmp.ge.s32.totalorder %s429_s12, 2  ;;  %s245_s5 = sand.u32 1, %s417_s9  }
  0xfd   : > { %s246_s6 = scalar_lea.sflag [#allocation3], %s245_s5 }
  0xfe   : > { %p328_p2 = pnand %p331_p1, %p492_p6 }
 0x100   : > { %412 = dma.done.wait (!%p328_p2), %s246_s6, 128  }
 0x101   : > { %414 = vsyncadd (!%p328_p2), %s246_s6, 4294967168  ;;  %p12_p3 = scmp.ge.s32.totalorder %s475_s15, 4   ;;  %s567_s9 = smov %s421_s10 }
 0x102   : > { %s568_s10 = smov %s425_s11  ;;  %s569_s11 = smov %s486_s18 }
 0x103   : > { %s570_s12 = smov %s475_s15  ;;  %14 = sbr.rel (!%p12_p3) target bundleno = 3 (0x3), region = 63 }
 0x10a   :  { %251 = vsyncpa [#allocation3], 1 }
 0x10b   :  { %253 = vsyncpa [#allocation3 + $0x1], 1 }

// kernel: transformer_forward.5
= control target key start
LH: loop header
LB: loop body
LE: loop exit
PB: predicated region body
PF: predicated region fallthrough
CT: control target
= control target key end

     0   :  { %s3868_s0 = inlined_call_operand.vmem [shape: f32[2,8,32], index: 0, kind: input, shape index: {}]   ;;  %s3869_s1 = inlined_call_operand.vmem [shape: f32[2,8,8], index: 1, kind: input, shape index: {}]   ;;  %s3870_s2 = inlined_call_operand.vmem [shape: f32[4,32,8], index: 2, kind: input, shape index: {}]   ;;  %s3871_s3 = inlined_call_operand.vmem [shape: f32[4,32,8], index: 3, kind: input, shape index: {}]   ;;  %s3872_s4 = inlined_call_operand.vmem [shape: f32[4,32,8], index: 4, kind: input, shape index: {}]   ;;  %s3873_s5 = inlined_call_operand.vmem [shape: f32[4,8,32], index: 5, kind: input, shape index: {}]   ;;  %s3874_s6 = inlined_call_operand.vmem [shape: f32[1,32], index: 6, kind: input, shape index: {}]   ;;  %s3875_s7 = inlined_call_operand.vmem [shape: f32[1,32], index: 7, kind: input, shape index: {}]   ;;  %s3876_s8 = inlined_call_operand.vmem [shape: f32[32,64], index: 8, kind: input, shape index: {}]   ;;  %s3877_s9 = inlined_call_operand.vmem [shape: f32[64,32], index: 9, kind: input, shape index: {}]   ;;  %s3878_s10 = inlined_call_operand.vmem [shape: f32[1,32], index: 10, kind: input, shape index: {}]   ;;  %s3879_s11 = inlined_call_operand.vmem [shape: f32[1,32], index: 11, kind: input, shape index: {}]   ;;  %s3880_s12 = inlined_call_operand.vmem [shape: f32[2,8,32], index: 12, kind: output, shape index: {0}]   ;;  %s3881_s13 = inlined_call_operand.hbm [shape: f32[8,8,8], index: 13, kind: output, shape index: {1}]  }
   0x1   :  { %3884 = sst [smem:[#allocation7_spill]] %s3868_s0 }
   0x2   :  { %3885 = sst [smem:[#allocation8_spill]] %s3869_s1 }
   0x3   :  { %19 = vsyncpa [#allocation3], 0 }
   0x4   :  { %21 = vsyncpa [#allocation3 + $0x1], 0  ;;  %s3370_s25 = smov 0   ;;  %s3372_s26 = smov 0  }
   0x5   :  { %s3374_s27 = smov 0   ;;  %s3376_s28 = smov 0  }
   0x6 LB: > { %3886 = sst [smem:[#allocation5_spill]] %s3288_s27  ;;  %s3391_s29 = sadd.s32 4294967295, %s3292_s28   ;;  %s3292_s28 = sphi %s3376_s28, %s3898_s28   ;;  %s3288_s27 = sphi %s3374_s27, %s3897_s27   ;;  %s3284_s26 = sphi %s3372_s26, %s3896_s26   ;;  %s3280_s25 = sphi %s3370_s25, %s3895_s25  }
   0x7   : > { %s2666_s30 = sadd.s32 4294967294, %s3292_s28   ;;  %s3395_s14 = sadd.s32 1, %s3292_s28  }
   0x8   : > { %s322_s15 = sadd.s32 1, %s3288_s27  ;;  %s319_s16 = ssub.s32 %s3292_s28, %s3395_s14 }
   0x9   : > { %p332_p0 = scmp.ne.s32.totalorder %s3288_s27, %s3284_s26  ;;  %p320_p1 = scmp.eq.s32.totalorder %s319_s16, 0 }
   0xa   : > { %p333_p2 = scmp.eq.s32.totalorder %s3391_s29, 1  ;;  %p338_p3 = scmp.ne.s32.totalorder %s3284_s26, %s3280_s25 }
   0xb   : > { %p339_p4 = scmp.eq.s32.totalorder %s2666_s30, 1  ;;  %p2669_p7 = scmp.ge.s32.totalorder %s3292_s28, 1 }
   0xc   : > { %s3406_s17 = scalar_select %p320_p1, %s3288_s27, %s322_s15  }
   0xd   : > { %p3408_p5 = por %p333_p2, %p332_p0  ;;  %p3412_p6 = por %p339_p4, %p338_p3 }
   0xe   : > { %3887 = sst [smem:[#allocation6_spill]] %s3406_s17  ;;  %p401_p8 = scmp.lt.s32.totalorder %s3292_s28, 3 }
  0x10   : > { %p402_p9 = pnand %p2669_p7, %p401_p8 }
  0x11   : > { %v545_v0 = vld [vmem:[%s3871_s3] sm:$0xff] (!%p402_p9)  ;;  %v546_v1 = vld [vmem:[%s3871_s3 + $0x8] sm:$0xff] (!%p402_p9)  ;;  %v3294_v3 = vmov (!%p402_p9), 0.0|0.0   ;;  %v547_v6 = vld [vmem:[%s3871_s3 + $0x10] sm:$0xff] (!%p402_p9)  ;;  %p452_p10 = scmp.lt.s32.totalorder (!%p402_p9), %s3391_s29, 1  ;;  %vm3295_vm0 = vmmov (!%p402_p9), 0  }
  0x12   : > { %405 = sbr.rel (%p402_p9) target bundleno = 4934 (0x1346), region = 68  ;;  %v467_v2 = vld [vmem:[%s3870_s2] sm:$0xff] (!%p402_p9)  ;;  %3082 = vmatprep.subr.bf16.mxu1 (!%p402_p9), %v3294_v3  ;;  %v3083_v4 = vpack.c.bf16 (!%p402_p9), %v546_v1, %v545_v0  ;;  %3076 = vmatprep.subr.bf16.mxu0 (!%p402_p9), %v3294_v3  ;;  %v468_v5 = vld [vmem:[%s3870_s2 + $0x8] sm:$0xff] (!%p402_p9)  ;;  %v548_v7 = vld [vmem:[%s3871_s3 + $0x18] sm:$0xff] (!%p402_p9)  ;;  %v3296_v11 = vmov (!%p402_p9), 0.0   ;;  %s3890_s0 = sld [smem:[#allocation7_spill]] (!%p402_p9) }
  0x13   : > { %v3077_v8 = vpack.c.bf16 (!%p402_p9), %v468_v5, %v467_v2  ;;  %v469_v9 = vld [vmem:[%s3870_s2 + $0x10] sm:$0xff] (!%p402_p9)  ;;  %v470_v10 = vld [vmem:[%s3870_s2 + $0x18] sm:$0xff] (!%p402_p9)  ;;  %2873 = vmatprep.mubr.msk.f32.mxu1 (!%p402_p9), %vm3295_vm0, %v3296_v11  ;;  %2862 = vmatprep.mubr.msk.f32.mxu0 (!%p402_p9), %vm3295_vm0, %v3296_v11  ;;  %v3086_v12 = vpack.c.bf16 (!%p402_p9), %v548_v7, %v547_v6  ;;  %v619_v14 = vld [vmem:[%s3872_s4] sm:$0xff] (!%p402_p9)  ;;  %vm471_vm1 = vcmask (!%p402_p9), 261120   ;;  %vm693_vm2 = vcmask (!%p402_p9), 64512   ;;  %s3891_s1 = sld [smem:[#allocation8_spill]] (!%p402_p9) }
  0x14   : > { %3084 = vmatpush3.bf16.msra.mxu1 (!%p402_p9), %v3083_v4  ;;  %v3080_v13 = vpack.c.bf16 (!%p402_p9), %v470_v10, %v469_v9  ;;  %v620_v15 = vld [vmem:[%s3872_s4 + $0x8] sm:$0xff] (!%p402_p9)  ;;  %v621_v18 = vld [vmem:[%s3872_s4 + $0x10] sm:$0xff] (!%p402_p9)  ;;  %v622_v19 = vld [vmem:[%s3872_s4 + $0x18] sm:$0xff] (!%p402_p9)  ;;  %vm2443_vm4 = vcmask (!%p402_p9), 523264  }
  0x15   : > { %3078 = vmatpush3.bf16.msra.mxu0 (!%p402_p9), %v3077_v8  ;;  %3085 = vmatprep.subr.bf16.mxu1 (!%p402_p9), %v3294_v3  ;;  %v3089_v17 = vpack.c.bf16 (!%p402_p9), %v620_v15, %v619_v14  ;;  %v3092_v20 = vpack.c.bf16 (!%p402_p9), %v622_v19, %v621_v18  ;;  %v2680_v38 = vld [vmem:[%s3870_s2 + $0x20] sm:$0xff] (!%p402_p9)  ;;  %v2681_v39 = vld [vmem:[%s3870_s2 + $0x28] sm:$0xff] (!%p402_p9)  ;;  %v2682_v41 = vld [vmem:[%s3870_s2 + $0x30] sm:$0xff] (!%p402_p9) }
  0x16   : > { %3079 = vmatprep.subr.bf16.mxu0 (!%p402_p9), %v3294_v3  ;;  %v3095_v40 = vpack.c.bf16 (!%p402_p9), %v2681_v39, %v2680_v38  ;;  %v2683_v42 = vld [vmem:[%s3870_s2 + $0x38] sm:$0xff] (!%p402_p9)  ;;  %v2685_v45 = vld [vmem:[%s3871_s3 + $0x20] sm:$0xff] (!%p402_p9)  ;;  %v2686_v46 = vld [vmem:[%s3871_s3 + $0x28] sm:$0xff] (!%p402_p9) }
  0x17   : > { %v3098_v43 = vpack.c.bf16 (!%p402_p9), %v2683_v42, %v2682_v41  ;;  %v3101_v48 = vpack.c.bf16 (!%p402_p9), %v2686_v46, %v2685_v45  ;;  %v2687_v50 = vld [vmem:[%s3871_s3 + $0x30] sm:$0xff] (!%p402_p9)  ;;  %v2688_v51 = vld [vmem:[%s3871_s3 + $0x38] sm:$0xff] (!%p402_p9)  ;;  %v2690_v59 = vld [vmem:[%s3872_s4 + $0x20] sm:$0xff] (!%p402_p9) }
  0x18   : > { %3087 = vmatpush3.bf16.msra.mxu1 (!%p402_p9), %v3086_v12  ;;  %v3104_v52 = vpack.c.bf16 (!%p402_p9), %v2688_v51, %v2687_v50  ;;  %v2691_v60 = vld [vmem:[%s3872_s4 + $0x28] sm:$0xff] (!%p402_p9)  ;;  %v2692_v61 = vld [vmem:[%s3872_s4 + $0x30] sm:$0xff] (!%p402_p9)  ;;  %v2693_v63 = vld [vmem:[%s3872_s4 + $0x38] sm:$0xff] (!%p402_p9) }
  0x19   : > { %s453_s15 = scalar_select %p452_p10, %s3391_s29, 1  ;;  %3081 = vmatpush3.bf16.msra.mxu0 %v3080_v13  ;;  %2892 = vmatprep.subr.mxu1 %v3296_v11  ;;  %v3107_v62 = vpack.c.bf16 %v2691_v60, %v2690_v59  ;;  %v3110_v0 = vpack.c.bf16 %v2693_v63, %v2692_v61  ;;  %v2699_v15 = vld [vmem:[%s3873_s5 + $0x8] sm:$0xff]  ;;  %v2712_v45 = vld [vmem:[%s3872_s4 + $0x40] sm:$0xff]  ;;  %v2721_v63 = vld [vmem:[%s3873_s5 + $0x10] sm:$0xff] }
  0x1a   : > { %3088 = vmatprep.subr.bf16.mxu0 %v3294_v3  ;;  %v2713_v46 = vld [vmem:[%s3872_s4 + $0x48] sm:$0xff] }
  0x1b   : > { %s3452_s16 = sshll.u32 %s453_s15, 3  ;;  %s3892_s15 = sand.u32 1, %s3284_s26  }
  0x1c   : > { %s455_s24 = scalar_lea.vmem %s3890_s0, %s3452_s16  ;;  %s459_s22 = scalar_lea.vmem %s3891_s1, %s3452_s16 }
  0x1d   : > { %v3464_v16 = vld [vmem:[%s455_s24] sm:$0xff]  ;;  %s2755_s0 = sshll.u32 %s3391_s29, 9  ;;  %s3816_s27 = scalar_lea.sflag [#allocation3], %s3892_s15 }
  0x1e   : > { %2874 = vmatmul.mubr.msk.f32.vlgmr.msra.gmra.mrb[0].mxu1 %vm471_vm1, %v3464_v16  ;;  %2863 = vmatmul.mubr.msk.f32.vlgmr.msra.gmra.mrb[0].mxu0 %vm471_vm1, %v3464_v16  ;;  %v3498_v27 = vld [vmem:[%s459_s22] sm:$0xff]  ;;  %s3883_s22 = sand.u32 1, %s3284_s26   ;;  %s3810_s30 = scalar_lea.hbm %s3881_s13, %s2755_s0 }
  0x1f   : > { %2894 = vmatprep.mubr.msk.f32.mxu1 %vm3295_vm0, %v3296_v11  ;;  %3090 = vmatpush3.bf16.msra.mxu0 %v3089_v17  ;;  %vm771_vm3 = vcmp.gt.f32.partialorder %v3498_v27, 0.5  ;;  %s2670_s23 = sshll.u32 %s3883_s22, 5  ;;  %v2742_v27 = vld [vmem:[%s3873_s5 + $0x18] sm:$0xff]  ;;  %s3297_s29 = smov [#allocation2]  }
  0x20   : > { %2884 = vmatprep.mubr.msk.f32.mxu0 %vm3295_vm0, %v3296_v11  ;;  %3091 = vmatprep.subr.bf16.mxu0 %v3294_v3  ;;  %s3538_s22 = scalar_lea.vmem [#allocation2], %s2670_s23 }
  0x21   : > { %s2568_s23 = sshll.u32 %s3538_s22, 4  ;;  %s3812_s23 = int_to_ptr.vmem [resolvable:$true] %s2568_s23 }
  0x22   : > { %s3230_s17 = scalar_lea.vmem %s3812_s23, 512 }
  0x23   : > { %3093 = vmatpush3.bf16.msra.mxu0 %v3092_v20  ;;  %v858_v20 = vld [vmem:[%s3873_s5] sm:$0xff]  ;;  %p3231_p11 = scmp.ne.s32.totalorder %s3812_s23, %s3230_s17 }
  0x24   : > { %2887 = vmatprep.subr.mxu0 %v3296_v11 }
  0x25   : > { %p3232_p12 = pnand %p3231_p11, %p3408_p5 }
  0x26   : > { %2885 = vmatmul.mubr.msk.f32.vlgmr.msra.gmra.mrb[2].mxu0 %vm471_vm1, %v3464_v16 }
  0x27   : > { %2889 = vmatprep.mubr.msk.f32.mxu0 %vm3295_vm0, %v3296_v11  ;;  %p3233_p13 = pneg %p3232_p12 }
  0xf1   : > { %v615_v21 = vpop.f32.mrb[0].mxu1  ;;  %v541_v23 = vpop.f32.mrb[0].mxu0 }
  0xf2   : > { %v2875_v22 = vpop.f32.mrb[1].mxu1  ;;  %2888 = vmatpush3.xpose.msk.msra.mxu0 %vm693_vm2, %v615_v21  ;;  %v2864_v24 = vpop.f32.mrb[1].mxu0  ;;  %v2707_v21 = vld [vmem:[%s3871_s3 + $0x40] sm:$0xff] }
  0xf3   : > { %3094 = vmatprep.subr.bf16.mxu0 %v3294_v3  ;;  %v2708_v22 = vld [vmem:[%s3871_s3 + $0x48] sm:$0xff]  ;;  %v2709_v24 = vld [vmem:[%s3871_s3 + $0x50] sm:$0xff] }
  0xf5   : > { %2890 = vmatmul.mubr.msk.f32.vlgmr.msra.gmra.mrb[4].mxu0 %vm693_vm2, %v541_v23  ;;  %v3119_v23 = vpack.c.bf16 %v2708_v22, %v2707_v21 }
  0xf6   : > { %2905 = vmatprep.mubr.msk.f32.mxu0 %vm3295_vm0, %v3296_v11  ;;  %3096 = vmatpush3.bf16.msra.mxu0 %v3095_v40 }
  0xf7   : > { %3097 = vmatprep.subr.bf16.mxu0 %v3294_v3 }
  0xf9   : > { %v689_v25 = vpop.f32.mrb[2].mxu0 }
  0xfa   : > { %v2886_v26 = vpop.f32.mrb[3].mxu0  ;;  %2893 = vmatpush3.msra.mxu1 %v689_v25  ;;  %3099 = vmatpush3.bf16.msra.mxu0 %v3098_v43  ;;  %v2710_v25 = vld [vmem:[%s3871_s3 + $0x58] sm:$0xff] }
  0xfb   : > { %3100 = vmatprep.subr.bf16.mxu1 %v3294_v3  ;;  %3106 = vmatprep.subr.bf16.mxu0 %v3294_v3  ;;  %v3122_v26 = vpack.c.bf16 %v2710_v25, %v2709_v24 }
  0xfd   : > { %2906 = vmatmul.mubr.msk.f32.vlgmr.msra.gmra.mrb[6].mxu0 %vm471_vm1, %v3464_v16 }
  0xfe   : > { %2927 = vmatprep.mubr.msk.f32.mxu0 %vm3295_vm0, %v3296_v11  ;;  %3108 = vmatpush3.bf16.msra.mxu0 %v3107_v62 }
  0xff   : > { %3109 = vmatprep.subr.bf16.mxu0 %v3294_v3 }
 0x102   : > { %3111 = vmatpush3.bf16.msra.mxu0 %v3110_v0 }
 0x103   : > { %2940 = vmatprep.subr.mxu0 %v3296_v11 }
 0x105   : > { %2928 = vmatmul.mubr.msk.f32.vlgmr.msra.gmra.mrb[8].mxu0 %vm471_vm1, %v3464_v16 }
 0x106   : > { %2942 = vmatprep.mubr.msk.f32.mxu0 %vm3295_vm0, %v3296_v11  ;;  %2941 = vmatpush3.msra.mxu0 %v2699_v15  ;;  %v2731_v15 = vld [vmem:[%s3871_s3 + $0x78] sm:$0xff] }
 0x107   : > { %3112 = vmatprep.subr.bf16.mxu0 %v3294_v3 }
 0x1c8   : > { %v766_v28 = vpop.f32.mrb[4].mxu0 }
 0x1c9   : > { %v770_v29 = vmul.f32 0.35355338, %v766_v28  ;;  %v2891_v30 = vpop.f32.mrb[5].mxu0  ;;  %v2702_v28 = vld [vmem:[%s3870_s2 + $0x40] sm:$0xff] }
 0x1cb   : > { %v772_v31 = vsel %vm771_vm3, -1e+09, %v770_v29  ;;  %v2703_v29 = vld [vmem:[%s3870_s2 + $0x48] sm:$0xff] }
 0x1cc   : > { %v773_v32 = vsel %vm693_vm2, %v772_v31, -inf  ;;  %v3113_v30 = vpack.c.bf16 %v2703_v29, %v2702_v28  ;;  %v2733_v28 = vld [vmem:[%s3872_s4 + $0x60] sm:$0xff]  ;;  %v2734_v29 = vld [vmem:[%s3872_s4 + $0x68] sm:$0xff] }
 0x1cd   : > { %774 = vmax.xlane.f32.xlu0 %v773_v32  ;;  %v2705_v32 = vld [vmem:[%s3870_s2 + $0x58] sm:$0xff] }
 0x1d0   : > { %v930_v53 = vpop.f32.mrb[6].mxu0 }
 0x1d1   : > { %v2907_v54 = vpop.f32.mrb[7].mxu0 }
 0x1d8   : > { %v1080_v13 = vpop.f32.mrb[8].mxu0 }
 0x1d9   : > { %v2929_v14 = vpop.f32.mrb[9].mxu0 }
 0x1da   : > { %v2730_v14 = vld [vmem:[%s3871_s3 + $0x70] sm:$0xff] }
 0x25a   : > { %v775_v33 = vpop.xlane.xlu0 %774 }
 0x25b   : > { %v776_v34 = vsub.f32 %v772_v31, %v775_v33  ;;  %v2704_v31 = vld [vmem:[%s3870_s2 + $0x50] sm:$0xff] }
 0x25d   : > { %v777_v35 = vmul.f32 1.442695, %v776_v34 }
 0x25f   : > { %3210 = vpow2.f32 %v777_v35  ;;  %v3116_v35 = vpack.c.bf16 %v2705_v32, %v2704_v31  ;;  %v3143_v31 = vpack.c.bf16 %v2734_v29, %v2733_v28  ;;  %v2736_v32 = vld [vmem:[%s3872_s4 + $0x78] sm:$0xff] }
 0x269   : > { %v3211_v36 = vpop.eup %3210 }
 0x26a   : > { %v779_v37 = vsel %vm693_vm2, %v3211_v36, 0.0 }
 0x26b   : > { %780 = vadd.xlane.f32.xlu0 %v779_v37 }
 0x2f8   : > { %v781_v44 = vpop.xlane.xlu0 %780 }
 0x2f9   : > { %3212 = vrcp.f32 %v781_v44 }
 0x303   : > { %v3213_v47 = vpop.eup %3212 }
 0x304   : > { %v783_v49 = vmul.f32 %v3213_v47, %v3211_v36  ;;  %v2714_v47 = vld [vmem:[%s3872_s4 + $0x50] sm:$0xff] }
 0x306   : > { %784 = vst.msk [vmem:[%s3538_s22] sm:$0xff] %vm693_vm2, %v783_v49  ;;  %2895 = vmatmul.mubr.msk.f32.vlgmr.msra.gmra.mrb[2].mxu1 %vm693_vm2, %v783_v49  ;;  %v2715_v49 = vld [vmem:[%s3872_s4 + $0x58] sm:$0xff] }
 0x307   : > { %3102 = vmatpush3.bf16.msra.mxu1 %v3101_v48  ;;  %2916 = vmatprep.mubr.msk.f32.mxu1 %vm3295_vm0, %v3296_v11  ;;  %v3125_v48 = vpack.c.bf16 %v2713_v46, %v2712_v45  ;;  %v3128_v50 = vpack.c.bf16 %v2715_v49, %v2714_v47 }
 0x308   : > { %3103 = vmatprep.subr.bf16.mxu1 %v3294_v3 }
 0x30b   : > { %3105 = vmatpush3.bf16.msra.mxu1 %v3104_v52 }
 0x30c   : > { %2930 = vmatprep.subr.mxu1 %v3296_v11 }
 0x30e   : > { %2917 = vmatmul.mubr.msk.f32.vlgmr.msra.gmra.mrb[4].mxu1 %vm471_vm1, %v3464_v16 }
 0x30f   : > { %2932 = vmatprep.mubr.msk.f32.mxu1 %vm3295_vm0, %v3296_v11 }
 0x3d9   : > { %v854_v55 = vpop.f32.mrb[2].mxu1 }
 0x3da   : > { %v2896_v56 = vpop.f32.mrb[3].mxu1 }
 0x3e1   : > { %v1005_v57 = vpop.f32.mrb[4].mxu1 }
 0x3e2   : > { %v2918_v58 = vpop.f32.mrb[5].mxu1  ;;  %2931 = vmatpush3.xpose.msk.msra.mxu1 %vm693_vm2, %v1005_v57 }
 0x3e3   : > { %2935 = vmatprep.subr.mxu1 %v3296_v11 }
 0x3e5   : > { %2933 = vmatmul.mubr.msk.f32.vlgmr.msra.gmra.mrb[6].mxu1 %vm693_vm2, %v930_v53 }
 0x3e6   : > { %2937 = vmatprep.mubr.msk.f32.mxu1 %vm3295_vm0, %v3296_v11  ;;  %2936 = vmatpush3.msra.mxu1 %v1080_v13 }
 0x3e7   : > { %2945 = vmatprep.subr.mxu1 %v3296_v11 }
 0x4b8   : > { %v1156_v1 = vpop.f32.mrb[6].mxu1 }
 0x4b9   : > { %v1160_v2 = vmul.f32 0.35355338, %v1156_v1  ;;  %v2934_v4 = vpop.f32.mrb[7].mxu1 }
 0x4ba   : > { %v2723_v4 = vld [vmem:[%s3870_s2 + $0x60] sm:$0xff] }
 0x4bb   : > { %v1161_v5 = vsel %vm771_vm3, -1e+09, %v1160_v2 }
 0x4bc   : > { %v1162_v6 = vsel %vm693_vm2, %v1161_v5, -inf }
 0x4bd   : > { %1163 = vmax.xlane.f32.xlu1 %v1162_v6 }
 0x54a   : > { %v1164_v7 = vpop.xlane.xlu1 %1163 }
 0x54b   : > { %v1165_v8 = vsub.f32 %v1161_v5, %v1164_v7  ;;  %v2724_v5 = vld [vmem:[%s3870_s2 + $0x68] sm:$0xff]  ;;  %v2725_v7 = vld [vmem:[%s3870_s2 + $0x70] sm:$0xff] }
 0x54c   : > { %v3131_v6 = vpack.c.bf16 %v2724_v5, %v2723_v4  ;;  %v2437_v4 = vld [vmem:[%s3877_s9 + $0x10] sm:$0xff] }
 0x54d   : > { %v1166_v9 = vmul.f32 1.442695, %v1165_v8  ;;  %v2726_v8 = vld [vmem:[%s3870_s2 + $0x78] sm:$0xff] }
 0x54f   : > { %3214 = vpow2.f32 %v1166_v9  ;;  %v3134_v9 = vpack.c.bf16 %v2726_v8, %v2725_v7  ;;  %v2439_v8 = vld [vmem:[%s3877_s9 + $0x20] sm:$0xff] }
 0x559   : > { %v3215_v10 = vpop.eup %3214 }
 0x55a   : > { %v1168_v12 = vsel %vm693_vm2, %v3215_v10, 0.0 }
 0x55b   : > { %1169 = vadd.xlane.f32.xlu1 %v1168_v12  ;;  %v2729_v12 = vld [vmem:[%s3871_s3 + $0x68] sm:$0xff] }
 0x5e8   : > { %v1170_v17 = vpop.xlane.xlu1 %1169 }
 0x5e9   : > { %3216 = vrcp.f32 %v1170_v17 }
 0x5f3   : > { %v3217_v18 = vpop.eup %3216 }
 0x5f4   : > { %v1172_v19 = vmul.f32 %v3217_v18, %v3215_v10  ;;  %v2728_v10 = vld [vmem:[%s3871_s3 + $0x60] sm:$0xff] }
 0x5f5   : > { %v3137_v13 = vpack.c.bf16 %v2729_v12, %v2728_v10 }
 0x5f6   : > { %2697 = vst.msk [vmem:[%s3538_s22 + $0x8] sm:$0xff] %vm693_vm2, %v1172_v19  ;;  %2938 = vmatmul.mubr.msk.f32.vlgmr.msra.gmra.mrb[8].mxu1 %vm693_vm2, %v1172_v19  ;;  %v3140_v19 = vpack.c.bf16 %v2731_v15, %v2730_v14 }
 0x5f7   : > { %2946 = vmatpush3.msra.mxu1 %v858_v20  ;;  %2947 = vmatprep.mubr.msk.f32.mxu1 %vm3295_vm0, %v3296_v11 }
 0x5f8   : > { %3118 = vmatprep.subr.bf16.mxu1 %v3294_v3 }
 0x5fa   : > { %2948 = vmatmul.mubr.msk.f32.vlgmr.msra.gmra.mrb[10].mxu1 %vm693_vm2, %v854_v55 }
 0x5fb   : > { %3120 = vmatpush3.bf16.msra.mxu1 %v3119_v23  ;;  %2969 = vmatprep.mubr.msk.f32.mxu1 %vm3295_vm0, %v3296_v11 }
 0x5fc   : > { %3121 = vmatprep.subr.bf16.mxu1 %v3294_v3 }
 0x5ff   : > { %3123 = vmatpush3.bf16.msra.mxu1 %v3122_v26 }
 0x600   : > { %2983 = vmatprep.subr.mxu1 %v3296_v11 }
 0x602   : > { %2970 = vmatmul.mubr.msk.f32.vlgmr.msra.gmra.mrb[12].mxu1 %vm471_vm1, %v3464_v16 }
 0x603   : > { %2985 = vmatprep.mubr.msk.f32.mxu1 %vm3295_vm0, %v3296_v11 }
 0x6c9   : > { %v1244_v33 = vpop.f32.mrb[8].mxu1 }
 0x6ca   : > { %v2939_v34 = vpop.f32.mrb[9].mxu1  ;;  %2943 = vmatmul.mubr.msk.f32.vlgmr.msra.gmra.mrb[10].mxu0 %vm693_vm2, %v1244_v33 }
 0x6cb   : > { %3114 = vmatpush3.bf16.msra.mxu0 %v3113_v30  ;;  %2958 = vmatprep.mubr.msk.f32.mxu0 %vm3295_vm0, %v3296_v11  ;;  %v2735_v30 = vld [vmem:[%s3872_s4 + $0x70] sm:$0xff] }
 0x6cc   : > { %3115 = vmatprep.subr.bf16.mxu0 %v3294_v3  ;;  %v3146_v33 = vpack.c.bf16 %v2736_v32, %v2735_v30 }
 0x6cd   : > { %v1392_v36 = vpop.f32.mrb[10].mxu1 }
 0x6ce   : > { %v2949_v37 = vpop.f32.mrb[11].mxu1 }
 0x6cf   : > { %3117 = vmatpush3.bf16.msra.mxu0 %v3116_v35 }
 0x6d0   : > { %3124 = vmatprep.subr.bf16.mxu0 %v3294_v3 }
 0x6d2   : > { %2959 = vmatmul.mubr.msk.f32.vlgmr.msra.gmra.mrb[12].mxu0 %vm471_vm1, %v3464_v16 }
 0x6d3   : > { %2980 = vmatprep.mubr.msk.f32.mxu0 %vm3295_vm0, %v3296_v11  ;;  %3126 = vmatpush3.bf16.msra.mxu0 %v3125_v48 }
 0x6d4   : > { %3127 = vmatprep.subr.bf16.mxu0 %v3294_v3 }
 0x6d5   : > { %v1542_v38 = vpop.f32.mrb[12].mxu1 }
 0x6d6   : > { %v2971_v39 = vpop.f32.mrb[13].mxu1  ;;  %2984 = vmatpush3.xpose.msk.msra.mxu1 %vm693_vm2, %v1542_v38 }
 0x6d7   : > { %2988 = vmatprep.subr.mxu1 %v3296_v11  ;;  %3129 = vmatpush3.bf16.msra.mxu0 %v3128_v50 }
 0x6d8   : > { %2993 = vmatprep.subr.mxu0 %v3296_v11 }
 0x6da   : > { %2981 = vmatmul.mubr.msk.f32.vlgmr.msra.gmra.mrb[14].mxu0 %vm471_vm1, %v3464_v16 }
 0x6db   : > { %2995 = vmatprep.mubr.msk.f32.mxu0 %vm3295_vm0, %v3296_v11  ;;  %2994 = vmatpush3.msra.mxu0 %v2721_v63  ;;  %v2360_v63 = vld [vmem:[%s3876_s8 + $0x18] sm:$0xff] }
 0x6dc   : > { %3136 = vmatprep.subr.bf16.mxu0 %v3294_v3 }
 0x79d   : > { %v1319_v40 = vpop.f32.mrb[10].mxu0 }
 0x79e   : > { %v3636_v41 = vadd.f32 %v1392_v36, %v1319_v40  ;;  %v2944_v42 = vpop.f32.mrb[11].mxu0 }
 0x7a5   : > { %v1467_v43 = vpop.f32.mrb[12].mxu0 }
 0x7a6   : > { %v2960_v44 = vpop.f32.mrb[13].mxu0  ;;  %2986 = vmatmul.mubr.msk.f32.vlgmr.msra.gmra.mrb[14].mxu1 %vm693_vm2, %v1467_v43 }
 0x7a7   : > { %2990 = vmatprep.mubr.msk.f32.mxu1 %vm3295_vm0, %v3296_v11 }
 0x7ad   : > { %v1617_v61 = vpop.f32.mrb[14].mxu0 }
 0x7ae   : > { %v2982_v62 = vpop.f32.mrb[15].mxu0  ;;  %2989 = vmatpush3.msra.mxu1 %v1617_v61  ;;  %v2357_v61 = vld [vmem:[%s3876_s8] sm:$0xff] }
 0x7af   : > { %3130 = vmatprep.subr.bf16.mxu1 %v3294_v3 }
 0x879   : > { %v1693_v51 = vpop.f32.mrb[14].mxu1 }
 0x87a   : > { %v1697_v52 = vmul.f32 0.35355338, %v1693_v51  ;;  %v2987_v53 = vpop.f32.mrb[15].mxu1 }
 0x87c   : > { %v1698_v54 = vsel %vm771_vm3, -1e+09, %v1697_v52 }
 0x87d   : > { %v1699_v55 = vsel %vm693_vm2, %v1698_v54, -inf }
 0x87e   : > { %1700 = vmax.xlane.f32.xlu0 %v1699_v55 }
 0x90b   : > { %v1701_v56 = vpop.xlane.xlu0 %1700 }
 0x90c   : > { %v1702_v57 = vsub.f32 %v1698_v54, %v1701_v56 }
 0x90e   : > { %v1703_v58 = vmul.f32 1.442695, %v1702_v57 }
 0x910   : > { %3218 = vpow2.f32 %v1703_v58 }
 0x91a   : > { %v3219_v59 = vpop.eup %3218 }
 0x91b   : > { %v1705_v60 = vsel %vm693_vm2, %v3219_v59, 0.0 }
 0x91c   : > { %1706 = vadd.xlane.f32.xlu1 %v1705_v60 }
 0x9a9   : > { %v1707_v0 = vpop.xlane.xlu1 %1706 }
 0x9aa   : > { %3220 = vrcp.f32 %v1707_v0 }
 0x9b4   : > { %v3221_v1 = vpop.eup %3220 }
 0x9b5   : > { %v1709_v2 = vmul.f32 %v3221_v1, %v3219_v59  ;;  %v2435_v1 = vld [vmem:[%s3877_s9] sm:$0xff] }
 0x9b7   : > { %2719 = vst.msk [vmem:[%s3538_s22 + $0x10] sm:$0xff] %vm693_vm2, %v1709_v2  ;;  %2991 = vmatmul.mubr.msk.f32.vlgmr.msra.gmra.mrb[16].mxu1 %vm693_vm2, %v1709_v2  ;;  %v2436_v2 = vld [vmem:[%s3877_s9 + $0x8] sm:$0xff] }
 0x9b8   : > { %3006 = vmatprep.mubr.msk.f32.mxu1 %vm3295_vm0, %v3296_v11  ;;  %3132 = vmatpush3.bf16.msra.mxu1 %v3131_v6  ;;  %v3155_v5 = vpack.c.bf16 %v2436_v2, %v2435_v1  ;;  %v2438_v6 = vld [vmem:[%s3877_s9 + $0x18] sm:$0xff] }
 0x9b9   : > { %3133 = vmatprep.subr.bf16.mxu1 %v3294_v3  ;;  %v3158_v7 = vpack.c.bf16 %v2438_v6, %v2437_v4 }
 0x9bc   : > { %3135 = vmatpush3.bf16.msra.mxu1 %v3134_v9  ;;  %v2440_v9 = vld [vmem:[%s3877_s9 + $0x28] sm:$0xff] }
 0x9bd   : > { %3142 = vmatprep.subr.bf16.mxu1 %v3294_v3  ;;  %v3161_v10 = vpack.c.bf16 %v2440_v9, %v2439_v8 }
 0x9bf   : > { %3007 = vmatmul.mubr.msk.f32.vlgmr.msra.gmra.mrb[18].mxu1 %vm471_vm1, %v3464_v16 }
 0x9c0   : > { %3028 = vmatprep.mubr.msk.f32.mxu1 %vm3295_vm0, %v3296_v11  ;;  %3144 = vmatpush3.bf16.msra.mxu1 %v3143_v31 }
 0x9c1   : > { %3145 = vmatprep.subr.bf16.mxu1 %v3294_v3 }
 0x9c4   : > { %3147 = vmatpush3.bf16.msra.mxu1 %v3146_v33 }
 0x9c5   : > { %3041 = vmatprep.subr.mxu1 %v3296_v11 }
 0x9c7   : > { %3029 = vmatmul.mubr.msk.f32.vlgmr.msra.gmra.mrb[20].mxu1 %vm471_vm1, %v3464_v16 }
 0x9c8   : > { %3043 = vmatprep.mubr.msk.f32.mxu1 %vm3295_vm0, %v3296_v11  ;;  %3042 = vmatpush3.msra.mxu1 %v2742_v27 }
 0x9c9   : > { %3154 = vmatprep.subr.bf16.mxu1 %v3294_v3 }
 0xa8a   : > { %v1781_v17 = vpop.f32.mrb[16].mxu1 }
 0xa8b   : > { %v2992_v18 = vpop.f32.mrb[17].mxu1  ;;  %2996 = vmatmul.mubr.msk.f32.vlgmr.msra.gmra.mrb[16].mxu0 %vm693_vm2, %v1781_v17  ;;  %v2744_v17 = vld [vmem:[%s3874_s6] ss:$0 sm:$0xff] }
 0xa8c   : > { %3138 = vmatpush3.bf16.msra.mxu0 %v3137_v13  ;;  %3017 = vmatprep.mubr.msk.f32.mxu0 %vm3295_vm0, %v3296_v11 }
 0xa8d   : > { %3139 = vmatprep.subr.bf16.mxu0 %v3294_v3 }
 0xa90   : > { %3141 = vmatpush3.bf16.msra.mxu0 %v3140_v19  ;;  %v2745_v19 = vld [vmem:[%s3875_s7] ss:$0 sm:$0xff] }
 0xa91   : > { %3031 = vmatprep.subr.mxu0 %v3296_v11 }
 0xa92   : > { %v1932_v20 = vpop.f32.mrb[18].mxu1 }
 0xa93   : > { %3018 = vmatmul.mubr.msk.f32.vlgmr.msra.gmra.mrb[18].mxu0 %vm471_vm1, %v3464_v16  ;;  %v3008_v21 = vpop.f32.mrb[19].mxu1 }
 0xa94   : > { %3033 = vmatprep.mubr.msk.f32.mxu0 %vm3295_vm0, %v3296_v11 }
 0xa9a   : > { %v2082_v44 = vpop.f32.mrb[20].mxu1 }
 0xa9b   : > { %v3030_v45 = vpop.f32.mrb[21].mxu1 }
 0xb5e   : > { %v1856_v22 = vpop.f32.mrb[16].mxu0 }
 0xb5f   : > { %v1860_v23 = vadd.f32 %v1856_v22, %v3636_v41  ;;  %v2997_v24 = vpop.f32.mrb[17].mxu0  ;;  %v2442_v22 = vld [vmem:[%s3877_s9 + $0x38] sm:$0xff] }
 0xb66   : > { %v2007_v25 = vpop.f32.mrb[18].mxu0 }
 0xb67   : > { %v3019_v26 = vpop.f32.mrb[19].mxu0  ;;  %3032 = vmatpush3.xpose.msk.msra.mxu0 %vm693_vm2, %v2007_v25 }
 0xb68   : > { %3036 = vmatprep.subr.mxu0 %v3296_v11 }
 0xb6a   : > { %3034 = vmatmul.mubr.msk.f32.vlgmr.msra.gmra.mrb[20].mxu0 %vm693_vm2, %v1932_v20 }
 0xb6b   : > { %3038 = vmatprep.mubr.msk.f32.mxu0 %vm3295_vm0, %v3296_v11  ;;  %3037 = vmatpush3.msra.mxu0 %v2082_v44 }
 0xb6c   : > { %3148 = vmatprep.subr.bf16.mxu0 %v3294_v3 }
 0xc3d   : > { %v2158_v34 = vpop.f32.mrb[20].mxu0 }
 0xc3e   : > { %v2162_v35 = vmul.f32 0.35355338, %v2158_v34  ;;  %v3035_v36 = vpop.f32.mrb[21].mxu0 }
 0xc40   : > { %v2163_v37 = vsel %vm771_vm3, -1e+09, %v2162_v35 }
 0xc41   : > { %v2164_v38 = vsel %vm693_vm2, %v2163_v37, -inf }
 0xc42   : > { %2165 = vmax.xlane.f32.xlu0 %v2164_v38 }
 0xccf   : > { %v2166_v39 = vpop.xlane.xlu0 %2165 }
 0xcd0   : > { %v2167_v40 = vsub.f32 %v2163_v37, %v2166_v39 }
 0xcd2   : > { %v2168_v41 = vmul.f32 1.442695, %v2167_v40 }
 0xcd4   : > { %3222 = vpow2.f32 %v2168_v41 }
 0xcde   : > { %v3223_v42 = vpop.eup %3222 }
 0xcdf   : > { %v2170_v43 = vsel %vm693_vm2, %v3223_v42, 0.0 }
 0xce0   : > { %2171 = vadd.xlane.f32.xlu1 %v2170_v43 }
 0xd6d   : > { %v2172_v46 = vpop.xlane.xlu1 %2171 }
 0xd6e   : > { %3224 = vrcp.f32 %v2172_v46 }
 0xd78   : > { %v3225_v47 = vpop.eup %3224 }
 0xd79   : > { %v2174_v48 = vmul.f32 %v3225_v47, %v3223_v42 }
 0xd7b   : > { %2740 = vst.msk [vmem:[%s3538_s22 + $0x18] sm:$0xff] %vm693_vm2, %v2174_v48  ;;  %3039 = vmatmul.mubr.msk.f32.vlgmr.msra.gmra.mrb[22].mxu0 %vm693_vm2, %v2174_v48  ;;  %s3234_s22 = sshll.u32 %s3297_s29, 4  ;;  %s3235_s22 = int_to_ptr.vmem [resolvable:$false] %s3234_s22 }
 0xd7c   : > { %3054 = vmatprep.mubr.msk.f32.mxu0 %vm3295_vm0, %v3296_v11  ;;  %s3236_s20 = scalar_lea.vmem %s3235_s22, 1024  ;;  %p3237_p0 = scmp.lt.s32.totalorder %s3812_s23, %s3235_s22 }
 0xd7d   : > { %p3238_p1 = scmp.lt.s32.totalorder %s3236_s20, %s3230_s17 }
 0xd7f   : > { %p3239_p2 = por %p3238_p1, %p3237_p0 }
 0xd81   : > { %p3240_p3 = pnand %p3239_p2, %p3233_p13 }
 0xe4e   : > { %v2246_v49 = vpop.f32.mrb[22].mxu0 }
 0xe4f   : > { %v3040_v50 = vpop.f32.mrb[23].mxu0  ;;  %3044 = vmatmul.mubr.msk.f32.vlgmr.msra.gmra.mrb[22].mxu1 %vm693_vm2, %v2246_v49 }
 0xe50   : > { %3073 = vmatprep.mubr.msk.f32.mxu1 %vm3295_vm0, %v3296_v11  ;;  %v2358_v11 = vld [vmem:[%s3876_s8 + $0x8] sm:$0xff]  ;;  %3156 = vmatpush3.bf16.msra.mxu1 %v3155_v5 }
 0xe51   : > { %v3149_v62 = vpack.c.bf16 %v2358_v11, %v2357_v61  ;;  %3157 = vmatprep.subr.bf16.mxu1 %v3294_v3 }
 0xe53   : > { %3150 = vmatpush3.bf16.msra.mxu0 %v3149_v62 }
 0xe54   : > { %3151 = vmatprep.subr.bf16.mxu0 %v3294_v3  ;;  %3159 = vmatpush3.bf16.msra.mxu1 %v3158_v7 }
 0xe55   : > { %3160 = vmatprep.subr.bf16.mxu1 %v3294_v3 }
 0xe58   : > { %3162 = vmatpush3.bf16.msra.mxu1 %v3161_v10 }
 0xe59   : > { %3163 = vmatprep.subr.bf16.mxu1 %v3294_v3  ;;  %v2441_v3 = vld [vmem:[%s3877_s9 + $0x30] sm:$0xff] }
 0xf22   : > { %v2321_v51 = vpop.f32.mrb[22].mxu1 }
 0xf23   : > { %v2325_v52 = vadd.f32 %v2321_v51, %v1860_v23  ;;  %v3045_v53 = vpop.f32.mrb[23].mxu1  ;;  %v3164_v23 = vpack.c.bf16 %v2442_v22, %v2441_v3 }
 0xf25   : > { %v2326_v54 = vadd.f32 %v2325_v52, %v3464_v16  ;;  %v2359_v16 = vld [vmem:[%s3876_s8 + $0x10] sm:$0xff]  ;;  %3165 = vmatpush3.bf16.msra.mxu1 %v3164_v23 }
 0xf26   : > { %v3152_v0 = vpack.c.bf16 %v2360_v63, %v2359_v16 }
 0xf27   : > { %v2329_v55 = vsel %vm471_vm1, %v2326_v54, 0.0 }
 0xf28   : > { %2330 = vadd.xlane.f32.xlu0 %v2329_v55  ;;  %3153 = vmatpush3.bf16.msra.mxu0 %v3152_v0 }
 0xfb5   : > { %v2331_v56 = vpop.xlane.xlu0 %2330 }
 0xfb6   : > { %v2333_v57 = vmul.f32 0.03125, %v2331_v56 }
 0xfb8   : > { %v2334_v58 = vsub.f32 %v2326_v54, %v2333_v57 }
 0xfba   : > { %v2335_v59 = vmul.f32 %v2334_v58, %v2334_v58 }
 0xfbc   : > { %v2336_v60 = vsel %vm471_vm1, %v2335_v59, 0.0 }
 0xfbd   : > { %2337 = vadd.xlane.f32.xlu1 %v2336_v60 }
0x104a   : > { %v2338_v12 = vpop.xlane.xlu1 %2337 }
0x104b   : > { %v2339_v13 = vmul.f32 0.03125, %v2338_v12 }
0x104d   : > { %v2340_v14 = vadd.f32 1e-05, %v2339_v13 }
0x104f   : > { %3226 = vrsqrt.f32 %v2340_v14 }
0x1059   : > { %v3227_v15 = vpop.eup %3226 }
0x105a   : > { %v2342_v18 = vmul.f32 %v3227_v15, %v2334_v58 }
0x105c   : > { %v2349_v20 = vmul.f32 %v2744_v17, %v2342_v18 }
0x105e   : > { %v2356_v21 = vadd.f32 %v2745_v19, %v2349_v20 }
0x1060   : > { %3055 = vmatmul.mubr.msk.f32.vlgmr.msra.gmra.mrb[24].mxu0 %vm471_vm1, %v2356_v21 }
0x1133   : > { %v2430_v24 = vpop.f32.mrb[24].mxu0 }
0x1134   : > { %v2434_v25 = vmax.f32 %v2430_v24, 0.0  ;;  %v3056_v26 = vpop.f32.mrb[25].mxu0 }
0x1136   : > { %3074 = vmatmul.mubr.msk.f32.vlgmr.msra.gmra.mrb[24].mxu1 %vm2443_vm4, %v2434_v25 }
0x1209   : > { %v2513_v28 = vpop.f32.mrb[24].mxu1 }
0x120a   : > { %v2514_v29 = vadd.f32 %v2513_v28, %v2356_v21  ;;  %v3075_v30 = vpop.f32.mrb[25].mxu1 }
0x120c   : > { %v2519_v31 = vsel %vm471_vm1, %v2514_v29, 0.0 }
0x120d   : > { %2520 = vadd.xlane.f32.xlu0 %v2519_v31 }
0x129a   : > { %v2521_v32 = vpop.xlane.xlu0 %2520 }
0x129b   : > { %v2522_v33 = vmul.f32 0.03125, %v2521_v32 }
0x129d   : > { %v2523_v34 = vsub.f32 %v2514_v29, %v2522_v33 }
0x129f   : > { %v2524_v35 = vmul.f32 %v2523_v34, %v2523_v34 }
0x12a1   : > { %v2525_v36 = vsel %vm471_vm1, %v2524_v35, 0.0 }
0x12a2   : > { %2526 = vadd.xlane.f32.xlu1 %v2525_v36 }
0x12a3   : > { %3243 = shalt.err (!%p3240_p3)
}
0x12a4   : > { %s3244_s21 = scalar_lea.hbm %s3810_s30, 512  ;;  %s3248_s24 = scalar_lea.hbm %s3881_s13, 1024 }
0x12a5   : > { %p3245_p4 = scmp.ne.s32.totalorder %s3810_s30, %s3244_s21  ;;  %p3249_p9 = scmp.lt.u32.totalorder %s3810_s30, %s3881_s13 }
0x12a6   : > { %p3250_p10 = scmp.lt.u32.totalorder %s3248_s24, %s3244_s21  ;;  %p3252_p12 = scmp.lt.u32.totalorder %s3244_s21, %s3810_s30 }
0x12a7   : > { %p3246_p7 = pnand %p3245_p4, %p3408_p5 }
0x12a8   : > { %p3251_p11 = por %p3250_p10, %p3249_p9 }
0x12a9   : > { %p3247_p8 = pneg %p3246_p7 }
0x12aa   : > { %p3253_p13 = por %p3252_p12, %p3251_p11 }
0x12ac   : > { %p3254_p0 = pnand %p3253_p13, %p3247_p8 }
0x12ae   : > { %3257 = shalt.err (!%p3254_p0)
}
0x12af   : > { %s3298_s17 = smov 128   ;;  %s3299_s22 = smov 8   ;;  %v2748_v41 = vld [vmem:[%s3878_s10] ss:$0 sm:$0xff] }
0x12b0   : > { %3166 = dma.vmem_to_hbm [thread:$0]  (%p3408_p5), %s3812_s23, 512, %s3810_s30, %s3816_s27, %s3298_s17, %s3298_s17, %s3299_s22  }
0x12b1   : > { %v2749_v43 = vld [vmem:[%s3879_s11] ss:$0 sm:$0xff]  ;;  %s463_s18 = scalar_lea.vmem %s3880_s12, %s3452_s16 }
0x132f   : > { %v2527_v37 = vpop.xlane.xlu1 %2526 }
0x1330   : > { %v2528_v38 = vmul.f32 0.03125, %v2527_v37 }
0x1332   : > { %v2529_v39 = vadd.f32 1e-05, %v2528_v38 }
0x1334   : > { %3228 = vrsqrt.f32 %v2529_v39 }
0x133e   : > { %v3229_v40 = vpop.eup %3228 }
0x133f   : > { %v2531_v42 = vmul.f32 %v3229_v40, %v2523_v34 }
0x1341   : > { %v2538_v44 = vmul.f32 %v2748_v41, %v2531_v42 }
0x1343   : > { %v2545_v45 = vadd.f32 %v2749_v43, %v2538_v44 }
0x1345   : > { %2546 = vst.msk [vmem:[%s463_s18] sm:$0xff] %vm471_vm1, %v2545_v45 }
0x1346 PF: > { %p3172_p5 = scmp.ge.s32.totalorder %s3292_s28, 2  ;;  %s2590_s23 = sand.u32 1, %s3280_s25  }
0x1347   : > { %s2591_s30 = scalar_lea.sflag [#allocation3], %s2590_s23 }
0x1348   : > { %p3169_p1 = pnand %p3172_p5, %p3412_p6 }
0x134a   : > { %3275 = dma.done.wait (!%p3169_p1), %s2591_s30, 512  }
0x134b   : > { %3277 = vsyncadd (!%p3169_p1), %s2591_s30, 4294966784  ;;  %s3893_s27 = sld [smem:[#allocation5_spill]]  ;;  %s3894_s29 = sld [smem:[#allocation6_spill]] }
0x134c   : > { %p24_p2 = scmp.ge.s32.totalorder %s3395_s14, 4   ;;  %s3895_s25 = smov %s3284_s26 }
0x134d   : > { %s3898_s28 = smov %s3395_s14 }
0x134e   :  { %26 = sbr.rel (!%p24_p2) target bundleno = 6 (0x6), region = 133 }
0x1351   : > { %s3896_s26 = smov %s3893_s27  ;;  %s3897_s27 = smov %s3894_s29 }
0x1355   :  { %2596 = vsyncpa [#allocation3], 1 }
0x1356   :  { %2598 = vsyncpa [#allocation3 + $0x1], 1 }

// kernel: transformer_forward.7
= control target key start
LH: loop header
LB: loop body
LE: loop exit
PB: predicated region body
PF: predicated region fallthrough
CT: control target
= control target key end

     0   :  { %s7036_s0 = inlined_call_operand.vmem [shape: f32[2,8,32], index: 0, kind: input, shape index: {}]   ;;  %s7037_s1 = inlined_call_operand.vmem [shape: f32[2,8,32], index: 1, kind: input, shape index: {}]   ;;  %s7038_s2 = inlined_call_operand.vmem [shape: f32[2,8,8], index: 2, kind: input, shape index: {}]   ;;  %s7039_s3 = inlined_call_operand.vmem [shape: f32[2,8,8], index: 3, kind: input, shape index: {}]   ;;  %s7040_s4 = inlined_call_operand.vmem [shape: f32[4,32,8], index: 4, kind: input, shape index: {}]   ;;  %s7041_s5 = inlined_call_operand.vmem [shape: f32[4,32,8], index: 5, kind: input, shape index: {}]   ;;  %s7042_s6 = inlined_call_operand.vmem [shape: f32[4,32,8], index: 6, kind: input, shape index: {}]   ;;  %s7043_s7 = inlined_call_operand.vmem [shape: f32[4,8,32], index: 7, kind: input, shape index: {}]   ;;  %s7044_s8 = inlined_call_operand.vmem [shape: f32[1,32], index: 8, kind: input, shape index: {}]   ;;  %s7045_s9 = inlined_call_operand.vmem [shape: f32[1,32], index: 9, kind: input, shape index: {}]   ;;  %s7046_s10 = inlined_call_operand.vmem [shape: f32[4,32,8], index: 10, kind: input, shape index: {}]   ;;  %s7047_s11 = inlined_call_operand.vmem [shape: f32[4,32,8], index: 11, kind: input, shape index: {}]   ;;  %s7048_s12 = inlined_call_operand.vmem [shape: f32[4,32,8], index: 12, kind: input, shape index: {}]   ;;  %s7049_s13 = inlined_call_operand.vmem [shape: f32[4,8,32], index: 13, kind: input, shape index: {}]   ;;  %s7050_s14 = inlined_call_operand.vmem [shape: f32[1,32], index: 14, kind: input, shape index: {}]   ;;  %s7051_s15 = inlined_call_operand.vmem [shape: f32[1,32], index: 15, kind: input, shape index: {}]   ;;  %s7052_s16 = inlined_call_operand.vmem [shape: f32[32,64], index: 16, kind: input, shape index: {}]   ;;  %s7053_s17 = inlined_call_operand.vmem [shape: f32[64,32], index: 17, kind: input, shape index: {}]   ;;  %s7054_s18 = inlined_call_operand.vmem [shape: f32[1,32], index: 18, kind: input, shape index: {}]   ;;  %s7055_s19 = inlined_call_operand.vmem [shape: f32[1,32], index: 19, kind: input, shape index: {}]   ;;  %s7056_s20 = inlined_call_operand.vmem [shape: f32[2,8,32], index: 20, kind: output, shape index: {0}]   ;;  %s7057_s21 = inlined_call_operand.hbm [shape: f32[8,8,8], index: 21, kind: output, shape index: {1}]   ;;  %s7058_s22 = inlined_call_operand.hbm [shape: f32[8,8,8], index: 22, kind: output, shape index: {2}]  }
   0x1   :  { %7072 = sst [smem:[#allocation15_spill]] %s7036_s0 }
   0x2   :  { %7073 = sst [smem:[#allocation16_spill]] %s7037_s1 }
   0x3   :  { %7074 = sst [smem:[#allocation17_spill]] %s7038_s2 }
   0x4   :  { %7075 = sst [smem:[#allocation18_spill]] %s7039_s3 }
   0x5   :  { %7076 = sst [smem:[#allocation19_spill]] %s7040_s4 }
   0x6   :  { %7077 = sst [smem:[#allocation20_spill]] %s7041_s5 }
   0x7   :  { %7078 = sst [smem:[#allocation21_spill]] %s7042_s6 }
   0x8   :  { %7079 = sst [smem:[#allocation22_spill]] %s7043_s7 }
   0x9   :  { %7080 = sst [smem:[#allocation23_spill]] %s7044_s8 }
   0xa   :  { %7081 = sst [smem:[#allocation24_spill]] %s7045_s9 }
   0xb   :  { %7082 = sst [smem:[#allocation25_spill]] %s7055_s19 }
   0xc   :  { %7083 = sst [smem:[#allocation26_spill]] %s7056_s20 }
   0xd   :  { %28 = vsyncpa [#allocation3], 0 }
   0xe   :  { %30 = vsyncpa [#allocation3 + $0x1], 0 }
   0xf   :  { %31 = vsyncpa [#allocation5], 0 }
  0x10   :  { %33 = vsyncpa [#allocation5 + $0x1], 0  ;;  %s6155_s3 = smov 0   ;;  %s6157_s28 = smov 0  }
  0x11   :  { %s6159_s29 = smov 0   ;;  %s6161_s30 = smov 0  }
  0x12 LB: > { %7084 = sst [smem:[#allocation8_spill]] %s6019_s3  ;;  %s6176_s4 = sadd.s32 4294967295, %s6031_s30   ;;  %s6031_s30 = sphi %s6161_s30, %s7111_s30   ;;  %s6027_s29 = sphi %s6159_s29, %s7114_s29   ;;  %s6023_s28 = sphi %s6157_s28, %s7113_s28   ;;  %s6019_s3 = sphi %s6155_s3, %s7112_s3  }
  0x13   : > { %7085 = sst [smem:[#allocation9_spill]] %s6023_s28  ;;  %s4923_s0 = sadd.s32 4294967294, %s6031_s30  }
  0x14   : > { %7086 = sst [smem:[#allocation10_spill]] %s6027_s29  ;;  %s6180_s23 = sadd.s32 1, %s6031_s30  }
  0x15   : > { %7087 = sst [smem:[#allocation11_spill]] %s6031_s30  ;;  %s512_s1 = sadd.s32 1, %s6027_s29 }
  0x16   : > { %7088 = sst [smem:[#allocation12_spill]] %s6180_s23  ;;  %s509_s5 = ssub.s32 %s6031_s30, %s6180_s23 }
  0x17   : > { %p522_p0 = scmp.ne.s32.totalorder %s6027_s29, %s6023_s28  ;;  %p510_p1 = scmp.eq.s32.totalorder %s509_s5, 0 }
  0x18   : > { %p523_p2 = scmp.eq.s32.totalorder %s6176_s4, 1  ;;  %p528_p3 = scmp.ne.s32.totalorder %s6023_s28, %s6019_s3 }
  0x19   : > { %p529_p4 = scmp.eq.s32.totalorder %s4923_s0, 1  ;;  %p4926_p7 = scmp.ge.s32.totalorder %s6031_s30, 1 }
  0x1a   : > { %s6191_s24 = scalar_select %p510_p1, %s6027_s29, %s512_s1  }
  0x1b   : > { %p6193_p5 = por %p523_p2, %p522_p0  ;;  %p6197_p6 = por %p529_p4, %p528_p3 }
  0x1c   : > { %7089 = sst [smem:[#allocation13_spill]] %s6191_s24  ;;  %p649_p8 = scmp.lt.s32.totalorder %s6031_s30, 3 }
  0x1d   : > { %s7091_s25 = scalar_select %p6197_p6, 1, 0 }
  0x1e   : > { %p650_p9 = pnand %p4926_p7, %p649_p8 }
  0x1f   : > { %7092 = sst [smem:[#allocation14_spill]] %s7091_s25  ;;  %s7093_s27 = sld [smem:[#allocation20_spill]] (!%p650_p9)  ;;  %v6033_v3 = vmov (!%p650_p9), 0.0|0.0   ;;  %vm6034_vm0 = vmmov (!%p650_p9), 0   ;;  %v6035_v11 = vmov (!%p650_p9), 0.0   ;;  %vm760_vm1 = vcmask (!%p650_p9), 261120  }
  0x20   : > { %653 = sbr.rel (%p650_p9) target bundleno = 9110 (0x2396), region = 100  ;;  %s7094_s29 = sld [smem:[#allocation19_spill]] (!%p650_p9)  ;;  %5694 = vmatprep.subr.bf16.mxu1 (!%p650_p9), %v6033_v3  ;;  %5688 = vmatprep.subr.bf16.mxu0 (!%p650_p9), %v6033_v3  ;;  %vm982_vm2 = vcmask (!%p650_p9), 64512   ;;  %vm4623_vm5 = vcmask (!%p650_p9), 523264  }
  0x21   : > { %p731_p10 = scmp.lt.s32.totalorder (!%p650_p9), %s6176_s4, 1  ;;  %5293 = vmatprep.mubr.msk.f32.mxu1 (!%p650_p9), %vm6034_vm0, %v6035_v11  ;;  %5282 = vmatprep.mubr.msk.f32.mxu0 (!%p650_p9), %vm6034_vm0, %v6035_v11  ;;  %s7096_s2 = sld [smem:[#allocation21_spill]] (!%p650_p9) }
  0x22   : > { %s7097_s5 = sld [smem:[#allocation15_spill]] (!%p650_p9)  ;;  %s7099_s7 = sld [smem:[#allocation22_spill]] (!%p650_p9) }
  0x23   : > { %s7101_s8 = sld [smem:[#allocation23_spill]] (!%p650_p9)  ;;  %s7102_s9 = sld [smem:[#allocation24_spill]] (!%p650_p9) }
  0x24   : > { %s7071_s0 = sshll.u32 (!%p650_p9), %s6176_s4, 9  ;;  %s6036_s30 = smov (!%p650_p9), [#allocation2]  }
  0x25   : > { %v834_v0 = vld [vmem:[%s7093_s27] sm:$0xff] (!%p650_p9)  ;;  %v835_v1 = vld [vmem:[%s7093_s27 + $0x8] sm:$0xff] (!%p650_p9)  ;;  %v836_v6 = vld [vmem:[%s7093_s27 + $0x10] sm:$0xff] (!%p650_p9) }
  0x26   : > { %s7095_s23 = smov (!%p650_p9), %s7094_s29  ;;  %v756_v2 = vld [vmem:[%s7094_s29] sm:$0xff] (!%p650_p9)  ;;  %v5695_v4 = vpack.c.bf16 (!%p650_p9), %v835_v1, %v834_v0  ;;  %v837_v7 = vld [vmem:[%s7093_s27 + $0x18] sm:$0xff] (!%p650_p9)  ;;  %s7098_s29 = sld [smem:[#allocation17_spill]] (!%p650_p9)  ;;  %v4946_v46 = vld [vmem:[%s7093_s27 + $0x28] sm:$0xff] (!%p650_p9) }
  0x27   : > { %v757_v5 = vld [vmem:[%s7095_s23 + $0x8] sm:$0xff]  ;;  %v758_v9 = vld [vmem:[%s7095_s23 + $0x10] sm:$0xff]  ;;  %v759_v10 = vld [vmem:[%s7095_s23 + $0x18] sm:$0xff]  ;;  %v5698_v12 = vpack.c.bf16 %v837_v7, %v836_v6  ;;  %s732_s3 = scalar_select %p731_p10, %s6176_s4, 1 }
  0x28   : > { %v5689_v8 = vpack.c.bf16 %v757_v5, %v756_v2  ;;  %5696 = vmatpush3.bf16.msra.mxu1 %v5695_v4  ;;  %v5692_v13 = vpack.c.bf16 %v759_v10, %v758_v9  ;;  %v908_v14 = vld [vmem:[%s7096_s2] sm:$0xff]  ;;  %v909_v15 = vld [vmem:[%s7096_s2 + $0x8] sm:$0xff]  ;;  %v910_v18 = vld [vmem:[%s7096_s2 + $0x10] sm:$0xff] }
  0x29   : > { %5697 = vmatprep.subr.bf16.mxu1 %v6033_v3  ;;  %s6237_s25 = sshll.u32 %s732_s3, 3  ;;  %v5701_v17 = vpack.c.bf16 %v909_v15, %v908_v14  ;;  %v911_v19 = vld [vmem:[%s7096_s2 + $0x18] sm:$0xff]  ;;  %v4940_v38 = vld [vmem:[%s7095_s23 + $0x20] sm:$0xff]  ;;  %v4941_v39 = vld [vmem:[%s7095_s23 + $0x28] sm:$0xff] }
  0x2a   : > { %5690 = vmatpush3.bf16.msra.mxu0 %v5689_v8  ;;  %s734_s20 = scalar_lea.vmem %s7097_s5, %s6237_s25  ;;  %v5704_v20 = vpack.c.bf16 %v911_v19, %v910_v18  ;;  %v5707_v40 = vpack.c.bf16 %v4941_v39, %v4940_v38  ;;  %v4942_v41 = vld [vmem:[%s7095_s23 + $0x30] sm:$0xff]  ;;  %v4943_v42 = vld [vmem:[%s7095_s23 + $0x38] sm:$0xff]  ;;  %v4945_v45 = vld [vmem:[%s7093_s27 + $0x20] sm:$0xff] }
  0x2b   : > { %5691 = vmatprep.subr.bf16.mxu0 %v6033_v3  ;;  %v6249_v16 = vld [vmem:[%s734_s20] sm:$0xff]  ;;  %v5710_v43 = vpack.c.bf16 %v4943_v42, %v4942_v41  ;;  %v5713_v48 = vpack.c.bf16 %v4946_v46, %v4945_v45  ;;  %v4947_v50 = vld [vmem:[%s7093_s27 + $0x30] sm:$0xff]  ;;  %v4948_v51 = vld [vmem:[%s7093_s27 + $0x38] sm:$0xff] }
  0x2c   : > { %5699 = vmatpush3.bf16.msra.mxu1 %v5698_v12  ;;  %s742_s24 = scalar_lea.vmem %s7098_s29, %s6237_s25  ;;  %v5716_v52 = vpack.c.bf16 %v4948_v51, %v4947_v50  ;;  %v4950_v59 = vld [vmem:[%s7096_s2 + $0x20] sm:$0xff]  ;;  %v4951_v60 = vld [vmem:[%s7096_s2 + $0x28] sm:$0xff]  ;;  %v4952_v61 = vld [vmem:[%s7096_s2 + $0x30] sm:$0xff]  ;;  %s6939_s29 = scalar_lea.hbm %s7057_s21, %s7071_s0 }
  0x2d   : > { %5312 = vmatprep.subr.mxu1 %v6035_v11  ;;  %v6283_v27 = vld [vmem:[%s742_s24] sm:$0xff]  ;;  %s6309_s24 = sand.u32 1, %s6023_s28   ;;  %v5719_v62 = vpack.c.bf16 %v4951_v60, %v4950_v59  ;;  %v4953_v63 = vld [vmem:[%s7096_s2 + $0x38] sm:$0xff]  ;;  %v4959_v15 = vld [vmem:[%s7099_s7 + $0x8] sm:$0xff] }
  0x2e   : > { %5693 = vmatpush3.bf16.msra.mxu0 %v5692_v13  ;;  %vm1060_vm3 = vcmp.gt.f32.partialorder %v6283_v27, 0.5  ;;  %s7069_s5 = sshll.u32 %s6309_s24, 5  ;;  %v5722_v0 = vpack.c.bf16 %v4953_v63, %v4952_v61  ;;  %v4972_v45 = vld [vmem:[%s7096_s2 + $0x40] sm:$0xff]  ;;  %v4973_v46 = vld [vmem:[%s7096_s2 + $0x48] sm:$0xff]  ;;  %v4981_v63 = vld [vmem:[%s7099_s7 + $0x10] sm:$0xff]  ;;  %s4732_s28 = scalar_lea.sflag [#allocation3], %s6309_s24 }
  0x2f   : > { %5700 = vmatprep.subr.bf16.mxu0 %v6033_v3  ;;  %5294 = vmatmul.mubr.msk.f32.vlgmr.msra.gmra.mrb[0].mxu1 %vm760_vm1, %v6249_v16  ;;  %s6326_s19 = scalar_lea.vmem [#allocation2], %s7069_s5  ;;  %v5002_v27 = vld [vmem:[%s7099_s7 + $0x18] sm:$0xff]  ;;  %s7100_s5 = sld [smem:[#allocation16_spill]] }
  0x30   : > { %5314 = vmatprep.mubr.msk.f32.mxu1 %vm6034_vm0, %v6035_v11  ;;  %s4753_s20 = sshll.u32 %s6326_s19, 4  ;;  %s6941_s20 = int_to_ptr.vmem [resolvable:$true] %s4753_s20 }
  0x31   : > { %5283 = vmatmul.mubr.msk.f32.vlgmr.msra.gmra.mrb[0].mxu0 %vm760_vm1, %v6249_v16  ;;  %s5937_s3 = scalar_lea.vmem %s6941_s20, 512 }
  0x32   : > { %5702 = vmatpush3.bf16.msra.mxu0 %v5701_v17  ;;  %5304 = vmatprep.mubr.msk.f32.mxu0 %vm6034_vm0, %v6035_v11  ;;  %p5938_p11 = scmp.ne.s32.totalorder %s6941_s20, %s5937_s3 }
  0x33   : > { %5703 = vmatprep.subr.bf16.mxu0 %v6033_v3 }
  0x34   : > { %p5939_p12 = pnand %p5938_p11, %p6193_p5 }
  0x36   : > { %5705 = vmatpush3.bf16.msra.mxu0 %v5704_v20  ;;  %v1147_v20 = vld [vmem:[%s7099_s7] sm:$0xff]  ;;  %p5940_p13 = pneg %p5939_p12 }
  0x37   : > { %5307 = vmatprep.subr.mxu0 %v6035_v11 }
  0x39   : > { %5305 = vmatmul.mubr.msk.f32.vlgmr.msra.gmra.mrb[2].mxu0 %vm760_vm1, %v6249_v16 }
  0x3a   : > { %5309 = vmatprep.mubr.msk.f32.mxu0 %vm6034_vm0, %v6035_v11 }
 0x102   : > { %v904_v21 = vpop.f32.mrb[0].mxu1 }
 0x103   : > { %v5295_v22 = vpop.f32.mrb[1].mxu1  ;;  %5308 = vmatpush3.xpose.msk.msra.mxu0 %vm982_vm2, %v904_v21  ;;  %v4967_v21 = vld [vmem:[%s7093_s27 + $0x40] sm:$0xff] }
 0x104   : > { %v830_v23 = vpop.f32.mrb[0].mxu0  ;;  %5706 = vmatprep.subr.bf16.mxu0 %v6033_v3  ;;  %v4968_v22 = vld [vmem:[%s7093_s27 + $0x48] sm:$0xff] }
 0x105   : > { %v5284_v24 = vpop.f32.mrb[1].mxu0 }
 0x106   : > { %5310 = vmatmul.mubr.msk.f32.vlgmr.msra.gmra.mrb[4].mxu0 %vm982_vm2, %v830_v23  ;;  %v5731_v23 = vpack.c.bf16 %v4968_v22, %v4967_v21  ;;  %v4969_v24 = vld [vmem:[%s7093_s27 + $0x50] sm:$0xff] }
 0x107   : > { %5325 = vmatprep.mubr.msk.f32.mxu0 %vm6034_vm0, %v6035_v11  ;;  %5708 = vmatpush3.bf16.msra.mxu0 %v5707_v40 }
 0x108   : > { %5709 = vmatprep.subr.bf16.mxu0 %v6033_v3 }
 0x10b   : > { %5711 = vmatpush3.bf16.msra.mxu0 %v5710_v43 }
 0x10c   : > { %v978_v25 = vpop.f32.mrb[2].mxu0  ;;  %5718 = vmatprep.subr.bf16.mxu0 %v6033_v3 }
 0x10d   : > { %v5306_v26 = vpop.f32.mrb[3].mxu0  ;;  %5313 = vmatpush3.msra.mxu1 %v978_v25  ;;  %v4970_v25 = vld [vmem:[%s7093_s27 + $0x58] sm:$0xff] }
 0x10e   : > { %5712 = vmatprep.subr.bf16.mxu1 %v6033_v3  ;;  %5326 = vmatmul.mubr.msk.f32.vlgmr.msra.gmra.mrb[6].mxu0 %vm760_vm1, %v6249_v16  ;;  %v5734_v26 = vpack.c.bf16 %v4970_v25, %v4969_v24 }
 0x10f   : > { %5347 = vmatprep.mubr.msk.f32.mxu0 %vm6034_vm0, %v6035_v11  ;;  %5720 = vmatpush3.bf16.msra.mxu0 %v5719_v62 }
 0x110   : > { %5721 = vmatprep.subr.bf16.mxu0 %v6033_v3 }
 0x113   : > { %5723 = vmatpush3.bf16.msra.mxu0 %v5722_v0 }
 0x114   : > { %5360 = vmatprep.subr.mxu0 %v6035_v11 }
 0x116   : > { %5348 = vmatmul.mubr.msk.f32.vlgmr.msra.gmra.mrb[8].mxu0 %vm760_vm1, %v6249_v16 }
 0x117   : > { %5362 = vmatprep.mubr.msk.f32.mxu0 %vm6034_vm0, %v6035_v11  ;;  %5361 = vmatpush3.msra.mxu0 %v4959_v15  ;;  %v4991_v15 = vld [vmem:[%s7093_s27 + $0x78] sm:$0xff] }
 0x118   : > { %5724 = vmatprep.subr.bf16.mxu0 %v6033_v3 }
 0x1d9   : > { %v1055_v28 = vpop.f32.mrb[4].mxu0 }
 0x1da   : > { %v1059_v29 = vmul.f32 0.35355338, %v1055_v28  ;;  %v5311_v30 = vpop.f32.mrb[5].mxu0  ;;  %v4962_v28 = vld [vmem:[%s7095_s23 + $0x40] sm:$0xff] }
 0x1dc   : > { %v1061_v31 = vsel %vm1060_vm3, -1e+09, %v1059_v29  ;;  %v4963_v29 = vld [vmem:[%s7095_s23 + $0x48] sm:$0xff] }
 0x1dd   : > { %v1062_v32 = vsel %vm982_vm2, %v1061_v31, -inf  ;;  %v5725_v30 = vpack.c.bf16 %v4963_v29, %v4962_v28  ;;  %v4993_v28 = vld [vmem:[%s7096_s2 + $0x60] sm:$0xff]  ;;  %v4994_v29 = vld [vmem:[%s7096_s2 + $0x68] sm:$0xff] }
 0x1de   : > { %1063 = vmax.xlane.f32.xlu0 %v1062_v32  ;;  %v4965_v32 = vld [vmem:[%s7095_s23 + $0x58] sm:$0xff] }
 0x1e1   : > { %v1219_v53 = vpop.f32.mrb[6].mxu0 }
 0x1e2   : > { %v5327_v54 = vpop.f32.mrb[7].mxu0 }
 0x1e9   : > { %v1369_v13 = vpop.f32.mrb[8].mxu0 }
 0x1ea   : > { %v5349_v14 = vpop.f32.mrb[9].mxu0 }
 0x1eb   : > { %v4990_v14 = vld [vmem:[%s7093_s27 + $0x70] sm:$0xff] }
 0x26b   : > { %v1064_v33 = vpop.xlane.xlu0 %1063 }
 0x26c   : > { %v1065_v34 = vsub.f32 %v1061_v31, %v1064_v33  ;;  %v4964_v31 = vld [vmem:[%s7095_s23 + $0x50] sm:$0xff] }
 0x26e   : > { %v1066_v35 = vmul.f32 1.442695, %v1065_v34 }
 0x270   : > { %5899 = vpow2.f32 %v1066_v35  ;;  %v5728_v35 = vpack.c.bf16 %v4965_v32, %v4964_v31  ;;  %v5755_v31 = vpack.c.bf16 %v4994_v29, %v4993_v28  ;;  %v4996_v32 = vld [vmem:[%s7096_s2 + $0x78] sm:$0xff]  ;;  %v5012_v28 = vld [vmem:[%s7046_s10 + $0x20] sm:$0xff]  ;;  %v5013_v29 = vld [vmem:[%s7046_s10 + $0x28] sm:$0xff] }
 0x27a   : > { %v5900_v36 = vpop.eup %5899 }
 0x27b   : > { %v1068_v37 = vsel %vm982_vm2, %v5900_v36, 0.0 }
 0x27c   : > { %1069 = vadd.xlane.f32.xlu0 %v1068_v37 }
 0x309   : > { %v1070_v44 = vpop.xlane.xlu0 %1069 }
 0x30a   : > { %5901 = vrcp.f32 %v1070_v44 }
 0x314   : > { %v5902_v47 = vpop.eup %5901 }
 0x315   : > { %v1072_v49 = vmul.f32 %v5902_v47, %v5900_v36  ;;  %v4974_v47 = vld [vmem:[%s7096_s2 + $0x50] sm:$0xff] }
 0x317   : > { %1073 = vst.msk [vmem:[%s6326_s19] sm:$0xff] %vm982_vm2, %v1072_v49  ;;  %5315 = vmatmul.mubr.msk.f32.vlgmr.msra.gmra.mrb[2].mxu1 %vm982_vm2, %v1072_v49  ;;  %v4975_v49 = vld [vmem:[%s7096_s2 + $0x58] sm:$0xff] }
 0x318   : > { %5714 = vmatpush3.bf16.msra.mxu1 %v5713_v48  ;;  %5336 = vmatprep.mubr.msk.f32.mxu1 %vm6034_vm0, %v6035_v11  ;;  %v5737_v48 = vpack.c.bf16 %v4973_v46, %v4972_v45  ;;  %v5740_v50 = vpack.c.bf16 %v4975_v49, %v4974_v47 }
 0x319   : > { %5715 = vmatprep.subr.bf16.mxu1 %v6033_v3 }
 0x31c   : > { %5717 = vmatpush3.bf16.msra.mxu1 %v5716_v52 }
 0x31d   : > { %5350 = vmatprep.subr.mxu1 %v6035_v11 }
 0x31f   : > { %5337 = vmatmul.mubr.msk.f32.vlgmr.msra.gmra.mrb[4].mxu1 %vm760_vm1, %v6249_v16 }
 0x320   : > { %5352 = vmatprep.mubr.msk.f32.mxu1 %vm6034_vm0, %v6035_v11 }
 0x3ea   : > { %v1143_v55 = vpop.f32.mrb[2].mxu1 }
 0x3eb   : > { %v5316_v56 = vpop.f32.mrb[3].mxu1 }
 0x3f2   : > { %v1294_v57 = vpop.f32.mrb[4].mxu1 }
 0x3f3   : > { %v5338_v58 = vpop.f32.mrb[5].mxu1  ;;  %5351 = vmatpush3.xpose.msk.msra.mxu1 %vm982_vm2, %v1294_v57 }
 0x3f4   : > { %5355 = vmatprep.subr.mxu1 %v6035_v11 }
 0x3f6   : > { %5353 = vmatmul.mubr.msk.f32.vlgmr.msra.gmra.mrb[6].mxu1 %vm982_vm2, %v1219_v53 }
 0x3f7   : > { %5357 = vmatprep.mubr.msk.f32.mxu1 %vm6034_vm0, %v6035_v11  ;;  %5356 = vmatpush3.msra.mxu1 %v1369_v13 }
 0x3f8   : > { %5365 = vmatprep.subr.mxu1 %v6035_v11 }
 0x4c9   : > { %v1445_v1 = vpop.f32.mrb[6].mxu1 }
 0x4ca   : > { %v1449_v2 = vmul.f32 0.35355338, %v1445_v1  ;;  %v5354_v4 = vpop.f32.mrb[7].mxu1 }
 0x4cb   : > { %v4983_v4 = vld [vmem:[%s7095_s23 + $0x60] sm:$0xff] }
 0x4cc   : > { %v1450_v5 = vsel %vm1060_vm3, -1e+09, %v1449_v2 }
 0x4cd   : > { %v1451_v6 = vsel %vm982_vm2, %v1450_v5, -inf }
 0x4ce   : > { %1452 = vmax.xlane.f32.xlu1 %v1451_v6 }
 0x55b   : > { %v1453_v7 = vpop.xlane.xlu1 %1452 }
 0x55c   : > { %v1454_v8 = vsub.f32 %v1450_v5, %v1453_v7  ;;  %v4984_v5 = vld [vmem:[%s7095_s23 + $0x68] sm:$0xff]  ;;  %v4985_v7 = vld [vmem:[%s7095_s23 + $0x70] sm:$0xff] }
 0x55d   : > { %v5743_v6 = vpack.c.bf16 %v4984_v5, %v4983_v4  ;;  %v2727_v4 = vld [vmem:[%s7047_s11 + $0x18] sm:$0xff] }
 0x55e   : > { %v1455_v9 = vmul.f32 1.442695, %v1454_v8  ;;  %v4986_v8 = vld [vmem:[%s7095_s23 + $0x78] sm:$0xff] }
 0x560   : > { %5903 = vpow2.f32 %v1455_v9  ;;  %v5746_v9 = vpack.c.bf16 %v4986_v8, %v4985_v7  ;;  %v2650_v7 = vld [vmem:[%s7046_s10 + $0x18] sm:$0xff] }
 0x56a   : > { %v5904_v10 = vpop.eup %5903 }
 0x56b   : > { %v1457_v12 = vsel %vm982_vm2, %v5904_v10, 0.0 }
 0x56c   : > { %1458 = vadd.xlane.f32.xlu1 %v1457_v12  ;;  %v4989_v12 = vld [vmem:[%s7093_s27 + $0x68] sm:$0xff] }
 0x5f9   : > { %v1459_v17 = vpop.xlane.xlu1 %1458 }
 0x5fa   : > { %5905 = vrcp.f32 %v1459_v17 }
 0x604   : > { %v5906_v18 = vpop.eup %5905 }
 0x605   : > { %v1461_v19 = vmul.f32 %v5906_v18, %v5904_v10  ;;  %v4988_v10 = vld [vmem:[%s7093_s27 + $0x60] sm:$0xff] }
 0x606   : > { %v5749_v13 = vpack.c.bf16 %v4989_v12, %v4988_v10 }
 0x607   : > { %4957 = vst.msk [vmem:[%s6326_s19 + $0x8] sm:$0xff] %vm982_vm2, %v1461_v19  ;;  %5358 = vmatmul.mubr.msk.f32.vlgmr.msra.gmra.mrb[8].mxu1 %vm982_vm2, %v1461_v19  ;;  %v5752_v19 = vpack.c.bf16 %v4991_v15, %v4990_v14  ;;  %v5004_v15 = vld [vmem:[%s7101_s8] ss:$0 sm:$0xff] }
 0x608   : > { %5366 = vmatpush3.msra.mxu1 %v1147_v20  ;;  %5367 = vmatprep.mubr.msk.f32.mxu1 %vm6034_vm0, %v6035_v11 }
 0x609   : > { %5730 = vmatprep.subr.bf16.mxu1 %v6033_v3 }
 0x60b   : > { %5368 = vmatmul.mubr.msk.f32.vlgmr.msra.gmra.mrb[10].mxu1 %vm982_vm2, %v1143_v55 }
 0x60c   : > { %5732 = vmatpush3.bf16.msra.mxu1 %v5731_v23  ;;  %5389 = vmatprep.mubr.msk.f32.mxu1 %vm6034_vm0, %v6035_v11 }
 0x60d   : > { %5733 = vmatprep.subr.bf16.mxu1 %v6033_v3 }
 0x610   : > { %5735 = vmatpush3.bf16.msra.mxu1 %v5734_v26 }
 0x611   : > { %5403 = vmatprep.subr.mxu1 %v6035_v11 }
 0x613   : > { %5390 = vmatmul.mubr.msk.f32.vlgmr.msra.gmra.mrb[12].mxu1 %vm760_vm1, %v6249_v16 }
 0x614   : > { %5405 = vmatprep.mubr.msk.f32.mxu1 %vm6034_vm0, %v6035_v11 }
 0x6da   : > { %v1533_v33 = vpop.f32.mrb[8].mxu1 }
 0x6db   : > { %v5359_v34 = vpop.f32.mrb[9].mxu1  ;;  %5363 = vmatmul.mubr.msk.f32.vlgmr.msra.gmra.mrb[10].mxu0 %vm982_vm2, %v1533_v33 }
 0x6dc   : > { %5726 = vmatpush3.bf16.msra.mxu0 %v5725_v30  ;;  %5378 = vmatprep.mubr.msk.f32.mxu0 %vm6034_vm0, %v6035_v11  ;;  %v4995_v30 = vld [vmem:[%s7096_s2 + $0x70] sm:$0xff]  ;;  %s738_s2 = scalar_lea.vmem %s7100_s5, %s6237_s25  ;;  %s5941_s5 = sshll.u32 %s6036_s30, 4  ;;  %s5942_s5 = int_to_ptr.vmem [resolvable:$false] %s5941_s5 }
 0x6dd   : > { %5727 = vmatprep.subr.bf16.mxu0 %v6033_v3  ;;  %v5758_v33 = vpack.c.bf16 %v4996_v32, %v4995_v30  ;;  %v5779_v30 = vpack.c.bf16 %v5013_v29, %v5012_v28  ;;  %v5015_v32 = vld [vmem:[%s7046_s10 + $0x38] sm:$0xff]  ;;  %v3039_v28 = vld [vmem:[%s7049_s13] sm:$0xff]  ;;  %p5944_p0 = scmp.lt.s32.totalorder %s6941_s20, %s5942_s5 }
 0x6de   : > { %v1681_v36 = vpop.f32.mrb[10].mxu1  ;;  %v5039_v29 = vld [vmem:[%s7047_s11 + $0x40] sm:$0xff] }
 0x6df   : > { %v5369_v37 = vpop.f32.mrb[11].mxu1 }
 0x6e0   : > { %5729 = vmatpush3.bf16.msra.mxu0 %v5728_v35 }
 0x6e1   : > { %5736 = vmatprep.subr.bf16.mxu0 %v6033_v3 }
 0x6e3   : > { %5379 = vmatmul.mubr.msk.f32.vlgmr.msra.gmra.mrb[12].mxu0 %vm760_vm1, %v6249_v16 }
 0x6e4   : > { %5400 = vmatprep.mubr.msk.f32.mxu0 %vm6034_vm0, %v6035_v11  ;;  %5738 = vmatpush3.bf16.msra.mxu0 %v5737_v48 }
 0x6e5   : > { %5739 = vmatprep.subr.bf16.mxu0 %v6033_v3 }
 0x6e6   : > { %v1831_v38 = vpop.f32.mrb[12].mxu1 }
 0x6e7   : > { %v5391_v39 = vpop.f32.mrb[13].mxu1  ;;  %5404 = vmatpush3.xpose.msk.msra.mxu1 %vm982_vm2, %v1831_v38 }
 0x6e8   : > { %5408 = vmatprep.subr.mxu1 %v6035_v11  ;;  %5741 = vmatpush3.bf16.msra.mxu0 %v5740_v50 }
 0x6e9   : > { %5413 = vmatprep.subr.mxu0 %v6035_v11 }
 0x6eb   : > { %5401 = vmatmul.mubr.msk.f32.vlgmr.msra.gmra.mrb[14].mxu0 %vm760_vm1, %v6249_v16 }
 0x6ec   : > { %5415 = vmatprep.mubr.msk.f32.mxu0 %vm6034_vm0, %v6035_v11  ;;  %5414 = vmatpush3.msra.mxu0 %v4981_v63  ;;  %v2647_v63 = vld [vmem:[%s7046_s10] sm:$0xff] }
 0x6ed   : > { %5748 = vmatprep.subr.bf16.mxu0 %v6033_v3 }
 0x7ae   : > { %v1608_v40 = vpop.f32.mrb[10].mxu0 }
 0x7af   : > { %v6424_v41 = vadd.f32 %v1681_v36, %v1608_v40  ;;  %v5364_v42 = vpop.f32.mrb[11].mxu0 }
 0x7b6   : > { %v1756_v43 = vpop.f32.mrb[12].mxu0 }
 0x7b7   : > { %v5380_v44 = vpop.f32.mrb[13].mxu0  ;;  %5406 = vmatmul.mubr.msk.f32.vlgmr.msra.gmra.mrb[14].mxu1 %vm982_vm2, %v1756_v43 }
 0x7b8   : > { %5410 = vmatprep.mubr.msk.f32.mxu1 %vm6034_vm0, %v6035_v11 }
 0x7be   : > { %v1906_v61 = vpop.f32.mrb[14].mxu0 }
 0x7bf   : > { %v5402_v62 = vpop.f32.mrb[15].mxu0  ;;  %5409 = vmatpush3.msra.mxu1 %v1906_v61  ;;  %v2724_v61 = vld [vmem:[%s7047_s11] sm:$0xff] }
 0x7c0   : > { %5742 = vmatprep.subr.bf16.mxu1 %v6033_v3  ;;  %v2725_v62 = vld [vmem:[%s7047_s11 + $0x8] sm:$0xff] }
 0x88a   : > { %v1982_v51 = vpop.f32.mrb[14].mxu1 }
 0x88b   : > { %v1986_v52 = vmul.f32 0.35355338, %v1982_v51  ;;  %v5407_v53 = vpop.f32.mrb[15].mxu1 }
 0x88d   : > { %v1987_v54 = vsel %vm1060_vm3, -1e+09, %v1986_v52 }
 0x88e   : > { %v1988_v55 = vsel %vm982_vm2, %v1987_v54, -inf }
 0x88f   : > { %1989 = vmax.xlane.f32.xlu0 %v1988_v55 }
 0x91c   : > { %v1990_v56 = vpop.xlane.xlu0 %1989 }
 0x91d   : > { %v1991_v57 = vsub.f32 %v1987_v54, %v1990_v56 }
 0x91f   : > { %v1992_v58 = vmul.f32 1.442695, %v1991_v57 }
 0x921   : > { %5907 = vpow2.f32 %v1992_v58 }
 0x92b   : > { %v5908_v59 = vpop.eup %5907 }
 0x92c   : > { %v1994_v60 = vsel %vm982_vm2, %v5908_v59, 0.0 }
 0x92d   : > { %1995 = vadd.xlane.f32.xlu1 %v1994_v60 }
 0x9ba   : > { %v1996_v0 = vpop.xlane.xlu1 %1995 }
 0x9bb   : > { %5909 = vrcp.f32 %v1996_v0  ;;  %v2648_v0 = vld [vmem:[%s7046_s10 + $0x8] sm:$0xff] }
 0x9c5   : > { %v5910_v1 = vpop.eup %5909 }
 0x9c6   : > { %v1998_v2 = vmul.f32 %v5910_v1, %v5908_v59  ;;  %v5761_v1 = vpack.c.bf16 %v2648_v0, %v2647_v63  ;;  %v5022_v0 = vld [vmem:[%s7048_s12 + $0x20] sm:$0xff] }
 0x9c8   : > { %4979 = vst.msk [vmem:[%s6326_s19 + $0x10] sm:$0xff] %vm982_vm2, %v1998_v2  ;;  %5411 = vmatmul.mubr.msk.f32.vlgmr.msra.gmra.mrb[16].mxu1 %vm982_vm2, %v1998_v2  ;;  %v2726_v2 = vld [vmem:[%s7047_s11 + $0x10] sm:$0xff] }
 0x9c9   : > { %5426 = vmatprep.mubr.msk.f32.mxu1 %vm6034_vm0, %v6035_v11  ;;  %5744 = vmatpush3.bf16.msra.mxu1 %v5743_v6  ;;  %v5770_v5 = vpack.c.bf16 %v2727_v4, %v2726_v2  ;;  %v2649_v6 = vld [vmem:[%s7046_s10 + $0x10] sm:$0xff] }
 0x9ca   : > { %5745 = vmatprep.subr.bf16.mxu1 %v6033_v3  ;;  %v5764_v8 = vpack.c.bf16 %v2650_v7, %v2649_v6  ;;  %v5024_v2 = vld [vmem:[%s7048_s12 + $0x30] sm:$0xff] }
 0x9cd   : > { %5747 = vmatpush3.bf16.msra.mxu1 %v5746_v9  ;;  %v6575_v9 = vld [vmem:[%s738_s2] sm:$0xff]  ;;  %s7103_s2 = sld [smem:[#allocation18_spill]] }
 0x9ce   : > { %5754 = vmatprep.subr.bf16.mxu1 %v6033_v3 }
 0x9d0   : > { %5427 = vmatmul.mubr.msk.f32.vlgmr.msra.gmra.mrb[18].mxu1 %vm760_vm1, %v6249_v16 }
 0x9d1   : > { %5448 = vmatprep.mubr.msk.f32.mxu1 %vm6034_vm0, %v6035_v11  ;;  %5756 = vmatpush3.bf16.msra.mxu1 %v5755_v31  ;;  %v5014_v31 = vld [vmem:[%s7046_s10 + $0x30] sm:$0xff] }
 0x9d2   : > { %5757 = vmatprep.subr.bf16.mxu1 %v6033_v3 }
 0x9d3   : > { %s746_s26 = scalar_lea.vmem %s7103_s2, %s6237_s25  ;;  %s7104_s2 = sshll.u32 %s6309_s24, 5 }
 0x9d5   : > { %5759 = vmatpush3.bf16.msra.mxu1 %v5758_v33  ;;  %v5782_v33 = vpack.c.bf16 %v5015_v32, %v5014_v31  ;;  %v5041_v32 = vld [vmem:[%s7047_s11 + $0x50] sm:$0xff] }
 0x9d6   : > { %5461 = vmatprep.subr.mxu1 %v6035_v11 }
 0x9d8   : > { %5449 = vmatmul.mubr.msk.f32.vlgmr.msra.gmra.mrb[20].mxu1 %vm760_vm1, %v6249_v16 }
 0x9d9   : > { %5463 = vmatprep.mubr.msk.f32.mxu1 %vm6034_vm0, %v6035_v11  ;;  %5462 = vmatpush3.msra.mxu1 %v5002_v27 }
 0x9da   : > { %5766 = vmatprep.subr.bf16.mxu1 %v6033_v3 }
 0xa9b   : > { %v2070_v17 = vpop.f32.mrb[16].mxu1 }
 0xa9c   : > { %v5412_v18 = vpop.f32.mrb[17].mxu1  ;;  %5416 = vmatmul.mubr.msk.f32.vlgmr.msra.gmra.mrb[16].mxu0 %vm982_vm2, %v2070_v17 }
 0xa9d   : > { %5750 = vmatpush3.bf16.msra.mxu0 %v5749_v13  ;;  %5437 = vmatprep.mubr.msk.f32.mxu0 %vm6034_vm0, %v6035_v11  ;;  %v2801_v18 = vld [vmem:[%s7048_s12] sm:$0xff] }
 0xa9e   : > { %5751 = vmatprep.subr.bf16.mxu0 %v6033_v3 }
 0xaa1   : > { %5753 = vmatpush3.bf16.msra.mxu0 %v5752_v19  ;;  %v2802_v19 = vld [vmem:[%s7048_s12 + $0x8] sm:$0xff] }
 0xaa2   : > { %5451 = vmatprep.subr.mxu0 %v6035_v11 }
 0xaa3   : > { %v2221_v20 = vpop.f32.mrb[18].mxu1 }
 0xaa4   : > { %5438 = vmatmul.mubr.msk.f32.vlgmr.msra.gmra.mrb[18].mxu0 %vm760_vm1, %v6249_v16  ;;  %v5428_v21 = vpop.f32.mrb[19].mxu1 }
 0xaa5   : > { %5453 = vmatprep.mubr.msk.f32.mxu0 %vm6034_vm0, %v6035_v11 }
 0xaab   : > { %v2371_v44 = vpop.f32.mrb[20].mxu1 }
 0xaac   : > { %v5450_v45 = vpop.f32.mrb[21].mxu1 }
 0xb6f   : > { %v2145_v22 = vpop.f32.mrb[16].mxu0 }
 0xb70   : > { %v2149_v23 = vadd.f32 %v2145_v22, %v6424_v41  ;;  %v5417_v24 = vpop.f32.mrb[17].mxu0  ;;  %v5773_v22 = vpack.c.bf16 %v2802_v19, %v2801_v18 }
 0xb71   : > { %v2803_v24 = vld [vmem:[%s7048_s12 + $0x10] sm:$0xff] }
 0xb77   : > { %v2296_v25 = vpop.f32.mrb[18].mxu0 }
 0xb78   : > { %v5439_v26 = vpop.f32.mrb[19].mxu0  ;;  %5452 = vmatpush3.xpose.msk.msra.mxu0 %vm982_vm2, %v2296_v25  ;;  %v2804_v25 = vld [vmem:[%s7048_s12 + $0x18] sm:$0xff] }
 0xb79   : > { %5456 = vmatprep.subr.mxu0 %v6035_v11  ;;  %v5776_v26 = vpack.c.bf16 %v2804_v25, %v2803_v24 }
 0xb7b   : > { %5454 = vmatmul.mubr.msk.f32.vlgmr.msra.gmra.mrb[20].mxu0 %vm982_vm2, %v2221_v20  ;;  %v5005_v20 = vld [vmem:[%s7102_s9] ss:$0 sm:$0xff] }
 0xb7c   : > { %5458 = vmatprep.mubr.msk.f32.mxu0 %vm6034_vm0, %v6035_v11  ;;  %5457 = vmatpush3.msra.mxu0 %v2371_v44 }
 0xb7d   : > { %5760 = vmatprep.subr.bf16.mxu0 %v6033_v3 }
 0xc4e   : > { %v2447_v34 = vpop.f32.mrb[20].mxu0 }
 0xc4f   : > { %v2451_v35 = vmul.f32 0.35355338, %v2447_v34  ;;  %v5455_v36 = vpop.f32.mrb[21].mxu0 }
 0xc51   : > { %v2452_v37 = vsel %vm1060_vm3, -1e+09, %v2451_v35 }
 0xc52   : > { %v2453_v38 = vsel %vm982_vm2, %v2452_v37, -inf }
 0xc53   : > { %2454 = vmax.xlane.f32.xlu0 %v2453_v38 }
 0xce0   : > { %v2455_v39 = vpop.xlane.xlu0 %2454 }
 0xce1   : > { %v2456_v40 = vsub.f32 %v2452_v37, %v2455_v39 }
 0xce3   : > { %v2457_v41 = vmul.f32 1.442695, %v2456_v40 }
 0xce5   : > { %5911 = vpow2.f32 %v2457_v41 }
 0xcef   : > { %v5912_v42 = vpop.eup %5911 }
 0xcf0   : > { %v2459_v43 = vsel %vm982_vm2, %v5912_v42, 0.0 }
 0xcf1   : > { %2460 = vadd.xlane.f32.xlu1 %v2459_v43 }
 0xd7e   : > { %v2461_v46 = vpop.xlane.xlu1 %2460 }
 0xd7f   : > { %5913 = vrcp.f32 %v2461_v46 }
 0xd89   : > { %v5914_v47 = vpop.eup %5913 }
 0xd8a   : > { %v2463_v48 = vmul.f32 %v5914_v47, %v5912_v42  ;;  %v6640_v42 = vld [vmem:[%s746_s26] sm:$0xff]  ;;  %s6661_s26 = scalar_lea.vmem [#allocation4], %s7104_s2 }
 0xd8b   : > { %vm2952_vm4 = vcmp.gt.f32.partialorder %v6640_v42, 0.5  ;;  %v5074_v42 = vld [vmem:[%s7049_s13 + $0x18] sm:$0xff] }
 0xd8c   : > { %5000 = vst.msk [vmem:[%s6326_s19 + $0x18] sm:$0xff] %vm982_vm2, %v2463_v48  ;;  %5459 = vmatmul.mubr.msk.f32.vlgmr.msra.gmra.mrb[22].mxu0 %vm982_vm2, %v2463_v48  ;;  %s5943_s19 = scalar_lea.vmem %s5942_s5, 1024 }
 0xd8d   : > { %5474 = vmatprep.mubr.msk.f32.mxu0 %vm6034_vm0, %v6035_v11  ;;  %5762 = vmatpush3.bf16.msra.mxu0 %v5761_v1  ;;  %v5023_v1 = vld [vmem:[%s7048_s12 + $0x28] sm:$0xff]  ;;  %p5945_p1 = scmp.lt.s32.totalorder %s5943_s19, %s5937_s3 }
 0xd8e   : > { %5763 = vmatprep.subr.bf16.mxu0 %v6033_v3  ;;  %v5791_v4 = vpack.c.bf16 %v5023_v1, %v5022_v0 }
 0xd8f   : > { %p5946_p2 = por %p5945_p1, %p5944_p0 }
 0xd91   : > { %5765 = vmatpush3.bf16.msra.mxu0 %v5764_v8  ;;  %p5947_p3 = pnand %p5946_p2, %p5940_p13 }
 0xd92   : > { %5772 = vmatprep.subr.bf16.mxu0 %v6033_v3 }
 0xe5f   : > { %v2535_v49 = vpop.f32.mrb[22].mxu0 }
 0xe60   : > { %v5460_v50 = vpop.f32.mrb[23].mxu0  ;;  %5464 = vmatmul.mubr.msk.f32.vlgmr.msra.gmra.mrb[22].mxu1 %vm982_vm2, %v2535_v49 }
 0xe61   : > { %5485 = vmatprep.mubr.msk.f32.mxu1 %vm6034_vm0, %v6035_v11 }
 0xf33   : > { %v2610_v51 = vpop.f32.mrb[22].mxu1 }
 0xf34   : > { %v2614_v52 = vadd.f32 %v2610_v51, %v2149_v23  ;;  %v5465_v53 = vpop.f32.mrb[23].mxu1 }
 0xf35   : > { %v5017_v53 = vld [vmem:[%s7047_s11 + $0x20] sm:$0xff] }
 0xf36   : > { %v2615_v54 = vadd.f32 %v2614_v52, %v6249_v16  ;;  %v5767_v16 = vpack.c.bf16 %v2725_v62, %v2724_v61 }
 0xf38   : > { %v2618_v55 = vsel %vm760_vm1, %v2615_v54, 0.0  ;;  %5768 = vmatpush3.bf16.msra.mxu1 %v5767_v16 }
 0xf39   : > { %2619 = vadd.xlane.f32.xlu0 %v2618_v55  ;;  %5769 = vmatprep.subr.bf16.mxu1 %v6033_v3 }
 0xf3c   : > { %5771 = vmatpush3.bf16.msra.mxu1 %v5770_v5  ;;  %v5025_v5 = vld [vmem:[%s7048_s12 + $0x38] sm:$0xff] }
 0xf3d   : > { %5499 = vmatprep.subr.mxu1 %v6035_v11  ;;  %v5794_v6 = vpack.c.bf16 %v5025_v5, %v5024_v2 }
 0xf3f   : > { %5486 = vmatmul.mubr.msk.f32.vlgmr.msra.gmra.mrb[24].mxu1 %vm760_vm1, %v6575_v9 }
 0xf40   : > { %5501 = vmatprep.mubr.msk.f32.mxu1 %vm6034_vm0, %v6035_v11 }
 0xfc6   : > { %v2620_v56 = vpop.xlane.xlu0 %2619 }
 0xfc7   : > { %v2622_v57 = vmul.f32 0.03125, %v2620_v56 }
 0xfc9   : > { %v2623_v58 = vsub.f32 %v2615_v54, %v2622_v57  ;;  %v5018_v54 = vld [vmem:[%s7047_s11 + $0x28] sm:$0xff] }
 0xfca   : > { %v5785_v56 = vpack.c.bf16 %v5018_v54, %v5017_v53  ;;  %v5045_v53 = vld [vmem:[%s7048_s12 + $0x48] sm:$0xff]  ;;  %v5046_v54 = vld [vmem:[%s7048_s12 + $0x50] sm:$0xff] }
 0xfcb   : > { %v2624_v59 = vmul.f32 %v2623_v58, %v2623_v58 }
 0xfcd   : > { %v2625_v60 = vsel %vm760_vm1, %v2624_v59, 0.0  ;;  %v5020_v59 = vld [vmem:[%s7047_s11 + $0x38] sm:$0xff] }
 0xfce   : > { %2626 = vadd.xlane.f32.xlu1 %v2625_v60 }
0x1012   : > { %v2797_v34 = vpop.f32.mrb[24].mxu1 }
0x1013   : > { %v5487_v35 = vpop.f32.mrb[25].mxu1  ;;  %5500 = vmatpush3.xpose.msk.msra.mxu1 %vm982_vm2, %v2797_v34 }
0x1014   : > { %5504 = vmatprep.subr.mxu1 %v6035_v11  ;;  %v5034_v35 = vld [vmem:[%s7046_s10 + $0x40] sm:$0xff] }
0x105b   : > { %v2627_v10 = vpop.xlane.xlu1 %2626 }
0x105c   : > { %v2628_v12 = vmul.f32 0.03125, %v2627_v10 }
0x105e   : > { %v2629_v13 = vadd.f32 1e-05, %v2628_v12 }
0x1060   : > { %5915 = vrsqrt.f32 %v2629_v13 }
0x106a   : > { %v5916_v14 = vpop.eup %5915 }
0x106b   : > { %v2631_v17 = vmul.f32 %v5916_v14, %v2623_v58  ;;  %v5019_v58 = vld [vmem:[%s7047_s11 + $0x30] sm:$0xff] }
0x106c   : > { %v5788_v60 = vpack.c.bf16 %v5020_v59, %v5019_v58 }
0x106d   : > { %v2638_v21 = vmul.f32 %v5004_v15, %v2631_v17 }
0x106f   : > { %v6594_v23 = vadd.f32 %v5005_v20, %v2638_v21 }
0x1071   : > { %5475 = vmatmul.mubr.msk.f32.vlgmr.msra.gmra.mrb[24].mxu0 %vm760_vm1, %v6594_v23 }
0x1072   : > { %5774 = vmatpush3.bf16.msra.mxu0 %v5773_v22  ;;  %5496 = vmatprep.mubr.msk.f32.mxu0 %vm6034_vm0, %v6035_v11  ;;  %v5031_v22 = vld [vmem:[%s7049_s13 + $0x8] sm:$0xff] }
0x1073   : > { %5775 = vmatprep.subr.bf16.mxu0 %v6033_v3 }
0x1076   : > { %5777 = vmatpush3.bf16.msra.mxu0 %v5776_v26 }
0x1077   : > { %5778 = vmatprep.subr.bf16.mxu0 %v6033_v3 }
0x1079   : > { %5497 = vmatmul.mubr.msk.f32.vlgmr.msra.gmra.mrb[26].mxu0 %vm760_vm1, %v6575_v9 }
0x107a   : > { %5780 = vmatpush3.bf16.msra.mxu0 %v5779_v30  ;;  %5517 = vmatprep.mubr.msk.f32.mxu0 %vm6034_vm0, %v6035_v11  ;;  %v5040_v30 = vld [vmem:[%s7047_s11 + $0x48] sm:$0xff] }
0x107b   : > { %5781 = vmatprep.subr.bf16.mxu0 %v6033_v3  ;;  %v5803_v31 = vpack.c.bf16 %v5040_v30, %v5039_v29 }
0x107e   : > { %5783 = vmatpush3.bf16.msra.mxu0 %v5782_v33  ;;  %v5042_v33 = vld [vmem:[%s7047_s11 + $0x58] sm:$0xff] }
0x107f   : > { %5790 = vmatprep.subr.bf16.mxu0 %v6033_v3  ;;  %v5806_v34 = vpack.c.bf16 %v5042_v33, %v5041_v32 }
0x1081   : > { %5518 = vmatmul.mubr.msk.f32.vlgmr.msra.gmra.mrb[28].mxu0 %vm760_vm1, %v6594_v23 }
0x1082   : > { %5539 = vmatprep.mubr.msk.f32.mxu0 %vm6034_vm0, %v6035_v11  ;;  %5792 = vmatpush3.bf16.msra.mxu0 %v5791_v4 }
0x1083   : > { %5793 = vmatprep.subr.bf16.mxu0 %v6033_v3 }
0x1086   : > { %5795 = vmatpush3.bf16.msra.mxu0 %v5794_v6  ;;  %v5053_v6 = vld [vmem:[%s7049_s13 + $0x10] sm:$0xff] }
0x1087   : > { %5552 = vmatprep.subr.mxu0 %v6035_v11 }
0x1089   : > { %5540 = vmatmul.mubr.msk.f32.vlgmr.msra.gmra.mrb[30].mxu0 %vm760_vm1, %v6575_v9 }
0x108a   : > { %5554 = vmatprep.mubr.msk.f32.mxu0 %vm6034_vm0, %v6035_v11  ;;  %5553 = vmatpush3.msra.mxu0 %v5031_v22  ;;  %v5062_v22 = vld [vmem:[%s7047_s11 + $0x70] sm:$0xff] }
0x108b   : > { %5796 = vmatprep.subr.bf16.mxu0 %v6033_v3 }
0x1144   : > { %v2720_v36 = vpop.f32.mrb[24].mxu0 }
0x1145   : > { %v5476_v37 = vpop.f32.mrb[25].mxu0  ;;  %5502 = vmatmul.mubr.msk.f32.vlgmr.msra.gmra.mrb[26].mxu1 %vm982_vm2, %v2720_v36  ;;  %v5035_v36 = vld [vmem:[%s7046_s10 + $0x48] sm:$0xff] }
0x1146   : > { %5506 = vmatprep.mubr.msk.f32.mxu1 %vm6034_vm0, %v6035_v11  ;;  %v5797_v37 = vpack.c.bf16 %v5035_v36, %v5034_v35  ;;  %v5065_v36 = vld [vmem:[%s7048_s12 + $0x60] sm:$0xff] }
0x114c   : > { %v2871_v38 = vpop.f32.mrb[26].mxu0 }
0x114d   : > { %v5498_v39 = vpop.f32.mrb[27].mxu0  ;;  %5505 = vmatpush3.msra.mxu1 %v2871_v38  ;;  %v5036_v38 = vld [vmem:[%s7046_s10 + $0x50] sm:$0xff] }
0x114e   : > { %5784 = vmatprep.subr.bf16.mxu1 %v6033_v3  ;;  %v5037_v39 = vld [vmem:[%s7046_s10 + $0x58] sm:$0xff] }
0x1154   : > { %v3111_v40 = vpop.f32.mrb[28].mxu0 }
0x1155   : > { %v5519_v41 = vpop.f32.mrb[29].mxu0 }
0x115c   : > { %v3261_v20 = vpop.f32.mrb[30].mxu0 }
0x115d   : > { %v5541_v21 = vpop.f32.mrb[31].mxu0 }
0x1218   : > { %v2947_v43 = vpop.f32.mrb[26].mxu1 }
0x1219   : > { %v2951_v44 = vmul.f32 0.35355338, %v2947_v43  ;;  %v5503_v45 = vpop.f32.mrb[27].mxu1  ;;  %v5800_v43 = vpack.c.bf16 %v5037_v39, %v5036_v38  ;;  %v5067_v38 = vld [vmem:[%s7048_s12 + $0x70] sm:$0xff] }
0x121b   : > { %v2953_v27 = vsel %vm2952_vm4, -1e+09, %v2951_v44 }
0x121c   : > { %v2954_v46 = vsel %vm982_vm2, %v2953_v27, -inf }
0x121d   : > { %2955 = vmax.xlane.f32.xlu0 %v2954_v46 }
0x12aa   : > { %v2956_v47 = vpop.xlane.xlu0 %2955 }
0x12ab   : > { %v2957_v48 = vsub.f32 %v2953_v27, %v2956_v47 }
0x12ad   : > { %v2958_v49 = vmul.f32 1.442695, %v2957_v48 }
0x12af   : > { %5917 = vpow2.f32 %v2958_v49 }
0x12b9   : > { %v5918_v50 = vpop.eup %5917 }
0x12ba   : > { %v2960_v51 = vsel %vm982_vm2, %v5918_v50, 0.0 }
0x12bb   : > { %2961 = vadd.xlane.f32.xlu1 %v2960_v51 }
0x1348   : > { %v2962_v52 = vpop.xlane.xlu1 %2961 }
0x1349   : > { %5919 = vrcp.f32 %v2962_v52  ;;  %v5044_v52 = vld [vmem:[%s7048_s12 + $0x40] sm:$0xff] }
0x1353   : > { %v5920_v55 = vpop.eup %5919 }
0x1354   : > { %v2964_v57 = vmul.f32 %v5920_v55, %v5918_v50  ;;  %v5809_v55 = vpack.c.bf16 %v5045_v53, %v5044_v52 }
0x1356   : > { %2965 = vst.msk [vmem:[%s6661_s26] sm:$0xff] %vm982_vm2, %v2964_v57  ;;  %5507 = vmatmul.mubr.msk.f32.vlgmr.msra.gmra.mrb[28].mxu1 %vm982_vm2, %v2964_v57 }
0x1357   : > { %5786 = vmatpush3.bf16.msra.mxu1 %v5785_v56  ;;  %5528 = vmatprep.mubr.msk.f32.mxu1 %vm6034_vm0, %v6035_v11  ;;  %v5047_v56 = vld [vmem:[%s7048_s12 + $0x58] sm:$0xff] }
0x1358   : > { %5787 = vmatprep.subr.bf16.mxu1 %v6033_v3  ;;  %v5812_v57 = vpack.c.bf16 %v5047_v56, %v5046_v54 }
0x135b   : > { %5789 = vmatpush3.bf16.msra.mxu1 %v5788_v60 }
0x135c   : > { %5542 = vmatprep.subr.mxu1 %v6035_v11 }
0x135e   : > { %5529 = vmatmul.mubr.msk.f32.vlgmr.msra.gmra.mrb[30].mxu1 %vm760_vm1, %v6575_v9 }
0x135f   : > { %5544 = vmatprep.mubr.msk.f32.mxu1 %vm6034_vm0, %v6035_v11 }
0x1429   : > { %v3035_v61 = vpop.f32.mrb[28].mxu1 }
0x142a   : > { %v5508_v62 = vpop.f32.mrb[29].mxu1 }
0x1431   : > { %v3186_v16 = vpop.f32.mrb[30].mxu1 }
0x1432   : > { %v5530_v63 = vpop.f32.mrb[31].mxu1  ;;  %5543 = vmatpush3.xpose.msk.msra.mxu1 %vm982_vm2, %v3186_v16 }
0x1433   : > { %5547 = vmatprep.subr.mxu1 %v6035_v11 }
0x1435   : > { %5545 = vmatmul.mubr.msk.f32.vlgmr.msra.gmra.mrb[32].mxu1 %vm982_vm2, %v3111_v40 }
0x1436   : > { %5549 = vmatprep.mubr.msk.f32.mxu1 %vm6034_vm0, %v6035_v11  ;;  %5548 = vmatpush3.msra.mxu1 %v3261_v20  ;;  %v5061_v20 = vld [vmem:[%s7047_s11 + $0x68] sm:$0xff] }
0x1437   : > { %5557 = vmatprep.subr.mxu1 %v6035_v11 }
0x1508   : > { %v3337_v7 = vpop.f32.mrb[32].mxu1 }
0x1509   : > { %v3341_v8 = vmul.f32 0.35355338, %v3337_v7  ;;  %v5546_v10 = vpop.f32.mrb[33].mxu1 }
0x150a   : > { %v5056_v10 = vld [vmem:[%s7046_s10 + $0x68] sm:$0xff] }
0x150b   : > { %v3342_v12 = vsel %vm2952_vm4, -1e+09, %v3341_v8  ;;  %v5055_v8 = vld [vmem:[%s7046_s10 + $0x60] sm:$0xff] }
0x150c   : > { %v3343_v13 = vsel %vm982_vm2, %v3342_v12, -inf }
0x150d   : > { %3344 = vmax.xlane.f32.xlu0 %v3343_v13  ;;  %v5815_v13 = vpack.c.bf16 %v5056_v10, %v5055_v8  ;;  %v4615_v8 = vld [vmem:[%s7053_s17] sm:$0xff]  ;;  %v4616_v10 = vld [vmem:[%s7053_s17 + $0x8] sm:$0xff] }
0x159a   : > { %v3345_v14 = vpop.xlane.xlu0 %3344 }
0x159b   : > { %v3346_v15 = vsub.f32 %v3342_v12, %v3345_v14 }
0x159d   : > { %v3347_v17 = vmul.f32 1.442695, %v3346_v15  ;;  %v5057_v15 = vld [vmem:[%s7046_s10 + $0x70] sm:$0xff] }
0x159f   : > { %5921 = vpow2.f32 %v3347_v17  ;;  %v5058_v17 = vld [vmem:[%s7046_s10 + $0x78] sm:$0xff] }
0x15a9   : > { %v5922_v18 = vpop.eup %5921 }
0x15aa   : > { %v3349_v19 = vsel %vm982_vm2, %v5922_v18, 0.0 }
0x15ab   : > { %3350 = vadd.xlane.f32.xlu1 %v3349_v19  ;;  %v5060_v19 = vld [vmem:[%s7047_s11 + $0x60] sm:$0xff] }
0x15ac   : > { %v5821_v21 = vpack.c.bf16 %v5061_v20, %v5060_v19 }
0x1638   : > { %v3351_v24 = vpop.xlane.xlu1 %3350 }
0x1639   : > { %5923 = vrcp.f32 %v3351_v24  ;;  %v5063_v24 = vld [vmem:[%s7047_s11 + $0x78] sm:$0xff] }
0x1643   : > { %v5924_v25 = vpop.eup %5923 }
0x1644   : > { %v3353_v26 = vmul.f32 %v5924_v25, %v5922_v18  ;;  %v5818_v18 = vpack.c.bf16 %v5058_v17, %v5057_v15  ;;  %v4619_v17 = vld [vmem:[%s7053_s17 + $0x20] sm:$0xff] }
0x1646   : > { %5029 = vst.msk [vmem:[%s6661_s26 + $0x8] sm:$0xff] %vm982_vm2, %v3353_v26  ;;  %5550 = vmatmul.mubr.msk.f32.vlgmr.msra.gmra.mrb[34].mxu1 %vm982_vm2, %v3353_v26 }
0x1647   : > { %5558 = vmatpush3.msra.mxu1 %v3039_v28  ;;  %5559 = vmatprep.mubr.msk.f32.mxu1 %vm6034_vm0, %v6035_v11  ;;  %v5824_v28 = vpack.c.bf16 %v5063_v24, %v5062_v22 }
0x1648   : > { %5802 = vmatprep.subr.bf16.mxu1 %v6033_v3 }
0x164a   : > { %5560 = vmatmul.mubr.msk.f32.vlgmr.msra.gmra.mrb[36].mxu1 %vm982_vm2, %v3035_v61 }
0x164b   : > { %5804 = vmatpush3.bf16.msra.mxu1 %v5803_v31  ;;  %5581 = vmatprep.mubr.msk.f32.mxu1 %vm6034_vm0, %v6035_v11 }
0x164c   : > { %5805 = vmatprep.subr.bf16.mxu1 %v6033_v3 }
0x164f   : > { %5807 = vmatpush3.bf16.msra.mxu1 %v5806_v34 }
0x1650   : > { %5595 = vmatprep.subr.mxu1 %v6035_v11 }
0x1652   : > { %5582 = vmatmul.mubr.msk.f32.vlgmr.msra.gmra.mrb[38].mxu1 %vm760_vm1, %v6575_v9 }
0x1653   : > { %5597 = vmatprep.mubr.msk.f32.mxu1 %vm6034_vm0, %v6035_v11 }
0x1719   : > { %v3425_v40 = vpop.f32.mrb[34].mxu1 }
0x171a   : > { %v5551_v41 = vpop.f32.mrb[35].mxu1  ;;  %5555 = vmatmul.mubr.msk.f32.vlgmr.msra.gmra.mrb[32].mxu0 %vm982_vm2, %v3425_v40  ;;  %v5068_v40 = vld [vmem:[%s7048_s12 + $0x78] sm:$0xff] }
0x171b   : > { %5798 = vmatpush3.bf16.msra.mxu0 %v5797_v37  ;;  %5570 = vmatprep.mubr.msk.f32.mxu0 %vm6034_vm0, %v6035_v11  ;;  %v5066_v37 = vld [vmem:[%s7048_s12 + $0x68] sm:$0xff]  ;;  %v5830_v41 = vpack.c.bf16 %v5068_v40, %v5067_v38 }
0x171c   : > { %5799 = vmatprep.subr.bf16.mxu0 %v6033_v3  ;;  %v5827_v39 = vpack.c.bf16 %v5066_v37, %v5065_v36 }
0x171d   : > { %v3573_v44 = vpop.f32.mrb[36].mxu1 }
0x171e   : > { %v5561_v45 = vpop.f32.mrb[37].mxu1 }
0x171f   : > { %5801 = vmatpush3.bf16.msra.mxu0 %v5800_v43 }
0x1720   : > { %5808 = vmatprep.subr.bf16.mxu0 %v6033_v3 }
0x1722   : > { %5571 = vmatmul.mubr.msk.f32.vlgmr.msra.gmra.mrb[34].mxu0 %vm760_vm1, %v6594_v23 }
0x1723   : > { %5592 = vmatprep.mubr.msk.f32.mxu0 %vm6034_vm0, %v6035_v11  ;;  %5810 = vmatpush3.bf16.msra.mxu0 %v5809_v55 }
0x1724   : > { %5811 = vmatprep.subr.bf16.mxu0 %v6033_v3 }
0x1725   : > { %v3723_v27 = vpop.f32.mrb[38].mxu1 }
0x1726   : > { %v5583_v46 = vpop.f32.mrb[39].mxu1  ;;  %5596 = vmatpush3.xpose.msk.msra.mxu1 %vm982_vm2, %v3723_v27 }
0x1727   : > { %5600 = vmatprep.subr.mxu1 %v6035_v11  ;;  %5813 = vmatpush3.bf16.msra.mxu0 %v5812_v57 }
0x1728   : > { %5605 = vmatprep.subr.mxu0 %v6035_v11 }
0x172a   : > { %5593 = vmatmul.mubr.msk.f32.vlgmr.msra.gmra.mrb[36].mxu0 %vm760_vm1, %v6575_v9 }
0x172b   : > { %5607 = vmatprep.mubr.msk.f32.mxu0 %vm6034_vm0, %v6035_v11  ;;  %5606 = vmatpush3.msra.mxu0 %v5053_v6  ;;  %v4540_v6 = vld [vmem:[%s7052_s16 + $0x18] sm:$0xff] }
0x172c   : > { %5820 = vmatprep.subr.bf16.mxu0 %v6033_v3 }
0x17ed   : > { %v3500_v47 = vpop.f32.mrb[32].mxu0 }
0x17ee   : > { %v6759_v48 = vadd.f32 %v3573_v44, %v3500_v47  ;;  %v5556_v49 = vpop.f32.mrb[33].mxu0 }
0x17f5   : > { %v3648_v50 = vpop.f32.mrb[34].mxu0 }
0x17f6   : > { %v5572_v51 = vpop.f32.mrb[35].mxu0  ;;  %5598 = vmatmul.mubr.msk.f32.vlgmr.msra.gmra.mrb[40].mxu1 %vm982_vm2, %v3648_v50 }
0x17f7   : > { %5602 = vmatprep.mubr.msk.f32.mxu1 %vm6034_vm0, %v6035_v11 }
0x17fd   : > { %v3798_v4 = vpop.f32.mrb[36].mxu0 }
0x17fe   : > { %v5594_v5 = vpop.f32.mrb[37].mxu0  ;;  %5601 = vmatpush3.msra.mxu1 %v3798_v4  ;;  %v4537_v4 = vld [vmem:[%s7052_s16] sm:$0xff] }
0x17ff   : > { %5814 = vmatprep.subr.bf16.mxu1 %v6033_v3 }
0x18c9   : > { %v3874_v58 = vpop.f32.mrb[40].mxu1 }
0x18ca   : > { %v3878_v59 = vmul.f32 0.35355338, %v3874_v58  ;;  %v5599_v60 = vpop.f32.mrb[41].mxu1 }
0x18cc   : > { %v3879_v61 = vsel %vm2952_vm4, -1e+09, %v3878_v59 }
0x18cd   : > { %v3880_v62 = vsel %vm982_vm2, %v3879_v61, -inf }
0x18ce   : > { %3881 = vmax.xlane.f32.xlu0 %v3880_v62 }
0x195b   : > { %v3882_v16 = vpop.xlane.xlu0 %3881 }
0x195c   : > { %v3883_v63 = vsub.f32 %v3879_v61, %v3882_v16 }
0x195e   : > { %v3884_v0 = vmul.f32 1.442695, %v3883_v63 }
0x1960   : > { %5925 = vpow2.f32 %v3884_v0 }
0x196a   : > { %v5926_v1 = vpop.eup %5925 }
0x196b   : > { %v3886_v2 = vsel %vm982_vm2, %v5926_v1, 0.0 }
0x196c   : > { %3887 = vadd.xlane.f32.xlu1 %v3886_v2 }
0x19f9   : > { %v3888_v7 = vpop.xlane.xlu1 %3887 }
0x19fa   : > { %5927 = vrcp.f32 %v3888_v7 }
0x1a04   : > { %v5928_v12 = vpop.eup %5927 }
0x1a05   : > { %v3890_v14 = vmul.f32 %v5928_v12, %v5926_v1  ;;  %v4617_v12 = vld [vmem:[%s7053_s17 + $0x10] sm:$0xff] }
0x1a07   : > { %5051 = vst.msk [vmem:[%s6661_s26 + $0x10] sm:$0xff] %vm982_vm2, %v3890_v14  ;;  %5603 = vmatmul.mubr.msk.f32.vlgmr.msra.gmra.mrb[42].mxu1 %vm982_vm2, %v3890_v14  ;;  %v4618_v14 = vld [vmem:[%s7053_s17 + $0x18] sm:$0xff] }
0x1a08   : > { %5816 = vmatpush3.bf16.msra.mxu1 %v5815_v13  ;;  %5618 = vmatprep.mubr.msk.f32.mxu1 %vm6034_vm0, %v6035_v11  ;;  %v5839_v13 = vpack.c.bf16 %v4616_v10, %v4615_v8  ;;  %v5842_v15 = vpack.c.bf16 %v4618_v14, %v4617_v12 }
0x1a09   : > { %5817 = vmatprep.subr.bf16.mxu1 %v6033_v3 }
0x1a0c   : > { %5819 = vmatpush3.bf16.msra.mxu1 %v5818_v18  ;;  %v4620_v18 = vld [vmem:[%s7053_s17 + $0x28] sm:$0xff] }
0x1a0d   : > { %5826 = vmatprep.subr.bf16.mxu1 %v6033_v3  ;;  %v5845_v19 = vpack.c.bf16 %v4620_v18, %v4619_v17 }
0x1a0f   : > { %5619 = vmatmul.mubr.msk.f32.vlgmr.msra.gmra.mrb[44].mxu1 %vm760_vm1, %v6594_v23 }
0x1a10   : > { %5640 = vmatprep.mubr.msk.f32.mxu1 %vm6034_vm0, %v6035_v11  ;;  %5828 = vmatpush3.bf16.msra.mxu1 %v5827_v39 }
0x1a11   : > { %5829 = vmatprep.subr.bf16.mxu1 %v6033_v3 }
0x1a14   : > { %5831 = vmatpush3.bf16.msra.mxu1 %v5830_v41 }
0x1a15   : > { %5653 = vmatprep.subr.mxu1 %v6035_v11 }
0x1a17   : > { %5641 = vmatmul.mubr.msk.f32.vlgmr.msra.gmra.mrb[46].mxu1 %vm760_vm1, %v6575_v9 }
0x1a18   : > { %5655 = vmatprep.mubr.msk.f32.mxu1 %vm6034_vm0, %v6035_v11  ;;  %5654 = vmatpush3.msra.mxu1 %v5074_v42 }
0x1a19   : > { %5838 = vmatprep.subr.bf16.mxu1 %v6033_v3 }
0x1ada   : > { %v3962_v25 = vpop.f32.mrb[42].mxu1 }
0x1adb   : > { %v5604_v26 = vpop.f32.mrb[43].mxu1  ;;  %5608 = vmatmul.mubr.msk.f32.vlgmr.msra.gmra.mrb[38].mxu0 %vm982_vm2, %v3962_v25  ;;  %v5076_v25 = vld [vmem:[%s7050_s14] ss:$0 sm:$0xff] }
0x1adc   : > { %5822 = vmatpush3.bf16.msra.mxu0 %v5821_v21  ;;  %5629 = vmatprep.mubr.msk.f32.mxu0 %vm6034_vm0, %v6035_v11 }
0x1add   : > { %5823 = vmatprep.subr.bf16.mxu0 %v6033_v3 }
0x1ae0   : > { %5825 = vmatpush3.bf16.msra.mxu0 %v5824_v28  ;;  %v5077_v28 = vld [vmem:[%s7051_s15] ss:$0 sm:$0xff] }
0x1ae1   : > { %5643 = vmatprep.subr.mxu0 %v6035_v11 }
0x1ae2   : > { %v4113_v29 = vpop.f32.mrb[44].mxu1 }
0x1ae3   : > { %v5620_v30 = vpop.f32.mrb[45].mxu1  ;;  %5630 = vmatmul.mubr.msk.f32.vlgmr.msra.gmra.mrb[40].mxu0 %vm760_vm1, %v6575_v9 }
0x1ae4   : > { %5645 = vmatprep.mubr.msk.f32.mxu0 %vm6034_vm0, %v6035_v11 }
0x1aea   : > { %v4263_v51 = vpop.f32.mrb[46].mxu1 }
0x1aeb   : > { %v5642_v52 = vpop.f32.mrb[47].mxu1 }
0x1bae   : > { %v4037_v31 = vpop.f32.mrb[38].mxu0 }
0x1baf   : > { %v4041_v32 = vadd.f32 %v4037_v31, %v6759_v48  ;;  %v5609_v33 = vpop.f32.mrb[39].mxu0  ;;  %v4622_v31 = vld [vmem:[%s7053_s17 + $0x38] sm:$0xff] }
0x1bb6   : > { %v4188_v34 = vpop.f32.mrb[40].mxu0 }
0x1bb7   : > { %v5631_v35 = vpop.f32.mrb[41].mxu0  ;;  %5644 = vmatpush3.xpose.msk.msra.mxu0 %vm982_vm2, %v4188_v34 }
0x1bb8   : > { %5648 = vmatprep.subr.mxu0 %v6035_v11 }
0x1bba   : > { %5646 = vmatmul.mubr.msk.f32.vlgmr.msra.gmra.mrb[42].mxu0 %vm982_vm2, %v4113_v29 }
0x1bbb   : > { %5650 = vmatprep.mubr.msk.f32.mxu0 %vm6034_vm0, %v6035_v11  ;;  %5649 = vmatpush3.msra.mxu0 %v4263_v51 }
0x1bbc   : > { %5832 = vmatprep.subr.bf16.mxu0 %v6033_v3 }
0x1c8d   : > { %v4339_v43 = vpop.f32.mrb[42].mxu0 }
0x1c8e   : > { %v4343_v44 = vmul.f32 0.35355338, %v4339_v43  ;;  %v5647_v45 = vpop.f32.mrb[43].mxu0 }
0x1c90   : > { %v4344_v27 = vsel %vm2952_vm4, -1e+09, %v4343_v44 }
0x1c91   : > { %v4345_v46 = vsel %vm982_vm2, %v4344_v27, -inf }
0x1c92   : > { %4346 = vmax.xlane.f32.xlu0 %v4345_v46 }
0x1d1f   : > { %v4347_v47 = vpop.xlane.xlu0 %4346 }
0x1d20   : > { %v4348_v48 = vsub.f32 %v4344_v27, %v4347_v47 }
0x1d22   : > { %v4349_v49 = vmul.f32 1.442695, %v4348_v48 }
0x1d24   : > { %5929 = vpow2.f32 %v4349_v49 }
0x1d2e   : > { %v5930_v50 = vpop.eup %5929 }
0x1d2f   : > { %v4351_v9 = vsel %vm982_vm2, %v5930_v50, 0.0 }
0x1d30   : > { %4352 = vadd.xlane.f32.xlu1 %v4351_v9 }
0x1dbd   : > { %v4353_v53 = vpop.xlane.xlu1 %4352 }
0x1dbe   : > { %5931 = vrcp.f32 %v4353_v53 }
0x1dc8   : > { %v5932_v54 = vpop.eup %5931 }
0x1dc9   : > { %v4355_v55 = vmul.f32 %v5932_v54, %v5930_v50 }
0x1dcb   : > { %5072 = vst.msk [vmem:[%s6661_s26 + $0x18] sm:$0xff] %vm982_vm2, %v4355_v55  ;;  %5651 = vmatmul.mubr.msk.f32.vlgmr.msra.gmra.mrb[44].mxu0 %vm982_vm2, %v4355_v55 }
0x1dcc   : > { %5666 = vmatprep.mubr.msk.f32.mxu0 %vm6034_vm0, %v6035_v11 }
0x1e9e   : > { %v4427_v56 = vpop.f32.mrb[44].mxu0 }
0x1e9f   : > { %v5652_v57 = vpop.f32.mrb[45].mxu0  ;;  %5656 = vmatmul.mubr.msk.f32.vlgmr.msra.gmra.mrb[48].mxu1 %vm982_vm2, %v4427_v56 }
0x1ea0   : > { %5685 = vmatprep.mubr.msk.f32.mxu1 %vm6034_vm0, %v6035_v11  ;;  %v4538_v11 = vld [vmem:[%s7052_s16 + $0x8] sm:$0xff]  ;;  %5840 = vmatpush3.bf16.msra.mxu1 %v5839_v13 }
0x1ea1   : > { %v5833_v5 = vpack.c.bf16 %v4538_v11, %v4537_v4  ;;  %5841 = vmatprep.subr.bf16.mxu1 %v6033_v3 }
0x1ea3   : > { %5834 = vmatpush3.bf16.msra.mxu0 %v5833_v5 }
0x1ea4   : > { %5835 = vmatprep.subr.bf16.mxu0 %v6033_v3  ;;  %5843 = vmatpush3.bf16.msra.mxu1 %v5842_v15 }
0x1ea5   : > { %5844 = vmatprep.subr.bf16.mxu1 %v6033_v3 }
0x1ea8   : > { %5846 = vmatpush3.bf16.msra.mxu1 %v5845_v19 }
0x1ea9   : > { %5847 = vmatprep.subr.bf16.mxu1 %v6033_v3  ;;  %v4621_v3 = vld [vmem:[%s7053_s17 + $0x30] sm:$0xff] }
0x1f72   : > { %v4502_v58 = vpop.f32.mrb[48].mxu1 }
0x1f73   : > { %v4506_v59 = vadd.f32 %v4502_v58, %v4041_v32  ;;  %v5657_v60 = vpop.f32.mrb[49].mxu1  ;;  %v5848_v32 = vpack.c.bf16 %v4622_v31, %v4621_v3 }
0x1f75   : > { %v4507_v61 = vadd.f32 %v4506_v59, %v6594_v23  ;;  %v4539_v23 = vld [vmem:[%s7052_s16 + $0x10] sm:$0xff]  ;;  %5849 = vmatpush3.bf16.msra.mxu1 %v5848_v32 }
0x1f76   : > { %v5836_v7 = vpack.c.bf16 %v4540_v6, %v4539_v23 }
0x1f77   : > { %v4510_v62 = vsel %vm760_vm1, %v4507_v61, 0.0 }
0x1f78   : > { %4511 = vadd.xlane.f32.xlu0 %v4510_v62  ;;  %5837 = vmatpush3.bf16.msra.mxu0 %v5836_v7 }
0x2005   : > { %v4512_v16 = vpop.xlane.xlu0 %4511 }
0x2006   : > { %v4513_v63 = vmul.f32 0.03125, %v4512_v16 }
0x2008   : > { %v4514_v0 = vsub.f32 %v4507_v61, %v4513_v63 }
0x200a   : > { %v4515_v1 = vmul.f32 %v4514_v0, %v4514_v0 }
0x200c   : > { %v4516_v2 = vsel %vm760_vm1, %v4515_v1, 0.0 }
0x200d   : > { %4517 = vadd.xlane.f32.xlu1 %v4516_v2 }
0x209a   : > { %v4518_v20 = vpop.xlane.xlu1 %4517 }
0x209b   : > { %v4519_v21 = vmul.f32 0.03125, %v4518_v20 }
0x209d   : > { %v4520_v22 = vadd.f32 1e-05, %v4519_v21 }
0x209f   : > { %5933 = vrsqrt.f32 %v4520_v22 }
0x20a9   : > { %v5934_v24 = vpop.eup %5933 }
0x20aa   : > { %v4522_v26 = vmul.f32 %v5934_v24, %v4514_v0 }
0x20ac   : > { %v4529_v29 = vmul.f32 %v5076_v25, %v4522_v26 }
0x20ae   : > { %v4536_v30 = vadd.f32 %v5077_v28, %v4529_v29 }
0x20b0   : > { %5667 = vmatmul.mubr.msk.f32.vlgmr.msra.gmra.mrb[46].mxu0 %vm760_vm1, %v4536_v30 }
0x2183   : > { %v4610_v33 = vpop.f32.mrb[46].mxu0 }
0x2184   : > { %v4614_v34 = vmax.f32 %v4610_v33, 0.0  ;;  %v5668_v35 = vpop.f32.mrb[47].mxu0 }
0x2186   : > { %5686 = vmatmul.mubr.msk.f32.vlgmr.msra.gmra.mrb[50].mxu1 %vm4623_vm5, %v4614_v34 }
0x2259   : > { %v4693_v36 = vpop.f32.mrb[50].mxu1 }
0x225a   : > { %v4694_v37 = vadd.f32 %v4693_v36, %v4536_v30  ;;  %v5687_v38 = vpop.f32.mrb[51].mxu1 }
0x225c   : > { %v4699_v39 = vsel %vm760_vm1, %v4694_v37, 0.0 }
0x225d   : > { %4700 = vadd.xlane.f32.xlu0 %v4699_v39 }
0x22ea   : > { %v4701_v40 = vpop.xlane.xlu0 %4700 }
0x22eb   : > { %v4702_v41 = vmul.f32 0.03125, %v4701_v40 }
0x22ed   : > { %v6927_v43 = vsub.f32 %v4694_v37, %v4702_v41 }
0x22ef   : > { %v4704_v44 = vmul.f32 %v6927_v43, %v6927_v43 }
0x22f1   : > { %v4705_v45 = vsel %vm760_vm1, %v4704_v44, 0.0 }
0x22f2   : > { %4706 = vadd.xlane.f32.xlu1 %v4705_v45 }
0x22f3   : > { %5950 = shalt.err (!%p5947_p3)
}
0x22f4   : > { %s5951_s2 = scalar_lea.hbm %s6939_s29, 512  ;;  %s5955_s30 = scalar_lea.hbm %s7057_s21, 1024 }
0x22f5   : > { %p5952_p4 = scmp.ne.s32.totalorder %s6939_s29, %s5951_s2  ;;  %p5956_p9 = scmp.lt.u32.totalorder %s6939_s29, %s7057_s21 }
0x22f6   : > { %p5957_p10 = scmp.lt.u32.totalorder %s5955_s30, %s5951_s2  ;;  %p5959_p12 = scmp.lt.u32.totalorder %s5951_s2, %s6939_s29 }
0x22f7   : > { %p5953_p7 = pnand %p5952_p4, %p6193_p5 }
0x22f8   : > { %p5958_p11 = por %p5957_p10, %p5956_p9 }
0x22f9   : > { %p5954_p8 = pneg %p5953_p7 }
0x22fa   : > { %p5960_p13 = por %p5959_p12, %p5958_p11 }
0x22fc   : > { %p5961_p0 = pnand %p5960_p13, %p5954_p8 }
0x22fe   : > { %5964 = shalt.err (!%p5961_p0)
}
0x22ff   : > { %s6037_s3 = smov 128   ;;  %s6038_s19 = smov 8  }
0x2300   : > { %5850 = dma.vmem_to_hbm [thread:$0]  (%p6193_p5), %s6941_s20, 512, %s6939_s29, %s4732_s28, %s6037_s3, %s6037_s3, %s6038_s19  }
0x2301   : > { %s7105_s0 = sshll.u32 %s6176_s4, 9  ;;  %s4769_s30 = sshll.u32 %s6661_s26, 4  ;;  %s6978_s30 = int_to_ptr.vmem [resolvable:$true] %s4769_s30 }
0x2302   : > { %s6975_s1 = scalar_lea.hbm %s7058_s22, %s7105_s0  ;;  %s4737_s5 = scalar_lea.sflag [#allocation5], %s6309_s24 }
0x2303   : > { %s5965_s8 = scalar_lea.vmem %s6978_s30, 512  ;;  %s6039_s9 = smov [#allocation4]  }
0x2304   : > { %p5966_p1 = scmp.ne.s32.totalorder %s6978_s30, %s5965_s8  ;;  %s5969_s20 = sshll.u32 %s6039_s9, 4  ;;  %s5970_s20 = int_to_ptr.vmem [resolvable:$false] %s5969_s20 }
0x2305   : > { %s5971_s4 = scalar_lea.vmem %s5970_s20, 1024  ;;  %p5972_p4 = scmp.lt.s32.totalorder %s6978_s30, %s5970_s20 }
0x2306   : > { %p5967_p2 = pnand %p5966_p1, %p6193_p5  ;;  %p5973_p7 = scmp.lt.s32.totalorder %s5971_s4, %s5965_s8 }
0x2308   : > { %p5968_p3 = pneg %p5967_p2  ;;  %p5974_p8 = por %p5973_p7, %p5972_p4 }
0x230a   : > { %p5975_p9 = pnand %p5974_p8, %p5968_p3 }
0x230c   : > { %5978 = shalt.err (!%p5975_p9)
}
0x230d   : > { %s5979_s26 = scalar_lea.hbm %s6975_s1, 512  ;;  %s5983_s9 = scalar_lea.hbm %s7058_s22, 1024 }
0x230e   : > { %p5980_p10 = scmp.ne.s32.totalorder %s6975_s1, %s5979_s26  ;;  %p5984_p13 = scmp.lt.u32.totalorder %s6975_s1, %s7058_s22 }
0x230f   : > { %p5985_p0 = scmp.lt.u32.totalorder %s5983_s9, %s5979_s26  ;;  %p5987_p2 = scmp.lt.u32.totalorder %s5979_s26, %s6975_s1 }
0x2310   : > { %p5981_p11 = pnand %p5980_p10, %p6193_p5 }
0x2311   : > { %p5986_p1 = por %p5985_p0, %p5984_p13 }
0x2312   : > { %p5982_p12 = pneg %p5981_p11 }
0x2313   : > { %p5988_p3 = por %p5987_p2, %p5986_p1 }
0x2315   : > { %p5989_p4 = pnand %p5988_p3, %p5982_p12 }
0x2317   : > { %5992 = shalt.err (!%p5989_p4)
}
0x2318   : > { %5851 = dma.vmem_to_hbm [thread:$0]  (%p6193_p5), %s6978_s30, 512, %s6975_s1, %s4737_s5, %s6037_s3, %s6037_s3, %s6038_s19  }
0x2319   : > { %v5080_v49 = vld [vmem:[%s7054_s18] ss:$0 sm:$0xff]  ;;  %s7106_s4 = sld [smem:[#allocation25_spill]]  ;;  %s7107_s29 = sld [smem:[#allocation26_spill]] }
0x231f   : > { %v5081_v9 = vld [vmem:[%s7106_s4] ss:$0 sm:$0xff]  ;;  %s750_s3 = scalar_lea.vmem %s7107_s29, %s6237_s25 }
0x237f   : > { %v4707_v27 = vpop.xlane.xlu1 %4706 }
0x2380   : > { %v4708_v46 = vmul.f32 0.03125, %v4707_v27 }
0x2382   : > { %v4709_v47 = vadd.f32 1e-05, %v4708_v46 }
0x2384   : > { %5935 = vrsqrt.f32 %v4709_v47 }
0x238e   : > { %v5936_v48 = vpop.eup %5935 }
0x238f   : > { %v4711_v50 = vmul.f32 %v5936_v48, %v6927_v43 }
0x2391   : > { %v4718_v51 = vmul.f32 %v5080_v49, %v4711_v50 }
0x2393   : > { %v4725_v52 = vadd.f32 %v5081_v9, %v4718_v51 }
0x2395   : > { %4726 = vst.msk [vmem:[%s750_s3] sm:$0xff] %vm760_vm1, %v4725_v52 }
0x2396 PF: > { %s7108_s19 = sld [smem:[#allocation11_spill]]  ;;  %s7109_s1 = sld [smem:[#allocation8_spill]] }
0x239c   : > { %p5861_p5 = scmp.ge.s32.totalorder %s7108_s19, 2  ;;  %s4791_s5 = sand.u32 1, %s7109_s1  }
0x239d   : > { %s4792_s28 = scalar_lea.sflag [#allocation3], %s4791_s5 }
0x239e   : > { %p5855_p7 = pnand %p5861_p5, %p6197_p6 }
0x23a0   : > { %6010 = dma.done.wait (!%p5855_p7), %s4792_s28, 512  }
0x23a1   : > { %6012 = vsyncadd (!%p5855_p7), %s4792_s28, 4294966784  ;;  %s4801_s9 = scalar_lea.sflag [#allocation5], %s4791_s5 }
0x23a2   : > { %6014 = dma.done.wait (!%p5855_p7), %s4801_s9, 512  }
0x23a3   : > { %6016 = vsyncadd (!%p5855_p7), %s4801_s9, 4294966784  ;;  %s7111_s30 = sld [smem:[#allocation12_spill]]  ;;  %s7112_s3 = sld [smem:[#allocation9_spill]] }
0x23a4   : > { %s7113_s28 = sld [smem:[#allocation10_spill]]  ;;  %s7114_s29 = sld [smem:[#allocation13_spill]] }
0x23a9   : > { %p36_p8 = scmp.ge.s32.totalorder %s7111_s30, 4  }
0x23ab   :  { %38 = sbr.rel (!%p36_p8) target bundleno = 18 (0x12), region = 203 }
0x23b2   :  { %4806 = vsyncpa [#allocation3], 1 }
0x23b3   :  { %4808 = vsyncpa [#allocation3 + $0x1], 1 }
0x23b4   :  { %4809 = vsyncpa [#allocation5], 1 }
0x23b5   :  { %4811 = vsyncpa [#allocation5 + $0x1], 1 }

</bundles_post_ra>
